<compile_context>
chip_gen: v7x
topology: tpu7x:2x2x1
jax: 0.10.0
libtpu: 0.0.40
codegen_flags: <defaults>
</compile_context>

<pallas_src>
import math
from functools import lru_cache, partial

import jax
import jax.numpy as jnp
from jax.experimental import pallas as pl
from jax.experimental.pallas import tpu as pltpu

LN_EPS = 1e-12  # BertConfig.layer_norm_eps default


# ----------------------------- kernel helpers ------------------------------

def _gelu_exact(x):
    # torch.nn.functional.gelu default ("gelu" in HF ACT2FN) = exact erf gelu
    return 0.5 * x * (1.0 + jax.lax.erf(x * (1.0 / math.sqrt(2.0))))


def _layer_norm(x, gamma, beta):
    mu = jnp.mean(x, axis=-1, keepdims=True)
    var = jnp.mean((x - mu) ** 2, axis=-1, keepdims=True)
    return (x - mu) * jax.lax.rsqrt(var + LN_EPS) * gamma + beta


# ------------------------------ fused kernel -------------------------------

def bert_layer_kernel(num_heads, head_dim,
                      x_ref, mask_ref,
                      wqkv_ref, bqkv_ref, wo_ref, bo_ref, g1_ref, b1_ref,
                      wi_ref, bi_ref, wo2_ref, bo2_ref, g2_ref, b2_ref,
                      out_ref):
    x = x_ref[0].astype(jnp.float32)            # (S, H)
    S, H = x.shape
    mm_dtype = wqkv_ref.dtype                   # bf16 (default) or f32
    scale = 1.0 / math.sqrt(head_dim)

    def mm(a, b, dims=None):
        # MXU matmul in the weights' dtype, f32 accumulation.
        a = a.astype(mm_dtype)
        b = b.astype(mm_dtype)
        if dims is None:
            return jnp.dot(a, b, preferred_element_type=jnp.float32)
        return jax.lax.dot_general(a, b, dims, preferred_element_type=jnp.float32)

    # Fused QKV projection: a single wide (S,H) @ (H,3H) matmul.
    qkv = mm(x, wqkv_ref[...]) + bqkv_ref[...].astype(jnp.float32)  # (S, 3H)

    # Additive mask bias broadcast ONCE to (S, S) (hoisted out of the head loop).
    bias = jnp.broadcast_to(mask_ref[0].astype(jnp.float32), (S, S))

    # Per-head attention on static lane-aligned slices of the fused QKV result.
    # QK^T contracts the head dim via dot_general (no materialized transpose);
    # the per-head contexts are collected and concatenated so W_o is applied
    # as ONE wide (S,H) @ (H,H) matmul (full MXU contraction width).
    # TODO(synk): switch to lax.fori_loop(unroll=True) + VMEM scratch when
    # num_heads is large (12) to bound live ranges / vreg pressure.
    ctx_heads = []
    for h in range(num_heads):
        lo = h * head_dim
        q_h = qkv[:, lo:lo + head_dim]                  # (S, hd)
        k_h = qkv[:, H + lo:H + lo + head_dim]          # (S, hd)
        v_h = qkv[:, 2 * H + lo:2 * H + lo + head_dim]  # (S, hd)

        s = mm(q_h, k_h, (((1,), (1,)), ((), ()))) * scale + bias
        s = s - jnp.max(s, axis=-1, keepdims=True)
        e = jnp.exp(s)
        p = e * pl.reciprocal(jnp.sum(e, axis=-1, keepdims=True), approx=True)
        ctx_heads.append(mm(p, v_h))                    # (S, hd) f32

    ctx = ctx_heads[0] if num_heads == 1 else jnp.concatenate(ctx_heads, axis=-1)

    attn = mm(ctx, wo_ref[...]) + bo_ref[...].astype(jnp.float32)   # (S, H)
    attn = _layer_norm(attn + x, g1_ref[...], b1_ref[...])

    # Feed-forward: intermediate (exact GELU) + output dense + residual + LN.
    inter = _gelu_exact(mm(attn, wi_ref[...]) + bi_ref[...].astype(jnp.float32))
    ffn = mm(inter, wo2_ref[...]) + bo2_ref[...].astype(jnp.float32)
    y = _layer_norm(ffn + attn, g2_ref[...], b2_ref[...])

    out_ref[0] = y.astype(out_ref.dtype)


# ---------------------- device / pipelining capabilities --------------------

@lru_cache(maxsize=None)
def _vmem_capacity_bytes():
    """Physical VMEM capacity (per core), with a conservative v7x fallback."""
    try:
        info = pltpu.get_tpu_info()
        cap = getattr(info, "vmem_capacity_bytes", None)
        if cap:
            return int(cap)
    except Exception:
        pass
    return 64 * 1024 * 1024  # v7x worst case


@lru_cache(maxsize=None)
def _weight_pipeline_mode():
    """Return pl.Buffered(1) if this Pallas supports single-buffered operands.

    Grid-invariant weights don't need double buffering; at production BERT
    sizes this halves their VMEM footprint (critical on v7x's 64 MiB). Probed
    once on a tiny kernel; falls back cleanly if unsupported.
    """
    if not hasattr(pl, "Buffered"):
        return None

    def _probe(x_ref, o_ref):
        o_ref[...] = x_ref[...] + 1.0

    try:
        spec = pl.BlockSpec((8, 128), lambda i: (0, 0),
                            pipeline_mode=pl.Buffered(1))
        out = pl.pallas_call(
            _probe,
            out_shape=jax.ShapeDtypeStruct((8, 128), jnp.float32),
            grid=(1,),
            in_specs=[spec],
            out_specs=pl.BlockSpec((8, 128), lambda i: (0, 0)),
        )(jnp.zeros((8, 128), jnp.float32))
        jax.block_until_ready(out)
        return pl.Buffered(1)
    except Exception:
        return None


def cast_matmul_weights(params, dtype):
    """MXU-dtype path: cast only the big matmul weights; keep biases / LN in f32."""
    out = dict(params)
    for k in ("wqkv", "wo", "wi", "wo2"):
        out[k] = params[k].astype(dtype)
    return out


# ------------------------------ layer wrapper ------------------------------

def hyperbert_graph_layer(x, mask, params, num_heads, mxu_dtype=jnp.bfloat16):
    B, S, H = x.shape
    I = params["wi"].shape[1]
    assert H % num_heads == 0
    head_dim = H // num_heads
    kernel = partial(bert_layer_kernel, num_heads, head_dim)

    # bf16 MXU inputs by default (f32 accumulation inside the kernel).
    params = cast_matmul_weights(params, mxu_dtype)

    pipeline_mode = _weight_pipeline_mode()
    weight_buffers = 1 if pipeline_mode is not None else 2

    def wspec(shape):
        n = len(shape)
        idx = lambda b, _n=n: (0,) * _n      # grid-invariant (replicated) block
        if pipeline_mode is not None:
            return pl.BlockSpec(shape, idx, pipeline_mode=pipeline_mode)
        return pl.BlockSpec(shape, idx)

    weights = (params["wqkv"], params["bqkv"], params["wo"], params["bo"],
               params["g1"], params["b1"], params["wi"], params["bi"],
               params["wo2"], params["bo2"], params["g2"], params["b2"])

    # Generation-aware VMEM budget: weights (single/double buffered) +
    # f32 activation temporaries, with 2x slack, capped at ~85% of physical
    # VMEM (leaves Mosaic internal-scratch headroom on v7x's 64 MiB, while
    # allowing >64 MiB on v5e/v6e's 128 MiB).
    cap = _vmem_capacity_bytes()
    w_bytes = sum(int(w.size) * w.dtype.itemsize for w in weights)
    act_bytes = 4 * S * (10 * H + I + (num_heads + 2) * S)
    need = 2 * (weight_buffers * w_bytes + act_bytes)
    vmem_limit = int(min(max(need, 32 * 1024 * 1024), int(0.85 * cap)))

    if pipeline_mode is None:
        # Without single-buffered weights, the fallback double-buffers them;
        # refuse configs that cannot fit this device's VMEM (v7x: 64 MiB).
        assert 2 * w_bytes + act_bytes < int(0.7 * cap), (
            "weights too large for the double-buffered fallback on this TPU; "
            "pl.Buffered(1) support (or sharding the FFN weights) is required")

    in_specs = [
        pl.BlockSpec((1, S, H), lambda b: (b, 0, 0)),   # hidden_states
        pl.BlockSpec((1, 1, S), lambda b: (b, 0, 0)),   # additive attention mask
    ] + [wspec(w.shape) for w in weights]

    return pl.pallas_call(
        kernel,
        out_shape=jax.ShapeDtypeStruct((B, S, H), x.dtype),
        grid=(B,),
        in_specs=in_specs,
        out_specs=pl.BlockSpec((1, S, H), lambda b: (b, 0, 0)),
        compiler_params=pltpu.CompilerParams(
            dimension_semantics=("parallel",),        # batch items independent
            vmem_limit_bytes=vmem_limit),
    )(x, mask, *weights)


def hyperbert_graph_encoder(x, mask, layer_params, num_heads,
                            mxu_dtype=jnp.bfloat16):
    """Forward of HyperBertGraphEncoder (return_dict semantics:
    last_hidden_state, graph_hidden_states), graph_batch=None."""
    B, _, H = x.shape
    # graph_batch is None -> graph_hidden_states is zeros((B, 1, H)); adding it
    # to each layer output is a no-op (matches the reference code exactly).
    graph_hidden_states = jnp.zeros((B, 1, H), x.dtype)
    # TODO(synk): stream all layers inside one pallas_call (layer grid axis +
    # stacked weights) so next-layer weight DMA overlaps current-layer compute.
    for p in layer_params:
        x = hyperbert_graph_layer(x, mask, p, num_heads, mxu_dtype=mxu_dtype)
    return x, graph_hidden_states


# --------------------------- pure-JAX reference ----------------------------

def _reference_layer(x, mask, p, num_heads):
    B, S, H = x.shape
    hd = H // num_heads
    qkv = x @ p["wqkv"] + p["bqkv"][0]
    q, k, v = qkv[..., :H], qkv[..., H:2 * H], qkv[..., 2 * H:]

    def split(t):
        return t.reshape(B, S, num_heads, hd).transpose(0, 2, 1, 3)

    q, k, v = split(q), split(k), split(v)
    s = jnp.einsum("bhqd,bhkd->bhqk", q, k) / math.sqrt(hd)
    s = s + mask[:, None, :, :]
    pr = jax.nn.softmax(s, axis=-1)
    ctx = jnp.einsum("bhqk,bhkd->bhqd", pr, v).transpose(0, 2, 1, 3).reshape(B, S, H)
    attn = ctx @ p["wo"] + p["bo"][0]

    def ln(t, g, b):
        mu = jnp.mean(t, -1, keepdims=True)
        var = jnp.mean((t - mu) ** 2, -1, keepdims=True)
        return (t - mu) * jax.lax.rsqrt(var + LN_EPS) * g + b

    attn = ln(attn + x, p["g1"][0], p["b1"][0])
    inter = _gelu_exact(attn @ p["wi"] + p["bi"][0])
    out = inter @ p["wo2"] + p["bo2"][0]
    return ln(out + attn, p["g2"][0], p["b2"][0])


def _reference_encoder(x, mask, layer_params, num_heads):
    for p in layer_params:
        x = _reference_layer(x, mask, p, num_heads)
    return x


# --------------------------------- params ----------------------------------

def init_layer_params(key, H, I):
    ks = jax.random.split(key, 12)

    def w(k, fi, fo):
        return jax.random.normal(k, (fi, fo), jnp.float32) * 0.02

    def b(k, fo):
        return jax.random.normal(k, (1, fo), jnp.float32) * 0.02

    return dict(
        wqkv=w(ks[0], H, 3 * H), bqkv=b(ks[1], 3 * H),      # fused Q/K/V
        wo=w(ks[2], H, H), bo=b(ks[3], H),                  # attention output
        g1=1.0 + 0.1 * jax.random.normal(ks[4], (1, H), jnp.float32),
        b1=0.1 * jax.random.normal(ks[5], (1, H), jnp.float32),
        wi=w(ks[6], H, I), bi=b(ks[7], I),                  # intermediate
        wo2=w(ks[8], I, H), bo2=b(ks[9], H),                # FFN output
        g2=1.0 + 0.1 * jax.random.normal(ks[10], (1, H), jnp.float32),
        b2=0.1 * jax.random.normal(ks[11], (1, H), jnp.float32),
    )


# ----------------------------------- main -----------------------------------

if __name__ == "__main__":
    # Small but (8,128)-tiling-aligned config: num_hidden_layers=2, hidden=256,
    # num_attention_heads=2 (head_dim=128), intermediate=512, batch=2, seq=128.
    B, S, H, NH, I, L = 2, 128, 256, 2, 512, 2

    key = jax.random.PRNGKey(0)
    k_x, *k_layers = jax.random.split(key, 1 + L)

    hidden_states = jax.random.normal(k_x, (B, S, H), jnp.float32)
    # extended additive attention mask (B, 1, S); mask out the tail of batch 1
    attention_mask = jnp.zeros((B, 1, S), jnp.float32)
    attention_mask = attention_mask.at[1, 0, S - 16:].set(-10000.0)

    layer_params = [init_layer_params(k, H, I) for k in k_layers]

    ref = _reference_encoder(hidden_states, attention_mask, layer_params, NH)

    # Default (bf16 MXU inputs, f32 accumulation + f32 softmax/LayerNorm stats).
    last_hidden, graph_hidden = hyperbert_graph_encoder(
        hidden_states, attention_mask, layer_params, NH)
    jax.block_until_ready(last_hidden)
    jax.block_until_ready(graph_hidden)
    assert last_hidden.shape == (B, S, H)
    assert graph_hidden.shape == (B, 1, H)
    assert jnp.allclose(last_hidden, ref, atol=1.5e-1, rtol=1.5e-1), \
        "bf16-MXU mismatch vs reference"

    # f32-MXU path (matches the torch module's dtype semantics more closely).
    last_f32, _ = hyperbert_graph_encoder(
        hidden_states, attention_mask, layer_params, NH, mxu_dtype=jnp.float32)
    jax.block_until_ready(last_f32)
    # Tolerance accounts for the EUP approximate-reciprocal softmax normalization.
    assert jnp.allclose(last_f32, ref, atol=1e-2, rtol=1e-2), \
        "f32 mismatch vs reference"

    print("KERNEL_OK")
</pallas_src>

<mosaic_0001>
module attributes {stable_mosaic.version = 11 : i64} {
  func.func @_probe(%arg0: i32, %arg1: memref<8x128xf32, #tpu.memory_space<vmem>>, %arg2: memref<8x128xf32, #tpu.memory_space<vmem>>) attributes {dimension_semantics = [#tpu.dimension_semantics<arbitrary>], iteration_bounds = array<i64: 1>, scalar_prefetch = 0 : i64, scratch_operands = 0 : i64, tpu.core_type = #tpu.core_type<tc>, window_params = [{pipeline_mode = #tpu.pipeline_mode<synchronous>, transform_indices = @transform_0, window_bounds = array<i64: 8, 128>}, {pipeline_mode = #tpu.pipeline_mode<synchronous>, transform_indices = @transform_1, window_bounds = array<i64: 8, 128>}]} {
    %c0 = arith.constant 0 : index
    %c0_0 = arith.constant 0 : index
    %0 = vector.load %arg1[%c0, %c0_0] : memref<8x128xf32, #tpu.memory_space<vmem>>, vector<8x128xf32>
    %cst = arith.constant 1.000000e+00 : f32
    %1 = vector.broadcast %cst : f32 to vector<8x128xf32>
    %2 = arith.addf %0, %1 : vector<8x128xf32>
    %c0_1 = arith.constant 0 : index
    %c0_2 = arith.constant 0 : index
    %3 = vector.load %arg2[%c0_1, %c0_2] : memref<8x128xf32, #tpu.memory_space<vmem>>, vector<8x128xf32>
    tpu.vector_store %arg2[%c0_1, %c0_2], %2 {strides = array<i32>} : memref<8x128xf32, #tpu.memory_space<vmem>>, vector<8x128xf32>,
    return
  }
  func.func @transform_0(%arg0: i32) -> (i32, i32) {
    %c0_i32 = arith.constant 0 : i32
    %c0_i32_0 = arith.constant 0 : i32
    %c0_i32_1 = arith.constant 0 : i32
    return %c0_i32, %c0_i32_0 : i32, i32
  }
  func.func @transform_1(%arg0: i32) -> (i32, i32) {
    %c0_i32 = arith.constant 0 : i32
    %c0_i32_0 = arith.constant 0 : i32
    %c0_i32_1 = arith.constant 0 : i32
    return %c0_i32, %c0_i32_0 : i32, i32
  }
}

module attributes {stable_mosaic.version = 11 : i64} {
  func.func @bert_layer_kernel(%arg0: i32, %arg1: memref<1x128x256xf32, #tpu.memory_space<vmem>>, %arg2: memref<1x1x128xf32, #tpu.memory_space<vmem>>, %arg3: memref<256x768xbf16, #tpu.memory_space<vmem>>, %arg4: memref<1x768xf32, #tpu.memory_space<vmem>>, %arg5: memref<256x256xbf16, #tpu.memory_space<vmem>>, %arg6: memref<1x256xf32, #tpu.memory_space<vmem>>, %arg7: memref<1x256xf32, #tpu.memory_space<vmem>>, %arg8: memref<1x256xf32, #tpu.memory_space<vmem>>, %arg9: memref<256x512xbf16, #tpu.memory_space<vmem>>, %arg10: memref<1x512xf32, #tpu.memory_space<vmem>>, %arg11: memref<512x256xbf16, #tpu.memory_space<vmem>>, %arg12: memref<1x256xf32, #tpu.memory_space<vmem>>, %arg13: memref<1x256xf32, #tpu.memory_space<vmem>>, %arg14: memref<1x256xf32, #tpu.memory_space<vmem>>, %arg15: memref<1x128x256xf32, #tpu.memory_space<vmem>>) attributes {dimension_semantics = [#tpu.dimension_semantics<parallel>], iteration_bounds = array<i64: 2>, scalar_prefetch = 0 : i64, scratch_operands = 0 : i64, tpu.core_type = #tpu.core_type<tc>, window_params = [{transform_indices = @transform_0, window_bounds = array<i64: 1, 128, 256>}, {transform_indices = @transform_1, window_bounds = array<i64: 1, 1, 128>}, {pipeline_mode = #tpu.pipeline_mode<synchronous>, transform_indices = @transform_2, window_bounds = array<i64: 256, 768>}, {pipeline_mode = #tpu.pipeline_mode<synchronous>, transform_indices = @transform_3, window_bounds = array<i64: 1, 768>}, {pipeline_mode = #tpu.pipeline_mode<synchronous>, transform_indices = @transform_4, window_bounds = array<i64: 256, 256>}, {pipeline_mode = #tpu.pipeline_mode<synchronous>, transform_indices = @transform_5, window_bounds = array<i64: 1, 256>}, {pipeline_mode = #tpu.pipeline_mode<synchronous>, transform_indices = @transform_6, window_bounds = array<i64: 1, 256>}, {pipeline_mode = #tpu.pipeline_mode<synchronous>, transform_indices = @transform_7, window_bounds = array<i64: 1, 256>}, {pipeline_mode = #tpu.pipeline_mode<synchronous>, transform_indices = @transform_8, window_bounds = array<i64: 256, 512>}, {pipeline_mode = #tpu.pipeline_mode<synchronous>, transform_indices = @transform_9, window_bounds = array<i64: 1, 512>}, {pipeline_mode = #tpu.pipeline_mode<synchronous>, transform_indices = @transform_10, window_bounds = array<i64: 512, 256>}, {pipeline_mode = #tpu.pipeline_mode<synchronous>, transform_indices = @transform_11, window_bounds = array<i64: 1, 256>}, {pipeline_mode = #tpu.pipeline_mode<synchronous>, transform_indices = @transform_12, window_bounds = array<i64: 1, 256>}, {pipeline_mode = #tpu.pipeline_mode<synchronous>, transform_indices = @transform_13, window_bounds = array<i64: 1, 256>}, {transform_indices = @transform_14, window_bounds = array<i64: 1, 128, 256>}]} {
    %c0 = arith.constant 0 : index
    %c0_0 = arith.constant 0 : index
    %c0_1 = arith.constant 0 : index
    %0 = vector.load %arg1[%c0, %c0_0, %c0_1] : memref<1x128x256xf32, #tpu.memory_space<vmem>>, vector<1x128x256xf32>
    %1 = vector.shape_cast %0 : vector<1x128x256xf32> to vector<128x256xf32>
    %c0_2 = arith.constant 0 : index
    %c0_3 = arith.constant 0 : index
    %2 = vector.load %arg3[%c0_2, %c0_3] : memref<256x768xbf16, #tpu.memory_space<vmem>>, vector<256x768xbf16>
    %3 = arith.truncf %1 : vector<128x256xf32> to vector<128x256xbf16>
    %cst = arith.constant dense<0.000000e+00> : vector<128x768xf32>
    %4 = tpu.matmul %3, %2, %cst {dimension_numbers = #tpu.dot_dimension_numbers<[1], [0], [0], [1], [0, 0, 1, 1], [], []>} : vector<128x256xbf16>, vector<256x768xbf16>, vector<128x768xf32> -> vector<128x768xf32>
    %c0_4 = arith.constant 0 : index
    %c0_5 = arith.constant 0 : index
    %5 = vector.load %arg4[%c0_4, %c0_5] : memref<1x768xf32, #tpu.memory_space<vmem>>, vector<1x768xf32>
    %6 = vector.broadcast %5 : vector<1x768xf32> to vector<128x768xf32>
    %7 = arith.addf %4, %6 : vector<128x768xf32>
    %c0_6 = arith.constant 0 : index
    %c0_7 = arith.constant 0 : index
    %c0_8 = arith.constant 0 : index
    %8 = vector.load %arg2[%c0_6, %c0_7, %c0_8] : memref<1x1x128xf32, #tpu.memory_space<vmem>>, vector<1x1x128xf32>
    %9 = vector.shape_cast %8 : vector<1x1x128xf32> to vector<1x128xf32>
    %10 = vector.shape_cast %9 : vector<1x128xf32> to vector<1x128xf32>
    %11 = vector.broadcast %10 : vector<1x128xf32> to vector<128x128xf32>
    %12 = vector.extract_strided_slice %7 {offsets = [0, 0], sizes = [128, 128], strides = [1, 1]} : vector<128x768xf32> to vector<128x128xf32>
    %13 = vector.extract_strided_slice %7 {offsets = [0, 256], sizes = [128, 128], strides = [1, 1]} : vector<128x768xf32> to vector<128x128xf32>
    %14 = vector.extract_strided_slice %7 {offsets = [0, 512], sizes = [128, 128], strides = [1, 1]} : vector<128x768xf32> to vector<128x128xf32>
    %15 = arith.truncf %12 : vector<128x128xf32> to vector<128x128xbf16>
    %16 = arith.truncf %13 : vector<128x128xf32> to vector<128x128xbf16>
    %cst_9 = arith.constant dense<0.000000e+00> : vector<128x128xf32>
    %17 = tpu.matmul %15, %16, %cst_9 {dimension_numbers = #tpu.dot_dimension_numbers<[1], [1], [0], [0], [0, 0, 1, 0], [], []>} : vector<128x128xbf16>, vector<128x128xbf16>, vector<128x128xf32> -> vector<128x128xf32>
    %cst_10 = arith.constant 0.0883883461 : f32
    %18 = vector.broadcast %cst_10 : f32 to vector<128x128xf32>
    %19 = arith.mulf %17, %18 : vector<128x128xf32>
    %20 = arith.addf %19, %11 : vector<128x128xf32>
    %cst_11 = arith.constant dense<0xFF800000> : vector<128xf32>
    %21 = vector.multi_reduction <maximumf>, %20, %cst_11 [1] : vector<128x128xf32> to vector<128xf32>
    %22 = vector.shape_cast %21 : vector<128xf32> to vector<128x1xf32>
    %23 = vector.broadcast %22 : vector<128x1xf32> to vector<128x128xf32>
    %24 = arith.subf %20, %23 : vector<128x128xf32>
    %25 = math.exp %24 : vector<128x128xf32>
    %cst_12 = arith.constant dense<0.000000e+00> : vector<128xf32>
    %26 = vector.multi_reduction <add>, %25, %cst_12 [1] : vector<128x128xf32> to vector<128xf32>
    %27 = vector.shape_cast %26 : vector<128xf32> to vector<128x1xf32>
    %28 = tpu.reciprocal %27 {approx = true} : vector<128x1xf32> -> vector<128x1xf32>
    %29 = vector.broadcast %28 : vector<128x1xf32> to vector<128x128xf32>
    %30 = arith.mulf %25, %29 : vector<128x128xf32>
    %31 = arith.truncf %30 : vector<128x128xf32> to vector<128x128xbf16>
    %32 = arith.truncf %14 : vector<128x128xf32> to vector<128x128xbf16>
    %cst_13 = arith.constant dense<0.000000e+00> : vector<128x128xf32>
    %33 = tpu.matmul %31, %32, %cst_13 {dimension_numbers = #tpu.dot_dimension_numbers<[1], [0], [0], [1], [0, 0, 1, 1], [], []>} : vector<128x128xbf16>, vector<128x128xbf16>, vector<128x128xf32> -> vector<128x128xf32>
    %34 = vector.extract_strided_slice %7 {offsets = [0, 128], sizes = [128, 128], strides = [1, 1]} : vector<128x768xf32> to vector<128x128xf32>
    %35 = vector.extract_strided_slice %7 {offsets = [0, 384], sizes = [128, 128], strides = [1, 1]} : vector<128x768xf32> to vector<128x128xf32>
    %36 = vector.extract_strided_slice %7 {offsets = [0, 640], sizes = [128, 128], strides = [1, 1]} : vector<128x768xf32> to vector<128x128xf32>
    %37 = arith.truncf %34 : vector<128x128xf32> to vector<128x128xbf16>
    %38 = arith.truncf %35 : vector<128x128xf32> to vector<128x128xbf16>
    %cst_14 = arith.constant dense<0.000000e+00> : vector<128x128xf32>
    %39 = tpu.matmul %37, %38, %cst_14 {dimension_numbers = #tpu.dot_dimension_numbers<[1], [1], [0], [0], [0, 0, 1, 0], [], []>} : vector<128x128xbf16>, vector<128x128xbf16>, vector<128x128xf32> -> vector<128x128xf32>
    %cst_15 = arith.constant 0.0883883461 : f32
    %40 = vector.broadcast %cst_15 : f32 to vector<128x128xf32>
    %41 = arith.mulf %39, %40 : vector<128x128xf32>
    %42 = arith.addf %41, %11 : vector<128x128xf32>
    %cst_16 = arith.constant dense<0xFF800000> : vector<128xf32>
    %43 = vector.multi_reduction <maximumf>, %42, %cst_16 [1] : vector<128x128xf32> to vector<128xf32>
    %44 = vector.shape_cast %43 : vector<128xf32> to vector<128x1xf32>
    %45 = vector.broadcast %44 : vector<128x1xf32> to vector<128x128xf32>
    %46 = arith.subf %42, %45 : vector<128x128xf32>
    %47 = math.exp %46 : vector<128x128xf32>
    %cst_17 = arith.constant dense<0.000000e+00> : vector<128xf32>
    %48 = vector.multi_reduction <add>, %47, %cst_17 [1] : vector<128x128xf32> to vector<128xf32>
    %49 = vector.shape_cast %48 : vector<128xf32> to vector<128x1xf32>
    %50 = tpu.reciprocal %49 {approx = true} : vector<128x1xf32> -> vector<128x1xf32>
    %51 = vector.broadcast %50 : vector<128x1xf32> to vector<128x128xf32>
    %52 = arith.mulf %47, %51 : vector<128x128xf32>
    %53 = arith.truncf %52 : vector<128x128xf32> to vector<128x128xbf16>
    %54 = arith.truncf %36 : vector<128x128xf32> to vector<128x128xbf16>
    %cst_18 = arith.constant dense<0.000000e+00> : vector<128x128xf32>
    %55 = tpu.matmul %53, %54, %cst_18 {dimension_numbers = #tpu.dot_dimension_numbers<[1], [0], [0], [1], [0, 0, 1, 1], [], []>} : vector<128x128xbf16>, vector<128x128xbf16>, vector<128x128xf32> -> vector<128x128xf32>
    %56 = tpu.concatenate %33, %55 in 1 : vector<128x128xf32>, vector<128x128xf32> -> vector<128x256xf32>
    %c0_19 = arith.constant 0 : index
    %c0_20 = arith.constant 0 : index
    %57 = vector.load %arg5[%c0_19, %c0_20] : memref<256x256xbf16, #tpu.memory_space<vmem>>, vector<256x256xbf16>
    %58 = arith.truncf %56 : vector<128x256xf32> to vector<128x256xbf16>
    %cst_21 = arith.constant dense<0.000000e+00> : vector<128x256xf32>
    %59 = tpu.matmul %58, %57, %cst_21 {dimension_numbers = #tpu.dot_dimension_numbers<[1], [0], [0], [1], [0, 0, 1, 1], [], []>} : vector<128x256xbf16>, vector<256x256xbf16>, vector<128x256xf32> -> vector<128x256xf32>
    %c0_22 = arith.constant 0 : index
    %c0_23 = arith.constant 0 : index
    %60 = vector.load %arg6[%c0_22, %c0_23] : memref<1x256xf32, #tpu.memory_space<vmem>>, vector<1x256xf32>
    %61 = vector.broadcast %60 : vector<1x256xf32> to vector<128x256xf32>
    %62 = arith.addf %59, %61 : vector<128x256xf32>
    %63 = arith.addf %62, %1 : vector<128x256xf32>
    %c0_24 = arith.constant 0 : index
    %c0_25 = arith.constant 0 : index
    %64 = vector.load %arg7[%c0_24, %c0_25] : memref<1x256xf32, #tpu.memory_space<vmem>>, vector<1x256xf32>
    %c0_26 = arith.constant 0 : index
    %c0_27 = arith.constant 0 : index
    %65 = vector.load %arg8[%c0_26, %c0_27] : memref<1x256xf32, #tpu.memory_space<vmem>>, vector<1x256xf32>
    %cst_28 = arith.constant dense<0.000000e+00> : vector<128xf32>
    %66 = vector.multi_reduction <add>, %63, %cst_28 [1] : vector<128x256xf32> to vector<128xf32>
    %67 = vector.shape_cast %66 : vector<128xf32> to vector<128x1xf32>
    %cst_29 = arith.constant 2.560000e+02 : f32
    %68 = vector.broadcast %cst_29 : f32 to vector<128x1xf32>
    %69 = arith.divf %67, %68 : vector<128x1xf32>
    %70 = vector.broadcast %69 : vector<128x1xf32> to vector<128x256xf32>
    %71 = arith.subf %63, %70 : vector<128x256xf32>
    %72 = arith.mulf %71, %71 : vector<128x256xf32>
    %cst_30 = arith.constant dense<0.000000e+00> : vector<128xf32>
    %73 = vector.multi_reduction <add>, %72, %cst_30 [1] : vector<128x256xf32> to vector<128xf32>
    %74 = vector.shape_cast %73 : vector<128xf32> to vector<128x1xf32>
    %cst_31 = arith.constant 2.560000e+02 : f32
    %75 = vector.broadcast %cst_31 : f32 to vector<128x1xf32>
    %76 = arith.divf %74, %75 : vector<128x1xf32>
    %77 = vector.broadcast %69 : vector<128x1xf32> to vector<128x256xf32>
    %78 = arith.subf %63, %77 : vector<128x256xf32>
    %cst_32 = arith.constant 9.99999996E-13 : f32
    %79 = vector.broadcast %cst_32 : f32 to vector<128x1xf32>
    %80 = arith.addf %76, %79 : vector<128x1xf32>
    %81 = math.rsqrt %80 : vector<128x1xf32>
    %82 = vector.broadcast %81 : vector<128x1xf32> to vector<128x256xf32>
    %83 = arith.mulf %78, %82 : vector<128x256xf32>
    %84 = vector.broadcast %64 : vector<1x256xf32> to vector<128x256xf32>
    %85 = arith.mulf %83, %84 : vector<128x256xf32>
    %86 = vector.broadcast %65 : vector<1x256xf32> to vector<128x256xf32>
    %87 = arith.addf %85, %86 : vector<128x256xf32>
    %c0_33 = arith.constant 0 : index
    %c0_34 = arith.constant 0 : index
    %88 = vector.load %arg9[%c0_33, %c0_34] : memref<256x512xbf16, #tpu.memory_space<vmem>>, vector<256x512xbf16>
    %89 = arith.truncf %87 : vector<128x256xf32> to vector<128x256xbf16>
    %cst_35 = arith.constant dense<0.000000e+00> : vector<128x512xf32>
    %90 = tpu.matmul %89, %88, %cst_35 {dimension_numbers = #tpu.dot_dimension_numbers<[1], [0], [0], [1], [0, 0, 1, 1], [], []>} : vector<128x256xbf16>, vector<256x512xbf16>, vector<128x512xf32> -> vector<128x512xf32>
    %c0_36 = arith.constant 0 : index
    %c0_37 = arith.constant 0 : index
    %91 = vector.load %arg10[%c0_36, %c0_37] : memref<1x512xf32, #tpu.memory_space<vmem>>, vector<1x512xf32>
    %92 = vector.broadcast %91 : vector<1x512xf32> to vector<128x512xf32>
    %93 = arith.addf %90, %92 : vector<128x512xf32>
    %cst_38 = arith.constant 5.000000e-01 : f32
    %94 = vector.broadcast %cst_38 : f32 to vector<128x512xf32>
    %95 = arith.mulf %94, %93 : vector<128x512xf32>
    %cst_39 = arith.constant 0.707106769 : f32
    %96 = vector.broadcast %cst_39 : f32 to vector<128x512xf32>
    %97 = arith.mulf %93, %96 : vector<128x512xf32>
    %98 = math.erf %97 : vector<128x512xf32>
    %cst_40 = arith.constant 1.000000e+00 : f32
    %99 = vector.broadcast %cst_40 : f32 to vector<128x512xf32>
    %100 = arith.addf %99, %98 : vector<128x512xf32>
    %101 = arith.mulf %95, %100 : vector<128x512xf32>
    %c0_41 = arith.constant 0 : index
    %c0_42 = arith.constant 0 : index
    %102 = vector.load %arg11[%c0_41, %c0_42] : memref<512x256xbf16, #tpu.memory_space<vmem>>, vector<512x256xbf16>
    %103 = arith.truncf %101 : vector<128x512xf32> to vector<128x512xbf16>
    %cst_43 = arith.constant dense<0.000000e+00> : vector<128x256xf32>
    %104 = tpu.matmul %103, %102, %cst_43 {dimension_numbers = #tpu.dot_dimension_numbers<[1], [0], [0], [1], [0, 0, 1, 1], [], []>} : vector<128x512xbf16>, vector<512x256xbf16>, vector<128x256xf32> -> vector<128x256xf32>
    %c0_44 = arith.constant 0 : index
    %c0_45 = arith.constant 0 : index
    %105 = vector.load %arg12[%c0_44, %c0_45] : memref<1x256xf32, #tpu.memory_space<vmem>>, vector<1x256xf32>
    %106 = vector.broadcast %105 : vector<1x256xf32> to vector<128x256xf32>
    %107 = arith.addf %104, %106 : vector<128x256xf32>
    %108 = arith.addf %107, %87 : vector<128x256xf32>
    %c0_46 = arith.constant 0 : index
    %c0_47 = arith.constant 0 : index
    %109 = vector.load %arg13[%c0_46, %c0_47] : memref<1x256xf32, #tpu.memory_space<vmem>>, vector<1x256xf32>
    %c0_48 = arith.constant 0 : index
    %c0_49 = arith.constant 0 : index
    %110 = vector.load %arg14[%c0_48, %c0_49] : memref<1x256xf32, #tpu.memory_space<vmem>>, vector<1x256xf32>
    %cst_50 = arith.constant dense<0.000000e+00> : vector<128xf32>
    %111 = vector.multi_reduction <add>, %108, %cst_50 [1] : vector<128x256xf32> to vector<128xf32>
    %112 = vector.shape_cast %111 : vector<128xf32> to vector<128x1xf32>
    %cst_51 = arith.constant 2.560000e+02 : f32
    %113 = vector.broadcast %cst_51 : f32 to vector<128x1xf32>
    %114 = arith.divf %112, %113 : vector<128x1xf32>
    %115 = vector.broadcast %114 : vector<128x1xf32> to vector<128x256xf32>
    %116 = arith.subf %108, %115 : vector<128x256xf32>
    %117 = arith.mulf %116, %116 : vector<128x256xf32>
    %cst_52 = arith.constant dense<0.000000e+00> : vector<128xf32>
    %118 = vector.multi_reduction <add>, %117, %cst_52 [1] : vector<128x256xf32> to vector<128xf32>
    %119 = vector.shape_cast %118 : vector<128xf32> to vector<128x1xf32>
    %cst_53 = arith.constant 2.560000e+02 : f32
    %120 = vector.broadcast %cst_53 : f32 to vector<128x1xf32>
    %121 = arith.divf %119, %120 : vector<128x1xf32>
    %122 = vector.broadcast %114 : vector<128x1xf32> to vector<128x256xf32>
    %123 = arith.subf %108, %122 : vector<128x256xf32>
    %cst_54 = arith.constant 9.99999996E-13 : f32
    %124 = vector.broadcast %cst_54 : f32 to vector<128x1xf32>
    %125 = arith.addf %121, %124 : vector<128x1xf32>
    %126 = math.rsqrt %125 : vector<128x1xf32>
    %127 = vector.broadcast %126 : vector<128x1xf32> to vector<128x256xf32>
    %128 = arith.mulf %123, %127 : vector<128x256xf32>
    %129 = vector.broadcast %109 : vector<1x256xf32> to vector<128x256xf32>
    %130 = arith.mulf %128, %129 : vector<128x256xf32>
    %131 = vector.broadcast %110 : vector<1x256xf32> to vector<128x256xf32>
    %132 = arith.addf %130, %131 : vector<128x256xf32>
    %c0_55 = arith.constant 0 : index
    %c0_56 = arith.constant 0 : index
    %c0_57 = arith.constant 0 : index
    %133 = vector.load %arg15[%c0_55, %c0_56, %c0_57] : memref<1x128x256xf32, #tpu.memory_space<vmem>>, vector<1x128x256xf32>
    %134 = vector.shape_cast %133 : vector<1x128x256xf32> to vector<128x256xf32>
    %135 = vector.shape_cast %132 : vector<128x256xf32> to vector<1x128x256xf32>
    tpu.vector_store %arg15[%c0_55, %c0_56, %c0_57], %135 {strides = array<i32>} : memref<1x128x256xf32, #tpu.memory_space<vmem>>, vector<1x128x256xf32>,
    return
  }
  func.func @transform_0(%arg0: i32) -> (i32, i32, i32) {
    %c0_i32 = arith.constant 0 : i32
    %c0_i32_0 = arith.constant 0 : i32
    %c0_i32_1 = arith.constant 0 : i32
    return %arg0, %c0_i32, %c0_i32_0 : i32, i32, i32
  }
  func.func @transform_1(%arg0: i32) -> (i32, i32, i32) {
    %c0_i32 = arith.constant 0 : i32
    %c0_i32_0 = arith.constant 0 : i32
    %c0_i32_1 = arith.constant 0 : i32
    return %arg0, %c0_i32, %c0_i32_0 : i32, i32, i32
  }
  func.func @transform_2(%arg0: i32) -> (i32, i32) {
    %c0_i32 = arith.constant 0 : i32
    %c0_i32_0 = arith.constant 0 : i32
    %c0_i32_1 = arith.constant 0 : i32
    return %c0_i32, %c0_i32_0 : i32, i32
  }
  func.func @transform_3(%arg0: i32) -> (i32, i32) {
    %c0_i32 = arith.constant 0 : i32
    %c0_i32_0 = arith.constant 0 : i32
    %c0_i32_1 = arith.constant 0 : i32
    return %c0_i32, %c0_i32_0 : i32, i32
  }
  func.func @transform_4(%arg0: i32) -> (i32, i32) {
    %c0_i32 = arith.constant 0 : i32
    %c0_i32_0 = arith.constant 0 : i32
    %c0_i32_1 = arith.constant 0 : i32
    return %c0_i32, %c0_i32_0 : i32, i32
  }
  func.func @transform_5(%arg0: i32) -> (i32, i32) {
    %c0_i32 = arith.constant 0 : i32
    %c0_i32_0 = arith.constant 0 : i32
    %c0_i32_1 = arith.constant 0 : i32
    return %c0_i32, %c0_i32_0 : i32, i32
  }
  func.func @transform_6(%arg0: i32) -> (i32, i32) {
    %c0_i32 = arith.constant 0 : i32
    %c0_i32_0 = arith.constant 0 : i32
    %c0_i32_1 = arith.constant 0 : i32
    return %c0_i32, %c0_i32_0 : i32, i32
  }
  func.func @transform_7(%arg0: i32) -> (i32, i32) {
    %c0_i32 = arith.constant 0 : i32
    %c0_i32_0 = arith.constant 0 : i32
    %c0_i32_1 = arith.constant 0 : i32
    return %c0_i32, %c0_i32_0 : i32, i32
  }
  func.func @transform_8(%arg0: i32) -> (i32, i32) {
    %c0_i32 = arith.constant 0 : i32
    %c0_i32_0 = arith.constant 0 : i32
    %c0_i32_1 = arith.constant 0 : i32
    return %c0_i32, %c0_i32_0 : i32, i32
  }
  func.func @transform_9(%arg0: i32) -> (i32, i32) {
    %c0_i32 = arith.constant 0 : i32
    %c0_i32_0 = arith.constant 0 : i32
    %c0_i32_1 = arith.constant 0 : i32
    return %c0_i32, %c0_i32_0 : i32, i32
  }
  func.func @transform_10(%arg0: i32) -> (i32, i32) {
    %c0_i32 = arith.constant 0 : i32
    %c0_i32_0 = arith.constant 0 : i32
    %c0_i32_1 = arith.constant 0 : i32
    return %c0_i32, %c0_i32_0 : i32, i32
  }
  func.func @transform_11(%arg0: i32) -> (i32, i32) {
    %c0_i32 = arith.constant 0 : i32
    %c0_i32_0 = arith.constant 0 : i32
    %c0_i32_1 = arith.constant 0 : i32
    return %c0_i32, %c0_i32_0 : i32, i32
  }
  func.func @transform_12(%arg0: i32) -> (i32, i32) {
    %c0_i32 = arith.constant 0 : i32
    %c0_i32_0 = arith.constant 0 : i32
    %c0_i32_1 = arith.constant 0 : i32
    return %c0_i32, %c0_i32_0 : i32, i32
  }
  func.func @transform_13(%arg0: i32) -> (i32, i32) {
    %c0_i32 = arith.constant 0 : i32
    %c0_i32_0 = arith.constant 0 : i32
    %c0_i32_1 = arith.constant 0 : i32
    return %c0_i32, %c0_i32_0 : i32, i32
  }
  func.func @transform_14(%arg0: i32) -> (i32, i32, i32) {
    %c0_i32 = arith.constant 0 : i32
    %c0_i32_0 = arith.constant 0 : i32
    %c0_i32_1 = arith.constant 0 : i32
    return %arg0, %c0_i32, %c0_i32_0 : i32, i32, i32
  }
}

</mosaic_0001>

<bundles_post_ra>
// kernel: tpu_custom_call.1
= control target key start
LH: loop header
LB: loop body
LE: loop exit
PB: predicated region body
PF: predicated region fallthrough
CT: control target
= control target key end

     0   :  { %6 = vsyncpa [#allocation3], 0  ;;  %s125_s0 = inlined_call_operand.hbm [shape: f32[8,128], index: 0, kind: input, shape index: {}]   ;;  %s126_s1 = inlined_call_operand.hbm [shape: f32[8,128], index: 1, kind: output, shape index: {}]  }
   0x1   :  { %7 = vsyncpa [#allocation4], 0  ;;  %s89_s6 = smov [#allocation2]   ;;  %s41_s10 = scalar_lea.hbm %s125_s0, 128 }
   0x2   :  { %s14_s7 = sshll.u32 %s89_s6, 4  ;;  %p42_p0 = scmp.ne.s32.totalorder %s125_s0, %s41_s10  ;;  %s15_s7 = int_to_ptr.vmem [resolvable:$true] %s14_s7 }
   0x3   :  { %p45_p1 = scmp.lt.u32.totalorder %s41_s10, %s125_s0 }
   0x5   :  { %p47_p2 = pnand %p45_p1, %p42_p0 }
   0x7   :  { %50 = shalt.err (!%p47_p2)
}
   0x8   :  { %s51_s15 = scalar_lea.vmem %s15_s7, 128  ;;  %p56_p4 = scmp.lt.s32.totalorder %s15_s7, %s15_s7 }
   0x9   :  { %p52_p3 = scmp.ne.s32.totalorder %s15_s7, %s51_s15  ;;  %p57_p5 = scmp.lt.s32.totalorder %s51_s15, %s51_s15 }
   0xb   :  { %p58_p6 = por %p57_p5, %p56_p4 }
   0xd   :  { %p59_p7 = pnand %p58_p6, %p52_p3 }
   0xf   :  { %62 = shalt.err (!%p59_p7)
}
  0x10   :  { %17 = dma.hbm_to_vmem [thread:$0]  %s125_s0, 128, %s15_s7, [#allocation3]  }
  0x11   :  { %85 = dma.done.wait [#allocation3], 128  }
  0x12   :  { %86 = vsyncadd [#allocation3], 4294967168  ;;  %s90_s18 = smov [#allocation5]   ;;  %v21_v0 = vld [vmem:[#allocation2] sm:$0xff] }
  0x13   :  { %s30_s19 = sshll.u32 %s90_s18, 4  ;;  %v22_v1 = vadd.f32 1.0, %v21_v0  ;;  %s31_s19 = int_to_ptr.vmem [resolvable:$true] %s30_s19 }
  0x14   :  { %s63_s20 = scalar_lea.vmem %s31_s19, 128  ;;  %p68_p9 = scmp.lt.s32.totalorder %s31_s19, %s31_s19 }
  0x15   :  { %23 = vst [vmem:[#allocation5] sm:$0xff] %v22_v1  ;;  %p64_p8 = scmp.ne.s32.totalorder %s31_s19, %s63_s20  ;;  %p69_p10 = scmp.lt.s32.totalorder %s63_s20, %s63_s20 }
  0x17   :  { %p70_p11 = por %p69_p10, %p68_p9 }
  0x19   :  { %p71_p12 = pnand %p70_p11, %p64_p8 }
  0x1b   :  { %74 = shalt.err (!%p71_p12)
}
  0x1c   :  { %s75_s23 = scalar_lea.hbm %s126_s1, 128 }
  0x1d   :  { %p76_p13 = scmp.ne.s32.totalorder %s126_s1, %s75_s23  ;;  %p79_p0 = scmp.lt.u32.totalorder %s75_s23, %s126_s1 }
  0x1f   :  { %p81_p1 = pnand %p79_p0, %p76_p13 }
  0x21   :  { %84 = shalt.err (!%p81_p1)
}
  0x22   :  { %33 = dma.vmem_to_hbm [thread:$0]  %s31_s19, 128, %s126_s1, [#allocation4]  }
  0x23   :  { %87 = dma.done.wait [#allocation4], 128  }
  0x24   :  { %88 = vsyncadd [#allocation4], 4294967168 }
  0x25   :  { %37 = vsyncpa [#allocation3], 1 }
  0x26   :  { %38 = vsyncpa [#allocation4], 1 }

// kernel: tpu_custom_call.1
= control target key start
LH: loop header
LB: loop body
LE: loop exit
PB: predicated region body
PF: predicated region fallthrough
CT: control target
= control target key end

     0   :  { %s9485_s0 = inlined_call_operand.hbm [shape: f32[2,128,256], index: 0, kind: input, shape index: {}]   ;;  %s9486_s1 = inlined_call_operand.hbm [shape: f32[2,1,128], index: 1, kind: input, shape index: {}]   ;;  %s9487_s2 = inlined_call_operand.hbm [shape: bf16[256,768], index: 2, kind: input, shape index: {}]   ;;  %s9488_s3 = inlined_call_operand.vmem [shape: f32[1,768], index: 3, kind: input, shape index: {}]   ;;  %s9489_s4 = inlined_call_operand.hbm [shape: bf16[256,256], index: 4, kind: input, shape index: {}]   ;;  %s9490_s5 = inlined_call_operand.vmem [shape: f32[1,256], index: 5, kind: input, shape index: {}]   ;;  %s9491_s6 = inlined_call_operand.vmem [shape: f32[1,256], index: 6, kind: input, shape index: {}]   ;;  %s9492_s7 = inlined_call_operand.vmem [shape: f32[1,256], index: 7, kind: input, shape index: {}]   ;;  %s9493_s8 = inlined_call_operand.hbm [shape: bf16[256,512], index: 8, kind: input, shape index: {}]   ;;  %s9494_s9 = inlined_call_operand.vmem [shape: f32[1,512], index: 9, kind: input, shape index: {}]   ;;  %s9495_s10 = inlined_call_operand.hbm [shape: bf16[512,256], index: 10, kind: input, shape index: {}]   ;;  %s9496_s11 = inlined_call_operand.vmem [shape: f32[1,256], index: 11, kind: input, shape index: {}]   ;;  %s9497_s12 = inlined_call_operand.vmem [shape: f32[1,256], index: 12, kind: input, shape index: {}]   ;;  %s9498_s13 = inlined_call_operand.vmem [shape: f32[1,256], index: 13, kind: input, shape index: {}]   ;;  %s9499_s14 = inlined_call_operand.hbm [shape: f32[2,128,256], index: 14, kind: output, shape index: {}]  }
   0x1   :  { %9554 = sst [smem:[#allocation71_spill]] %s9485_s0 }
   0x2   :  { %9555 = sst [smem:[#allocation72_spill]] %s9487_s2 }
   0x3   :  { %9556 = sst [smem:[#allocation73_spill]] %s9489_s4 }
   0x4   :  { %9557 = sst [smem:[#allocation74_spill]] %s9493_s8 }
   0x5   :  { %9558 = sst [smem:[#allocation75_spill]] %s9494_s9 }
   0x6   :  { %9559 = sst [smem:[#allocation76_spill]] %s9496_s11 }
   0x7   :  { %9560 = sst [smem:[#allocation77_spill]] %s9497_s12 }
   0x8   :  { %9561 = sst [smem:[#allocation78_spill]] %s9498_s13 }
   0x9   :  { %9562 = sst [smem:[#allocation79_spill]] %s9499_s14 }
   0xa   :  { %19 = vsyncpa [#allocation3], 0 }
   0xb   :  { %21 = vsyncpa [#allocation3 + $0x1], 0 }
   0xc   :  { %22 = vsyncpa [#allocation6], 0 }
   0xd   :  { %24 = vsyncpa [#allocation6 + $0x1], 0 }
   0xe   :  { %25 = vsyncpa [#allocation9], 0 }
   0xf   :  { %26 = vsyncpa [#allocation12], 0 }
  0x10   :  { %27 = vsyncpa [#allocation4], 0 }
  0x11   :  { %29 = vsyncpa [#allocation4 + $0x1], 0  ;;  %s6990_s29 = smov 0   ;;  %s6992_s30 = smov 0  }
  0x12   :  { %s6994_s15 = smov 0   ;;  %s6996_s16 = smov 0  }
  0x13 LB: > { %9563 = sst [smem:[#allocation20_spill]] %s6886_s29  ;;  %s7011_s17 = sadd.s32 4294967295, %s6898_s16   ;;  %s6898_s16 = sphi %s6996_s16, %s9703_s16   ;;  %s6894_s15 = sphi %s6994_s15, %s9702_s15   ;;  %s6890_s30 = sphi %s6992_s30, %s9701_s30   ;;  %s6886_s29 = sphi %s6990_s29, %s9700_s29  }
  0x14   : > { %s5270_s18 = sadd.s32 4294967294, %s6898_s16   ;;  %p55_p0 = scmp.ne.s32.totalorder %s6890_s30, %s6886_s29 }
  0x15   : > { %p9503_p1 = scmp.eq.s32.totalorder %s7011_s17, 0  ;;  %p363_p3 = scmp.eq.s32.totalorder %s5270_s18, 1 }
  0x16   : > { %p5271_p5 = scmp.ge.s32.totalorder %s6898_s16, 1  ;;  %p370_p7 = scmp.lt.s32.totalorder %s6898_s16, 3 }
  0x17   : > { %p7020_p4 = por %p9503_p1, %p55_p0  ;;  %p7025_p6 = por %p363_p3, %p55_p0 }
  0x18   : > { %p7030_p8 = pnand %p5271_p5, %p370_p7  ;;  %s6900_s22 = smov [#allocation7]  }
  0x19   : > { %s9564_s19 = scalar_select %p7020_p4, 1, 0 }
  0x1a   : > { %s9565_s20 = scalar_select %p7025_p6, 1, 0 }
  0x1b   : > { %s9567_s21 = scalar_select %p7030_p8, 1, 0 }
  0x1c   : > { %9566 = sst [smem:[#allocation21_spill]] %s9565_s20  ;;  %s382_s23 = sshll.u32 %s6900_s22, 4  ;;  %s7034_s23 = int_to_ptr.vmem [resolvable:$true] %s382_s23 }
  0x1d   : > { %p5830_p9 = pneg %p7030_p8  ;;  %s6901_s25 = smov [#allocation8]  }
  0x1e   : > { %s398_s26 = sshll.u32 %s6901_s25, 4  ;;  %s9569_s2 = sld [smem:[#allocation72_spill]]  ;;  %s7045_s26 = int_to_ptr.vmem [resolvable:$true] %s398_s26 }
  0x1f   : > { %p7041_p11 = pnand %p5830_p9, %p9503_p1 }
  0x21   : > { %p7055_p13 = pneg %p7041_p11 }
  0x24   : > { %s6644_s18 = scalar_lea.hbm %s9569_s2, 12288 }
  0x25   : > { %p6645_p12 = scmp.ne.s32.totalorder %s9569_s2, %s6644_s18  ;;  %p6651_p5 = scmp.lt.u32.totalorder %s6644_s18, %s9569_s2 }
  0x27   : > { %p6647_p0 = pnand %p7055_p13, %p6645_p12 }
  0x29   : > { %p6648_p3 = pneg %p6647_p0 }
  0x2b   : > { %p6653_p7 = pnand %p6651_p5, %p6648_p3 }
  0x2d   : > { %6656 = shalt.err (!%p6653_p7)
}
  0x2e   : > { %s6657_s20 = scalar_lea.vmem %s7034_s23, 12288  ;;  %p6665_p2 = scmp.lt.s32.totalorder %s7034_s23, %s7034_s23 }
  0x2f   : > { %p6658_p9 = scmp.ne.s32.totalorder %s7034_s23, %s6657_s20  ;;  %p6666_p6 = scmp.lt.s32.totalorder %s6657_s20, %s6657_s20 }
  0x31   : > { %p6660_p10 = pnand %p6658_p9, %p7055_p13  ;;  %p6667_p12 = por %p6666_p6, %p6665_p2 }
  0x33   : > { %p6661_p1 = pneg %p6660_p10 }
  0x35   : > { %p6668_p0 = pnand %p6667_p12, %p6661_p1 }
  0x37   : > { %6671 = shalt.err (!%p6668_p0)
}
  0x38   : > { %s6902_s27 = smov 384   ;;  %s6903_s14 = smov 24  }
  0x39   : > { %5833 = dma.hbm_to_vmem [thread:$0]  (!%p7041_p11), %s9569_s2, 12288, %s7034_s23, [#allocation6], %s6902_s27, %s6902_s27, %s6903_s14  }
  0x3a   : > { %s9571_s4 = sld [smem:[#allocation73_spill]] }
  0x40   : > { %s6672_s13 = scalar_lea.hbm %s9571_s4, 4096 }
  0x41   : > { %p6673_p2 = scmp.ne.s32.totalorder %s9571_s4, %s6672_s13  ;;  %p6679_p10 = scmp.lt.u32.totalorder %s6672_s13, %s9571_s4 }
  0x43   : > { %p6675_p1 = pnand %p6673_p2, %p7055_p13 }
  0x45   : > { %p6676_p6 = pneg %p6675_p1 }
  0x47   : > { %p6681_p3 = pnand %p6679_p10, %p6676_p6 }
  0x49   : > { %6684 = shalt.err (!%p6681_p3)
}
  0x4a   : > { %s6685_s23 = scalar_lea.vmem %s7045_s26, 4096  ;;  %p6693_p12 = scmp.lt.s32.totalorder %s7045_s26, %s7045_s26 }
  0x4b   : > { %p6686_p5 = scmp.ne.s32.totalorder %s7045_s26, %s6685_s23  ;;  %p6694_p0 = scmp.lt.s32.totalorder %s6685_s23, %s6685_s23 }
  0x4d   : > { %p6688_p7 = pnand %p6686_p5, %p7055_p13  ;;  %p6695_p2 = por %p6694_p0, %p6693_p12 }
  0x4f   : > { %p6689_p9 = pneg %p6688_p7 }
  0x51   : > { %p6696_p1 = pnand %p6695_p2, %p6689_p9 }
  0x53   : > { %6699 = shalt.err (!%p6696_p1)
}
  0x54   : > { %s9506_s11 = smov 128   ;;  %s9507_s9 = smov 8  }
  0x55   : > { %5836 = dma.hbm_to_vmem [thread:$0]  (!%p7041_p11), %s9571_s4, 4096, %s7045_s26, [#allocation9], %s9506_s11, %s9506_s11, %s9507_s9  }
  0x56   : > { %s6906_s27 = smov [#allocation10]   ;;  %s9572_s8 = sld [smem:[#allocation74_spill]] }
  0x57   : > { %s420_s14 = sshll.u32 %s6906_s27, 4  ;;  %s421_s14 = int_to_ptr.vmem [resolvable:$true] %s420_s14 }
  0x5c   : > { %s6700_s22 = scalar_lea.hbm %s9572_s8, 8192 }
  0x5d   : > { %p6701_p6 = scmp.ne.s32.totalorder %s9572_s8, %s6700_s22  ;;  %p6707_p5 = scmp.lt.u32.totalorder %s6700_s22, %s9572_s8 }
  0x5f   : > { %p6703_p10 = pnand %p6701_p6, %p7055_p13 }
  0x61   : > { %p6704_p3 = pneg %p6703_p10 }
  0x63   : > { %p6709_p7 = pnand %p6707_p5, %p6704_p3 }
  0x65   : > { %6712 = shalt.err (!%p6709_p7)
}
  0x66   : > { %s6713_s26 = scalar_lea.vmem %s421_s14, 8192  ;;  %p6721_p2 = scmp.lt.s32.totalorder %s421_s14, %s421_s14 }
  0x67   : > { %p6714_p9 = scmp.ne.s32.totalorder %s421_s14, %s6713_s26  ;;  %p6722_p1 = scmp.lt.s32.totalorder %s6713_s26, %s6713_s26 }
  0x69   : > { %p6716_p12 = pnand %p6714_p9, %p7055_p13  ;;  %p6723_p4 = por %p6722_p1, %p6721_p2 }
  0x6b   : > { %p6717_p0 = pneg %p6716_p12 }
  0x6d   : > { %p6724_p8 = pnand %p6723_p4, %p6717_p0 }
  0x6f   : > { %6727 = shalt.err (!%p6724_p8)
}
  0x70   : > { %s9508_s12 = smov 256   ;;  %s6908_s13 = smov 16  }
  0x71   : > { %5839 = dma.hbm_to_vmem [thread:$0]  (!%p7041_p11), %s9572_s8, 8192, %s421_s14, [#allocation9], %s9508_s12, %s9508_s12, %s6908_s13  }
  0x72   : > { %s6909_s28 = smov [#allocation11]   ;;  %s6728_s20 = scalar_lea.hbm %s9495_s10, 8192 }
  0x73   : > { %s436_s18 = sshll.u32 %s6909_s28, 4  ;;  %p6729_p4 = scmp.ne.s32.totalorder %s9495_s10, %s6728_s20  ;;  %s437_s18 = int_to_ptr.vmem [resolvable:$true] %s436_s18 }
  0x74   : > { %p6735_p10 = scmp.lt.u32.totalorder %s6728_s20, %s9495_s10 }
  0x75   : > { %p6731_p8 = pnand %p6729_p4, %p7055_p13 }
  0x77   : > { %p6732_p6 = pneg %p6731_p8 }
  0x79   : > { %p6737_p3 = pnand %p6735_p10, %p6732_p6 }
  0x7b   : > { %6740 = shalt.err (!%p6737_p3)
}
  0x7c   : > { %s6741_s14 = scalar_lea.vmem %s437_s18, 8192  ;;  %p6749_p12 = scmp.lt.s32.totalorder %s437_s18, %s437_s18 }
  0x7d   : > { %p6742_p5 = scmp.ne.s32.totalorder %s437_s18, %s6741_s14  ;;  %p6750_p0 = scmp.lt.s32.totalorder %s6741_s14, %s6741_s14 }
  0x7f   : > { %p6744_p7 = pnand %p6742_p5, %p7055_p13  ;;  %p6751_p2 = por %p6750_p0, %p6749_p12 }
  0x81   : > { %p6745_p9 = pneg %p6744_p7 }
  0x83   : > { %p6752_p1 = pnand %p6751_p2, %p6745_p9 }
  0x85   : > { %6755 = shalt.err (!%p6752_p1)
}
  0x86   : > { %s9573_s2 = smov 8   ;;  %s9574_s27 = smov 128  }
  0x87   : > { %5842 = dma.hbm_to_vmem [thread:$0]  (!%p7041_p11), %s9495_s10, 8192, %s437_s18, [#allocation12], %s9574_s27, %s9574_s27, %s9573_s2  }
  0x88   : > { %s7145_s29 = sadd.s32 1, %s6898_s16   ;;  %s42_s24 = sadd.s32 1, %s6894_s15 }
  0x89   : > { %s39_s28 = ssub.s32 %s6898_s16, %s7145_s29  ;;  %p49_p13 = scmp.ne.s32.totalorder %s6894_s15, %s6890_s30 }
  0x8a   : > { %p40_p4 = scmp.eq.s32.totalorder %s39_s28, 0  ;;  %p50_p8 = scmp.eq.s32.totalorder %s6898_s16, 0 }
  0x8b   : > { %p9575_p6 = scmp.eq.s32.totalorder %s7011_s17, 1  ;;  %p5858_p3 = scmp.lt.s32.totalorder %s6898_s16, 2 }
  0x8c   : > { %s7161_s25 = scalar_select %p40_p4, %s6894_s15, %s42_s24  }
  0x8d   : > { %p7155_p10 = por %p9575_p6, %p49_p13  ;;  %p51_p5 = por %p50_p8, %p49_p13 }
  0x8e   : > { %s7164_s20 = sand.u32 1, %s6894_s15   ;;  %s5550_s23 = sshll.u32 %s6898_s16, 12 }
  0x8f   : > { %s9576_s22 = scalar_select %p7155_p10, 1, 0 }
  0x90   : > { %s5277_s18 = sshll.u32 %s7164_s20, 8  ;;  %s9577_s0 = sld [smem:[#allocation71_spill]] }
  0x91   : > { %s463_s27 = scalar_lea.vmem [#allocation2], %s5277_s18  ;;  %p7175_p11 = pnand %p5858_p3, %p51_p5 }
  0x92   : > { %s470_s11 = sshll.u32 %s463_s27, 4  ;;  %s460_s28 = scalar_lea.sflag [#allocation3], %s7164_s20  ;;  %s7173_s11 = int_to_ptr.vmem [resolvable:$true] %s470_s11 }
  0x93   : > { %p6758_p9 = pneg %p7175_p11 }
  0x96   : > { %s7171_s2 = scalar_lea.hbm %s9577_s0, %s5550_s23  ;;  %s6761_s26 = scalar_lea.hbm %s9577_s0, 8192 }
  0x97   : > { %s6756_s12 = scalar_lea.hbm %s7171_s2, 4096  ;;  %p6762_p2 = scmp.lt.u32.totalorder %s7171_s2, %s9577_s0 }
  0x98   : > { %p6757_p7 = scmp.ne.s32.totalorder %s7171_s2, %s6756_s12  ;;  %p6763_p1 = scmp.lt.u32.totalorder %s6761_s26, %s6756_s12 }
  0x99   : > { %p6765_p4 = scmp.lt.u32.totalorder %s6756_s12, %s7171_s2 }
  0x9a   : > { %p6759_p12 = pnand %p6758_p9, %p6757_p7  ;;  %p6764_p13 = por %p6763_p1, %p6762_p2 }
  0x9c   : > { %p6760_p0 = pneg %p6759_p12  ;;  %p6766_p8 = por %p6765_p4, %p6764_p13 }
  0x9e   : > { %p6767_p6 = pnand %p6766_p8, %p6760_p0 }
  0xa0   : > { %6770 = shalt.err (!%p6767_p6)
}
  0xa1   : > { %s6771_s24 = scalar_lea.vmem %s7173_s11, 4096  ;;  %s6910_s18 = smov [#allocation2]  }
  0xa2   : > { %p6772_p3 = scmp.ne.s32.totalorder %s7173_s11, %s6771_s24  ;;  %s6776_s23 = sshll.u32 %s6910_s18, 4  ;;  %s6777_s23 = int_to_ptr.vmem [resolvable:$false] %s6776_s23 }
  0xa3   : > { %s6778_s14 = scalar_lea.vmem %s6777_s23, 8192  ;;  %p6779_p12 = scmp.lt.s32.totalorder %s7173_s11, %s6777_s23 }
  0xa4   : > { %p6774_p5 = pnand %p6772_p3, %p6758_p9  ;;  %p6780_p2 = scmp.lt.s32.totalorder %s6778_s14, %s6771_s24 }
  0xa6   : > { %p6775_p7 = pneg %p6774_p5  ;;  %p6781_p1 = por %p6780_p2, %p6779_p12 }
  0xa8   : > { %p6782_p13 = pnand %p6781_p1, %p6775_p7 }
  0xaa   : > { %6785 = shalt.err (!%p6782_p13)
}
  0xab   : > { %s9579_s12 = smov 256   ;;  %s5280_s26 = sshll.u32 %s6898_s16, 4 }
  0xac   : > { %5846 = dma.hbm_to_vmem [thread:$0]  (!%p7175_p11), %s7171_s2, 4096, %s7173_s11, %s460_s28, %s9579_s12, %s9579_s12, %s6908_s13  }
  0xad   : > { %s483_s27 = scalar_lea.vmem [#allocation5], %s7164_s20  ;;  %s7216_s14 = scalar_lea.hbm %s9486_s1, %s5280_s26 }
  0xae   : > { %s490_s24 = sshll.u32 %s483_s27, 4  ;;  %s9580_s0 = sand.u32 1, %s6898_s16   ;;  %s491_s24 = int_to_ptr.vmem [resolvable:$true] %s490_s24 }
  0xaf   : > { %s481_s4 = scalar_lea.sflag [#allocation6], %s9580_s0  ;;  %s6786_s8 = scalar_lea.hbm %s7216_s14, 16 }
  0xb0   : > { %p6787_p0 = scmp.ne.s32.totalorder %s7216_s14, %s6786_s8  ;;  %s6791_s2 = scalar_lea.hbm %s9486_s1, 32 }
  0xb1   : > { %p6792_p6 = scmp.lt.u32.totalorder %s7216_s14, %s9486_s1  ;;  %p6793_p3 = scmp.lt.u32.totalorder %s6791_s2, %s6786_s8 }
  0xb2   : > { %p6789_p4 = pnand %p6787_p0, %p6758_p9  ;;  %p6795_p7 = scmp.lt.u32.totalorder %s6786_s8, %s7216_s14 }
  0xb3   : > { %p6794_p5 = por %p6793_p3, %p6792_p6 }
  0xb4   : > { %p6790_p8 = pneg %p6789_p4 }
  0xb5   : > { %p6796_p12 = por %p6795_p7, %p6794_p5 }
  0xb7   : > { %p6797_p2 = pnand %p6796_p12, %p6790_p8 }
  0xb9   : > { %6800 = shalt.err (!%p6797_p2)
}
  0xba   : > { %s6801_s0 = scalar_lea.vmem %s491_s24, 16  ;;  %s6911_s12 = smov [#allocation5]  }
  0xbb   : > { %p6802_p1 = scmp.ne.s32.totalorder %s491_s24, %s6801_s0  ;;  %s6806_s26 = sshll.u32 %s6911_s12, 4  ;;  %s6807_s26 = int_to_ptr.vmem [resolvable:$false] %s6806_s26 }
  0xbc   : > { %s6808_s27 = scalar_lea.vmem %s6807_s26, 32  ;;  %p6809_p4 = scmp.lt.s32.totalorder %s491_s24, %s6807_s26 }
  0xbd   : > { %p6804_p13 = pnand %p6802_p1, %p6758_p9  ;;  %p6810_p10 = scmp.lt.s32.totalorder %s6808_s27, %s6801_s0 }
  0xbf   : > { %p6805_p0 = pneg %p6804_p13  ;;  %p6811_p3 = por %p6810_p10, %p6809_p4 }
  0xc1   : > { %p6812_p6 = pnand %p6811_p3, %p6805_p0 }
  0xc3   : > { %6815 = shalt.err (!%p6812_p6)
}
  0xc4   : > { %5849 = dma.hbm_to_vmem [thread:$0]  (!%p7175_p11), %s7216_s14, 16, %s491_s24, %s481_s4  }
  0xc5   : > { %p9581_p8 = scmp.ne.s32.totalorder %s9567_s21, 0 }
  0xc7   : > { %499 = sbr.rel (%p9581_p8) target bundleno = 2811 (0xafb), region = 76 }
  0xce   : > { %s7242_s8 = sand.u32 1, %s6890_s30   ;;  %p9582_p10 = scmp.ne.s32.totalorder %s9564_s19, 0 }
  0xcf   : > { %s5282_s18 = sshll.u32 %s7242_s8, 8  ;;  %s502_s23 = scalar_lea.sflag [#allocation3], %s7242_s8 }
  0xd0   : > { %s7248_s13 = scalar_lea.vmem [#allocation2], %s5282_s18 }
  0xd1   : > { %6861 = dma.done.wait (%p9582_p10), %s502_s23, 4096  }
  0xd2   : > { %6863 = vsyncadd (%p9582_p10), %s502_s23, 4294963200  ;;  %s510_s4 = sand.u32 1, %s7011_s17   ;;  %s513_s9 = scalar_lea.vmem [#allocation5], %s7242_s8 }
  0xd3   : > { %s511_s21 = scalar_lea.sflag [#allocation6], %s510_s4 }
  0xd4   : > { %6865 = dma.done.wait (%p9582_p10), %s511_s21, 16  }
  0xd5   : > { %6867 = vsyncadd (%p9582_p10), %s511_s21, 4294967280  ;;  %p9583_p11 = scmp.eq.s32.totalorder %s7011_s17, 0 }
  0xd7   : > { %6869 = dma.done.wait (%p9583_p11), [#allocation6], 12288   ;;  %p9584_p9 = pmov %p9583_p11 }
  0xd9   : > { %6871 = vsyncadd (%p9584_p9), [#allocation6], 4294955008  ;;  %p9585_p5 = pmov %p9584_p9 }
  0xdb   : > { %6873 = dma.done.wait (%p9585_p5), [#allocation9], 12288   ;;  %p9586_p7 = pmov %p9585_p5 }
  0xdc   : > { %p9587_p12 = pmov %p9585_p5 }
  0xdd   : > { %6875 = vsyncadd (%p9586_p7), [#allocation9], 4294955008 }
  0xde   : > { %6877 = dma.done.wait (%p9587_p12), [#allocation12], 8192   ;;  %p9588_p2 = pmov %p9585_p5 }
  0xdf   : > { %v5908_v0 = vld [vmem:[#allocation7 + $0xc] ss:$24 sps:$4 sm:$0xff]   ;;  %v5910_v1 = vld [vmem:[#allocation7 + $0x8] ss:$24 sps:$4 sm:$0xff]   ;;  %v5911_v2 = vld [vmem:[#allocation7 + $0x3c] ss:$24 sps:$4 sm:$0xff]  }
  0xe0   : > { %6879 = vsyncadd (%p9588_p2), [#allocation12], 4294959104  ;;  %1348 = vmatprep.subr.bf16.mxu1 %v5908_v0  ;;  %v5913_v3 = vld [vmem:[#allocation7 + $0x38] ss:$24 sps:$4 sm:$0xff]   ;;  %v5914_v4 = vld [vmem:[#allocation7 + $0x6c] ss:$24 sps:$4 sm:$0xff]  }
  0xe1   : > { %1349 = vmatpush1.bf16.msra.mxu1 %v5910_v1  ;;  %v5916_v5 = vld [vmem:[#allocation7 + $0x68] ss:$24 sps:$4 sm:$0xff]   ;;  %v5917_v6 = vld [vmem:[#allocation7 + $0x9c] ss:$24 sps:$4 sm:$0xff]   ;;  %v5919_v7 = vld [vmem:[#allocation7 + $0x98] ss:$24 sps:$4 sm:$0xff]  }
  0xe2   : > { %1350 = vmatprep.subr.bf16.mxu1 %v5911_v2  ;;  %v5920_v8 = vld [vmem:[#allocation7 + $0xcc] ss:$24 sps:$4 sm:$0xff]   ;;  %v5922_v9 = vld [vmem:[#allocation7 + $0xc8] ss:$24 sps:$4 sm:$0xff]   ;;  %v5923_v10 = vld [vmem:[#allocation7 + $0xfc] ss:$24 sps:$4 sm:$0xff]  }
  0xe3   : > { %v5925_v11 = vld [vmem:[#allocation7 + $0xf8] ss:$24 sps:$4 sm:$0xff]   ;;  %v5949_v12 = vld [vmem:[#allocation7 + $0x4] ss:$24 sps:$4 sm:$0xff]   ;;  %v5955_v15 = vld [vmem:[#allocation7 + $0x34] ss:$24 sps:$4 sm:$0xff]  }
  0xe4   : > { %v5952_v13 = vld [vmem:[#allocation7] ss:$24 sps:$4 sm:$0xff]   ;;  %v5926_v14 = vld [vmem:[#allocation7 + $0x12c] ss:$24 sps:$4 sm:$0xff]   ;;  %1235 = vmatprep.subr.bf16.mxu0 %v5949_v12  ;;  %v5958_v16 = vld [vmem:[#allocation7 + $0x30] ss:$24 sps:$4 sm:$0xff]  }
  0xe5   : > { %1351 = vmatpush1.bf16.msra.mxu1 %v5913_v3  ;;  %1236 = vmatpush1.bf16.msra.mxu0 %v5952_v13  ;;  %v5928_v17 = vld [vmem:[#allocation7 + $0x128] ss:$24 sps:$4 sm:$0xff]   ;;  %v5929_v18 = vld [vmem:[#allocation7 + $0x15c] ss:$24 sps:$4 sm:$0xff]   ;;  %v5931_v24 = vld [vmem:[#allocation7 + $0x158] ss:$24 sps:$4 sm:$0xff]  }
  0xe6   : > { %1352 = vmatprep.subr.bf16.mxu1 %v5914_v4  ;;  %1237 = vmatprep.subr.bf16.mxu0 %v5955_v15  ;;  %v5961_v19 = vld [vmem:[#allocation7 + $0x64] ss:$24 sps:$4 sm:$0xff]   ;;  %v5964_v22 = vld [vmem:[#allocation7 + $0x60] ss:$24 sps:$4 sm:$0xff]   ;;  %v5965_v25 = vld [vmem:[#allocation7 + $0x94] ss:$24 sps:$4 sm:$0xff]  }
  0xe7   : > { %v580_v20 = vld [vmem:[%s7248_s13 + $0x8] sm:$0xff]  ;;  %v582_v21 = vld [vmem:[%s7248_s13 + $0x18] sm:$0xff]  ;;  %v579_v56 = vld [vmem:[%s7248_s13] sm:$0xff]  ;;  %s9623_s27 = sld [smem:[#allocation75_spill]]  ;;  %s9656_s4 = sld [smem:[#allocation76_spill]] }
  0xe8   : > { %v7274_v23 = vpack.c.bf16 %v582_v21, %v580_v20  ;;  %v5932_v26 = vld [vmem:[#allocation7 + $0x18c] ss:$24 sps:$4 sm:$0xff]   ;;  %v5967_v27 = vld [vmem:[#allocation7 + $0x90] ss:$24 sps:$4 sm:$0xff]   ;;  %v5935_v30 = vld [vmem:[#allocation7 + $0x1bc] ss:$24 sps:$4 sm:$0xff]  }
  0xe9   : > { %1353 = vmatpush1.bf16.msra.mxu1 %v5916_v5  ;;  %1238 = vmatpush1.bf16.msra.mxu0 %v5958_v16  ;;  %v5934_v28 = vld [vmem:[#allocation7 + $0x188] ss:$24 sps:$4 sm:$0xff]   ;;  %v5968_v29 = vld [vmem:[#allocation7 + $0xc4] ss:$24 sps:$4 sm:$0xff]   ;;  %v5937_v32 = vld [vmem:[#allocation7 + $0x1b8] ss:$24 sps:$4 sm:$0xff]  }
  0xea   : > { %1354 = vmatprep.subr.bf16.mxu1 %v5917_v6  ;;  %1239 = vmatprep.subr.bf16.mxu0 %v5961_v19  ;;  %v5970_v31 = vld [vmem:[#allocation7 + $0xc0] ss:$24 sps:$4 sm:$0xff]   ;;  %v5971_v33 = vld [vmem:[#allocation7 + $0xf4] ss:$24 sps:$4 sm:$0xff]   ;;  %v5973_v35 = vld [vmem:[#allocation7 + $0xf0] ss:$24 sps:$4 sm:$0xff]  }
  0xeb   : > { %1380 = vmatprep.mubr.bf16.mxu1 %v7274_v23  ;;  %1267 = vmatprep.mubr.bf16.mxu0 %v7274_v23  ;;  %v5938_v34 = vld [vmem:[#allocation7 + $0x1ec] ss:$24 sps:$4 sm:$0xff]   ;;  %v5940_v36 = vld [vmem:[#allocation7 + $0x1e8] ss:$24 sps:$4 sm:$0xff]   ;;  %v5941_v38 = vld [vmem:[#allocation7 + $0x21c] ss:$24 sps:$4 sm:$0xff]  }
  0xec   : > { %v5974_v37 = vld [vmem:[#allocation7 + $0x124] ss:$24 sps:$4 sm:$0xff]   ;;  %v5976_v39 = vld [vmem:[#allocation7 + $0x120] ss:$24 sps:$4 sm:$0xff]   ;;  %v5977_v41 = vld [vmem:[#allocation7 + $0x154] ss:$24 sps:$4 sm:$0xff]  }
  0xed   : > { %1355 = vmatpush1.bf16.msra.mxu1 %v5919_v7  ;;  %1240 = vmatpush1.bf16.msra.mxu0 %v5964_v22  ;;  %v5943_v40 = vld [vmem:[#allocation7 + $0x218] ss:$24 sps:$4 sm:$0xff]   ;;  %v5944_v42 = vld [vmem:[#allocation7 + $0x24c] ss:$24 sps:$4 sm:$0xff]   ;;  %v5946_v44 = vld [vmem:[#allocation7 + $0x248] ss:$24 sps:$4 sm:$0xff]  }
  0xee   : > { %1356 = vmatprep.subr.bf16.mxu1 %v5920_v8  ;;  %1241 = vmatprep.subr.bf16.mxu0 %v5965_v25  ;;  %v5979_v43 = vld [vmem:[#allocation7 + $0x150] ss:$24 sps:$4 sm:$0xff]   ;;  %v5980_v45 = vld [vmem:[#allocation7 + $0x184] ss:$24 sps:$4 sm:$0xff]   ;;  %v5982_v47 = vld [vmem:[#allocation7 + $0x180] ss:$24 sps:$4 sm:$0xff]  }
  0xef   : > { %v5947_v46 = vld [vmem:[#allocation7 + $0x27c] ss:$24 sps:$4 sm:$0xff]   ;;  %v5951_v48 = vld [vmem:[#allocation7 + $0x278] ss:$24 sps:$4 sm:$0xff]   ;;  %v5953_v50 = vld [vmem:[#allocation7 + $0x2ac] ss:$24 sps:$4 sm:$0xff]  }
  0xf0   : > { %v5983_v49 = vld [vmem:[#allocation7 + $0x1b4] ss:$24 sps:$4 sm:$0xff]   ;;  %v5985_v51 = vld [vmem:[#allocation7 + $0x1b0] ss:$24 sps:$4 sm:$0xff]   ;;  %v5986_v53 = vld [vmem:[#allocation7 + $0x1e4] ss:$24 sps:$4 sm:$0xff]  }
  0xf1   : > { %1357 = vmatpush1.bf16.msra.mxu1 %v5922_v9  ;;  %1242 = vmatpush1.bf16.msra.mxu0 %v5967_v27  ;;  %v5957_v52 = vld [vmem:[#allocation7 + $0x2a8] ss:$24 sps:$4 sm:$0xff]   ;;  %v5959_v54 = vld [vmem:[#allocation7 + $0x2dc] ss:$24 sps:$4 sm:$0xff]   ;;  %v5963_v55 = vld [vmem:[#allocation7 + $0x2d8] ss:$24 sps:$4 sm:$0xff]  }
  0xf2   : > { %1358 = vmatprep.subr.bf16.mxu1 %v5923_v10  ;;  %1243 = vmatprep.subr.bf16.mxu0 %v5968_v29  ;;  %v581_v57 = vld [vmem:[%s7248_s13 + $0x10] sm:$0xff]  ;;  %v5988_v58 = vld [vmem:[#allocation7 + $0x1e0] ss:$24 sps:$4 sm:$0xff]   ;;  %v584_v59 = vld [vmem:[%s7248_s13 + $0x28] sm:$0xff]  ;;  %s9691_s19 = sld [smem:[#allocation77_spill]]  ;;  %s9692_s20 = sld [smem:[#allocation78_spill]] }
  0xf3   : > { %v5989_v60 = vld [vmem:[#allocation7 + $0x214] ss:$24 sps:$4 sm:$0xff]   ;;  %v7282_v62 = vpack.c.bf16 %v581_v57, %v579_v56  ;;  %v5991_v63 = vld [vmem:[#allocation7 + $0x210] ss:$24 sps:$4 sm:$0xff]   ;;  %v5992_v1 = vld [vmem:[#allocation7 + $0x244] ss:$24 sps:$4 sm:$0xff]  }
  0xf4   : > { %v586_v61 = vld [vmem:[%s7248_s13 + $0x38] sm:$0xff]  ;;  %v583_v2 = vld [vmem:[%s7248_s13 + $0x20] sm:$0xff]  ;;  %v585_v3 = vld [vmem:[%s7248_s13 + $0x30] sm:$0xff]  ;;  %s9314_s2 = scalar_lea.vmem [#allocation13], %s5282_s18  ;;  %s5551_s18 = sshll.u32 %s7011_s17, 12 }
  0xf5   : > { %1359 = vmatpush1.bf16.msra.mxu1 %v5925_v11  ;;  %1244 = vmatpush1.bf16.msra.mxu0 %v5970_v31  ;;  %v7284_v0 = vpack.c.bf16 %v586_v61, %v584_v59  ;;  %v5994_v4 = vld [vmem:[#allocation7 + $0x240] ss:$24 sps:$4 sm:$0xff]   ;;  %v588_v5 = vld [vmem:[%s7248_s13 + $0x48] sm:$0xff]  ;;  %v7292_v8 = vpack.c.bf16 %v585_v3, %v583_v2  ;;  %v589_v13 = vld [vmem:[%s7248_s13 + $0x50] sm:$0xff]  ;;  %s5139_s11 = sshll.u32 %s9314_s2, 4  ;;  %s9693_s12 = sld [smem:[#allocation79_spill]]  ;;  %s9435_s11 = int_to_ptr.vmem [resolvable:$true] %s5139_s11 }
  0xf6   : > { %1360 = vmatprep.subr.bf16.mxu1 %v5926_v14  ;;  %1245 = vmatprep.subr.bf16.mxu0 %v5971_v33  ;;  %v5995_v6 = vld [vmem:[#allocation7 + $0x274] ss:$24 sps:$4 sm:$0xff]   ;;  %v5997_v9 = vld [vmem:[#allocation7 + $0x270] ss:$24 sps:$4 sm:$0xff]   ;;  %v5998_v11 = vld [vmem:[#allocation7 + $0x2a4] ss:$24 sps:$4 sm:$0xff]  }
  0xf7   : > { %v590_v7 = vld [vmem:[%s7248_s13 + $0x58] sm:$0xff]  ;;  %v587_v12 = vld [vmem:[%s7248_s13 + $0x40] sm:$0xff]  ;;  %v592_v14 = vld [vmem:[%s7248_s13 + $0x68] sm:$0xff]  ;;  %s5126_s17 = scalar_lea.sflag [#allocation4], %s7242_s8  ;;  %p9694_p13 = scmp.ne.s32.totalorder %s9576_s22, 0 }
  0xf8   : > { %v7294_v10 = vpack.c.bf16 %v590_v7, %v588_v5  ;;  %v594_v15 = vld [vmem:[%s7248_s13 + $0x78] sm:$0xff]  ;;  %v7302_v20 = vpack.c.bf16 %v589_v13, %v587_v12  ;;  %v6004_v22 = vld [vmem:[#allocation7 + $0x10] ss:$24 sps:$4 sm:$0xff]   ;;  %v607_v2 = vld [vmem:[%s7248_s13 + $0xe0] sm:$0xff]  ;;  %s6912_s23 = smov [#allocation13]  }
  0xf9   : > { %1361 = vmatpush1.bf16.msra.mxu1 %v5928_v17  ;;  %1246 = vmatpush1.bf16.msra.mxu0 %v5973_v35  ;;  %v6000_v16 = vld [vmem:[#allocation7 + $0x2a0] ss:$24 sps:$4 sm:$0xff]   ;;  %v6001_v17 = vld [vmem:[#allocation7 + $0x2d4] ss:$24 sps:$4 sm:$0xff]   ;;  %v7304_v21 = vpack.c.bf16 %v594_v15, %v592_v14  ;;  %v6010_v33 = vld [vmem:[#allocation7 + $0x70] ss:$24 sps:$4 sm:$0xff]  }
  0xfa   : > { %1362 = vmatprep.subr.bf16.mxu1 %v5929_v18  ;;  %1247 = vmatprep.subr.bf16.mxu0 %v5974_v37  ;;  %v6003_v18 = vld [vmem:[#allocation7 + $0x2d0] ss:$24 sps:$4 sm:$0xff]   ;;  %v6006_v19 = vld [vmem:[#allocation7 + $0x14] ss:$24 sps:$4 sm:$0xff]   ;;  %v6007_v29 = vld [vmem:[#allocation7 + $0x40] ss:$24 sps:$4 sm:$0xff]  }
  0xfb   : > { %v593_v25 = vld [vmem:[%s7248_s13 + $0x70] sm:$0xff]  ;;  %v596_v27 = vld [vmem:[%s7248_s13 + $0x88] sm:$0xff]  ;;  %v6025_v59 = vld [vmem:[#allocation7 + $0x160] ss:$24 sps:$4 sm:$0xff]   ;;  %s9433_s26 = scalar_lea.hbm %s9693_s12, %s5551_s18 }
  0xfc   : > { %v597_v35 = vld [vmem:[%s7248_s13 + $0x90] sm:$0xff]  ;;  %v600_v37 = vld [vmem:[%s7248_s13 + $0xa8] sm:$0xff]  ;;  %v6031_v5 = vld [vmem:[#allocation7 + $0x1c0] ss:$24 sps:$4 sm:$0xff]  }
  0xfd   : > { %1363 = vmatpush1.bf16.msra.mxu1 %v5931_v24  ;;  %1248 = vmatpush1.bf16.msra.mxu0 %v5976_v39  ;;  %v591_v24 = vld [vmem:[%s7248_s13 + $0x60] sm:$0xff]  ;;  %v608_v57 = vld [vmem:[%s7248_s13 + $0xe8] sm:$0xff]  ;;  %v609_v3 = vld [vmem:[%s7248_s13 + $0xf0] sm:$0xff] }
  0xfe   : > { %1364 = vmatprep.subr.bf16.mxu1 %v5932_v26  ;;  %1249 = vmatprep.subr.bf16.mxu0 %v5977_v41  ;;  %v6009_v26 = vld [vmem:[#allocation7 + $0x44] ss:$24 sps:$4 sm:$0xff]   ;;  %v7313_v31 = vpack.c.bf16 %v593_v25, %v591_v24  ;;  %v6013_v39 = vld [vmem:[#allocation7 + $0xa0] ss:$24 sps:$4 sm:$0xff]   ;;  %v721_v7 = vpack.c.bf16 %v609_v3, %v607_v2  ;;  %v6042_v13 = vld [vmem:[#allocation7 + $0x254] ss:$24 sps:$4 sm:$0xff]  }
  0xff   : > { %v6027_v56 = vld [vmem:[#allocation7 + $0x164] ss:$24 sps:$4 sm:$0xff]   ;;  %v6037_v12 = vld [vmem:[#allocation7 + $0x220] ss:$24 sps:$4 sm:$0xff]   ;;  %v6040_v14 = vld [vmem:[#allocation7 + $0x250] ss:$24 sps:$4 sm:$0xff]  }
 0x100   : > { %v6045_v15 = vld [vmem:[#allocation7 + $0x284] ss:$24 sps:$4 sm:$0xff]  }
 0x101   : > { %1365 = vmatpush1.bf16.msra.mxu1 %v5934_v28  ;;  %1250 = vmatpush1.bf16.msra.mxu0 %v5979_v43  ;;  %v598_v28 = vld [vmem:[%s7248_s13 + $0x98] sm:$0xff]  ;;  %v6016_v43 = vld [vmem:[#allocation7 + $0xd0] ss:$24 sps:$4 sm:$0xff]  }
 0x102   : > { %1366 = vmatprep.subr.bf16.mxu1 %v5935_v30  ;;  %1251 = vmatprep.subr.bf16.mxu0 %v5980_v45  ;;  %v6012_v30 = vld [vmem:[#allocation7 + $0x74] ss:$24 sps:$4 sm:$0xff]  }
 0x103   : > { %v601_v45 = vld [vmem:[%s7248_s13 + $0xb0] sm:$0xff] }
 0x105   : > { %1367 = vmatpush1.bf16.msra.mxu1 %v5937_v32  ;;  %1252 = vmatpush1.bf16.msra.mxu0 %v5982_v47  ;;  %v7316_v32 = vpack.c.bf16 %v598_v28, %v596_v27  ;;  %v604_v47 = vld [vmem:[%s7248_s13 + $0xc8] sm:$0xff] }
 0x106   : > { %1368 = vmatprep.subr.bf16.mxu1 %v5938_v34  ;;  %1253 = vmatprep.subr.bf16.mxu0 %v5983_v49  ;;  %v595_v34 = vld [vmem:[%s7248_s13 + $0x80] sm:$0xff] }
 0x107   : > { %v7325_v41 = vpack.c.bf16 %v597_v35, %v595_v34  ;;  %v6019_v49 = vld [vmem:[#allocation7 + $0x100] ss:$24 sps:$4 sm:$0xff]  }
 0x109   : > { %1369 = vmatpush1.bf16.msra.mxu1 %v5940_v36  ;;  %1254 = vmatpush1.bf16.msra.mxu0 %v5985_v51  ;;  %v6015_v36 = vld [vmem:[#allocation7 + $0xa4] ss:$24 sps:$4 sm:$0xff]  }
 0x10a   : > { %1370 = vmatprep.subr.bf16.mxu1 %v5941_v38  ;;  %1255 = vmatprep.subr.bf16.mxu0 %v5986_v53  ;;  %v602_v38 = vld [vmem:[%s7248_s13 + $0xb8] sm:$0xff]  ;;  %v6022_v53 = vld [vmem:[#allocation7 + $0x130] ss:$24 sps:$4 sm:$0xff]  }
 0x10d   : > { %1371 = vmatpush1.bf16.msra.mxu1 %v5943_v40  ;;  %1256 = vmatpush1.bf16.msra.mxu0 %v5988_v58  ;;  %v6018_v40 = vld [vmem:[#allocation7 + $0xd4] ss:$24 sps:$4 sm:$0xff]  }
 0x10e   : > { %1372 = vmatprep.subr.bf16.mxu1 %v5944_v42  ;;  %1257 = vmatprep.subr.bf16.mxu0 %v5989_v60  ;;  %v7328_v42 = vpack.c.bf16 %v602_v38, %v600_v37  ;;  %v610_v58 = vld [vmem:[%s7248_s13 + $0xf8] sm:$0xff] }
 0x10f   : > { %v6030_v60 = vld [vmem:[#allocation7 + $0x194] ss:$24 sps:$4 sm:$0xff]  }
 0x111   : > { %1373 = vmatpush1.bf16.msra.mxu1 %v5946_v44  ;;  %1258 = vmatpush1.bf16.msra.mxu0 %v5991_v63  ;;  %v599_v44 = vld [vmem:[%s7248_s13 + $0xa0] sm:$0xff]  ;;  %v722_v63 = vpack.c.bf16 %v610_v58, %v608_v57 }
 0x112   : > { %1374 = vmatprep.subr.bf16.mxu1 %v5947_v46  ;;  %1259 = vmatprep.subr.bf16.mxu0 %v5992_v1  ;;  %v6021_v46 = vld [vmem:[#allocation7 + $0x104] ss:$24 sps:$4 sm:$0xff]   ;;  %v7337_v51 = vpack.c.bf16 %v601_v45, %v599_v44  ;;  %v6028_v1 = vld [vmem:[#allocation7 + $0x190] ss:$24 sps:$4 sm:$0xff]  }
 0x115   : > { %1375 = vmatpush1.bf16.msra.mxu1 %v5951_v48  ;;  %1260 = vmatpush1.bf16.msra.mxu0 %v5994_v4  ;;  %v606_v48 = vld [vmem:[%s7248_s13 + $0xd8] sm:$0xff] }
 0x116   : > { %1376 = vmatprep.subr.bf16.mxu1 %v5953_v50  ;;  %1261 = vmatprep.subr.bf16.mxu0 %v5995_v6  ;;  %v6024_v50 = vld [vmem:[#allocation7 + $0x134] ss:$24 sps:$4 sm:$0xff]   ;;  %v6033_v4 = vld [vmem:[#allocation7 + $0x1c4] ss:$24 sps:$4 sm:$0xff]  }
 0x117   : > { %v6036_v6 = vld [vmem:[#allocation7 + $0x1f4] ss:$24 sps:$4 sm:$0xff]  }
 0x119   : > { %1377 = vmatpush1.bf16.msra.mxu1 %v5957_v52  ;;  %1262 = vmatpush1.bf16.msra.mxu0 %v5997_v9  ;;  %v7340_v52 = vpack.c.bf16 %v606_v48, %v604_v47  ;;  %v6034_v9 = vld [vmem:[#allocation7 + $0x1f0] ss:$24 sps:$4 sm:$0xff]  }
 0x11a   : > { %1378 = vmatprep.subr.bf16.mxu1 %v5959_v54  ;;  %1263 = vmatprep.subr.bf16.mxu0 %v5998_v11  ;;  %v603_v54 = vld [vmem:[%s7248_s13 + $0xc0] sm:$0xff] }
 0x11b   : > { %v6039_v11 = vld [vmem:[#allocation7 + $0x224] ss:$24 sps:$4 sm:$0xff]  }
 0x11d   : > { %1379 = vmatpush1.bf16.msra.mxu1 %v5963_v55  ;;  %1264 = vmatpush1.bf16.msra.mxu0 %v6000_v16  ;;  %v605_v55 = vld [vmem:[%s7248_s13 + $0xd0] sm:$0xff]  ;;  %v6043_v16 = vld [vmem:[#allocation7 + $0x280] ss:$24 sps:$4 sm:$0xff]  }
 0x11e   : > { %1265 = vmatprep.subr.bf16.mxu0 %v6001_v17  ;;  %v719_v61 = vpack.c.bf16 %v605_v55, %v603_v54  ;;  %v6048_v17 = vld [vmem:[#allocation7 + $0x2b4] ss:$24 sps:$4 sm:$0xff]  }
 0x120   : > { %1381 = vmatmul.mubr.bf16.vlgmr.msra.gmra.mrb[0].mxu1 %v7282_v62 }
 0x121   : > { %1390 = vmatprep.mubr.bf16.mxu1 %v7284_v0  ;;  %1266 = vmatpush1.bf16.msra.mxu0 %v6003_v18  ;;  %v6046_v18 = vld [vmem:[#allocation7 + $0x2b0] ss:$24 sps:$4 sm:$0xff]  }
 0x122   : > { %1461 = vmatprep.subr.bf16.mxu0 %v6006_v19  ;;  %v6051_v19 = vld [vmem:[#allocation7 + $0x2e4] ss:$24 sps:$4 sm:$0xff]  }
 0x124   : > { %1268 = vmatmul.mubr.bf16.vlgmr.msra.gmra.mrb[0].mxu0 %v7282_v62 }
 0x125   : > { %1277 = vmatprep.mubr.bf16.mxu0 %v7284_v0  ;;  %1462 = vmatpush1.bf16.msra.mxu0 %v6004_v22  ;;  %v6049_v22 = vld [vmem:[#allocation7 + $0x2e0] ss:$24 sps:$4 sm:$0xff]  }
 0x126   : > { %1463 = vmatprep.subr.bf16.mxu0 %v6009_v26 }
 0x128   : > { %1391 = vmatmul.mubr.bf16.gmra.mrb[4].mxu1 %v7292_v8 }
 0x129   : > { %1400 = vmatprep.mubr.bf16.mxu1 %v7294_v10  ;;  %1464 = vmatpush1.bf16.msra.mxu0 %v6007_v29 }
 0x12a   : > { %1465 = vmatprep.subr.bf16.mxu0 %v6012_v30 }
 0x12c   : > { %1278 = vmatmul.mubr.bf16.gmra.mrb[4].mxu0 %v7292_v8 }
 0x12d   : > { %1287 = vmatprep.mubr.bf16.mxu0 %v7294_v10  ;;  %1466 = vmatpush1.bf16.msra.mxu0 %v6010_v33 }
 0x12e   : > { %1467 = vmatprep.subr.bf16.mxu0 %v6015_v36 }
 0x130   : > { %1401 = vmatmul.mubr.bf16.gmra.mrb[8].mxu1 %v7302_v20 }
 0x131   : > { %1410 = vmatprep.mubr.bf16.mxu1 %v7304_v21  ;;  %1468 = vmatpush1.bf16.msra.mxu0 %v6013_v39 }
 0x132   : > { %1469 = vmatprep.subr.bf16.mxu0 %v6018_v40 }
 0x134   : > { %1288 = vmatmul.mubr.bf16.gmra.mrb[8].mxu0 %v7302_v20 }
 0x135   : > { %1297 = vmatprep.mubr.bf16.mxu0 %v7304_v21  ;;  %1470 = vmatpush1.bf16.msra.mxu0 %v6016_v43 }
 0x136   : > { %1471 = vmatprep.subr.bf16.mxu0 %v6021_v46 }
 0x138   : > { %1411 = vmatmul.mubr.bf16.gmra.mrb[12].mxu1 %v7313_v31 }
 0x139   : > { %1420 = vmatprep.mubr.bf16.mxu1 %v7316_v32  ;;  %1472 = vmatpush1.bf16.msra.mxu0 %v6019_v49 }
 0x13a   : > { %1473 = vmatprep.subr.bf16.mxu0 %v6024_v50 }
 0x13c   : > { %1298 = vmatmul.mubr.bf16.gmra.mrb[12].mxu0 %v7313_v31 }
 0x13d   : > { %1307 = vmatprep.mubr.bf16.mxu0 %v7316_v32  ;;  %1474 = vmatpush1.bf16.msra.mxu0 %v6022_v53 }
 0x13e   : > { %1475 = vmatprep.subr.bf16.mxu0 %v6027_v56 }
 0x140   : > { %1421 = vmatmul.mubr.bf16.gmra.mrb[16].mxu1 %v7325_v41 }
 0x141   : > { %1430 = vmatprep.mubr.bf16.mxu1 %v7328_v42  ;;  %1476 = vmatpush1.bf16.msra.mxu0 %v6025_v59 }
 0x142   : > { %1477 = vmatprep.subr.bf16.mxu0 %v6030_v60 }
 0x144   : > { %1308 = vmatmul.mubr.bf16.gmra.mrb[16].mxu0 %v7325_v41 }
 0x145   : > { %1317 = vmatprep.mubr.bf16.mxu0 %v7328_v42  ;;  %1478 = vmatpush1.bf16.msra.mxu0 %v6028_v1 }
 0x146   : > { %1479 = vmatprep.subr.bf16.mxu0 %v6033_v4 }
 0x148   : > { %1431 = vmatmul.mubr.bf16.gmra.mrb[20].mxu1 %v7337_v51 }
 0x149   : > { %1440 = vmatprep.mubr.bf16.mxu1 %v7340_v52  ;;  %1480 = vmatpush1.bf16.msra.mxu0 %v6031_v5 }
 0x14a   : > { %1481 = vmatprep.subr.bf16.mxu0 %v6036_v6 }
 0x14c   : > { %1318 = vmatmul.mubr.bf16.gmra.mrb[20].mxu0 %v7337_v51 }
 0x14d   : > { %1327 = vmatprep.mubr.bf16.mxu0 %v7340_v52  ;;  %1482 = vmatpush1.bf16.msra.mxu0 %v6034_v9 }
 0x14e   : > { %1483 = vmatprep.subr.bf16.mxu0 %v6039_v11 }
 0x150   : > { %1441 = vmatmul.mubr.bf16.gmra.mrb[24].mxu1 %v719_v61 }
 0x151   : > { %1450 = vmatprep.mubr.bf16.mxu1 %v722_v63  ;;  %1484 = vmatpush1.bf16.msra.mxu0 %v6037_v12 }
 0x152   : > { %1485 = vmatprep.subr.bf16.mxu0 %v6042_v13 }
 0x154   : > { %1328 = vmatmul.mubr.bf16.gmra.mrb[24].mxu0 %v719_v61 }
 0x155   : > { %1337 = vmatprep.mubr.bf16.mxu0 %v722_v63  ;;  %1486 = vmatpush1.bf16.msra.mxu0 %v6040_v14 }
 0x156   : > { %1487 = vmatprep.subr.bf16.mxu0 %v6045_v15 }
 0x158   : > { %1451 = vmatmul.mubr.bf16.gmra.mrb[28].mxu1 %v721_v7 }
 0x159   : > { %1488 = vmatpush1.bf16.msra.mxu0 %v6043_v16 }
 0x15a   : > { %1489 = vmatprep.subr.bf16.mxu0 %v6048_v17 }
 0x15c   : > { %1338 = vmatmul.mubr.bf16.gmra.mrb[28].mxu0 %v721_v7 }
 0x15d   : > { %1490 = vmatpush1.bf16.msra.mxu0 %v6046_v18  ;;  %1493 = vmatprep.mubr.bf16.mxu0 %v7274_v23  ;;  %v725_v23 = vlaneseq }
 0x15e   : > { %1491 = vmatprep.subr.bf16.mxu0 %v6051_v19 }
 0x161   : > { %1492 = vmatpush1.bf16.msra.mxu0 %v6049_v22 }
 0x164   : > { %1494 = vmatmul.mubr.bf16.vlgmr.msra.gmra.mrb[32].mxu0 %v7282_v62  ;;  %v7369_v62 = vshrl.u32 %v725_v23, 7 }
 0x165   : > { %1503 = vmatprep.mubr.bf16.mxu0 %v7284_v0 }
 0x166   : > { %v735_v0 = vsub.s32 2, %v7369_v62  ;;  %v7400_v44 = vsub.s32 1, %v7369_v62 }
 0x168   : > { %9590 = vst [vmem:[#allocation23_spill] sm:$0xff] %v7400_v44 }
 0x16c   : > { %1504 = vmatmul.mubr.bf16.gmra.mrb[36].mxu0 %v7292_v8  ;;  %v7375_v8 = vld [vmem:[%s9488_s3] sm:$0x3f] }
 0x16d   : > { %1513 = vmatprep.mubr.bf16.mxu0 %v7294_v10  ;;  %v739_v10 = vsub.s32 3, %v7369_v62  ;;  %v7408_v49 = vrot.slane %v7375_v8, %v7400_v44 }
 0x16f   : > { %v7386_v24 = vrot.slane %v7375_v8, %v739_v10 }
 0x174   : > { %1514 = vmatmul.mubr.bf16.gmra.mrb[40].mxu0 %v7302_v20  ;;  %v7381_v20 = vrot.slane %v7375_v8, %v735_v0 }
 0x175   : > { %1523 = vmatprep.mubr.bf16.mxu0 %v7304_v21 }
 0x17c   : > { %1524 = vmatmul.mubr.bf16.gmra.mrb[44].mxu0 %v7313_v31 }
 0x17d   : > { %1533 = vmatprep.mubr.bf16.mxu0 %v7316_v32 }
 0x184   : > { %1534 = vmatmul.mubr.bf16.gmra.mrb[48].mxu0 %v7325_v41 }
 0x185   : > { %1543 = vmatprep.mubr.bf16.mxu0 %v7328_v42  ;;  %v7397_v42 = vsub.s32 0, %v7369_v62 }
 0x187   : > { %9589 = vst [vmem:[#allocation22_spill] sm:$0xff] %v7397_v42  ;;  %v7404_v47 = vrot.slane %v7375_v8, %v7397_v42 }
 0x18c   : > { %1544 = vmatmul.mubr.bf16.gmra.mrb[52].mxu0 %v7337_v51 }
 0x18d   : > { %1553 = vmatprep.mubr.bf16.mxu0 %v7340_v52 }
 0x194   : > { %1554 = vmatmul.mubr.bf16.gmra.mrb[56].mxu0 %v719_v61 }
 0x195   : > { %1563 = vmatprep.mubr.bf16.mxu0 %v722_v63 }
 0x19c   : > { %1564 = vmatmul.mubr.bf16.gmra.mrb[60].mxu0 %v721_v7 }
 0x1f3   : > { %v1382_v21 = vpop.f32.mrb[0].mxu1 }
 0x1f4   : > { %v1384_v25 = vpop.f32.mrb[1].mxu1  ;;  %v1383_v27 = vadd.f32 %v1382_v21, %v7381_v20 }
 0x1f5   : > { %v1386_v26 = vpop.f32.mrb[2].mxu1  ;;  %v1385_v30 = vadd.f32 %v1384_v25, %v7386_v24 }
 0x1f6   : > { %v1387_v28 = vadd.f32 %v1386_v26, %v7381_v20  ;;  %v1388_v29 = vpop.f32.mrb[3].mxu1 }
 0x1f7   : > { %v1389_v31 = vadd.f32 %v1388_v29, %v7386_v24  ;;  %v1269_v54 = vpop.f32.mrb[0].mxu0 }
 0x1f8   : > { %v1589_v32 = vpack.c.bf16 %v1387_v28, %v1383_v27  ;;  %v1270_v57 = vadd.f32 %v1269_v54, %v7404_v47  ;;  %v1271_v58 = vpop.f32.mrb[1].mxu0 }
 0x1f9   : > { %v1991_v33 = vpack.c.bf16 %v1389_v31, %v1385_v30  ;;  %v1272_v60 = vadd.f32 %v1271_v58, %v7408_v49  ;;  %v1273_v61 = vpop.f32.mrb[2].mxu0 }
 0x1fa   : > { %5616 = vmatprep.subr.bf16.mxu1 %v1589_v32  ;;  %v1274_v1 = vadd.f32 %v1273_v61, %v7404_v47  ;;  %v1275_v2 = vpop.f32.mrb[3].mxu0 }
 0x1fb   : > { %v1392_v34 = vpop.f32.mrb[4].mxu1  ;;  %5617 = vmatpush3.bf16.xpose.msra.mxu1 %v1589_v32  ;;  %5680 = vmatprep.subr.bf16.mxu0 %v1991_v33  ;;  %v1276_v3 = vadd.f32 %v1275_v2, %v7408_v49 }
 0x1fc   : > { %v1394_v35 = vpop.f32.mrb[5].mxu1  ;;  %5681 = vmatpush3.bf16.xpose.msra.mxu0 %v1991_v33  ;;  %v1393_v37 = vadd.f32 %v1392_v34, %v7381_v20  ;;  %v1581_v5 = vpack.c.bf16 %v1274_v1, %v1270_v57 }
 0x1fd   : > { %v1396_v36 = vpop.f32.mrb[6].mxu1  ;;  %v1395_v40 = vadd.f32 %v1394_v35, %v7386_v24  ;;  %v1983_v7 = vpack.c.bf16 %v1276_v3, %v1272_v60 }
 0x1fe   : > { %v1397_v38 = vadd.f32 %v1396_v36, %v7381_v20  ;;  %v1398_v39 = vpop.f32.mrb[7].mxu1  ;;  %5632 = vmatprep.mubr.bf16.mxu1 %v1581_v5 }
 0x1ff   : > { %v1399_v41 = vadd.f32 %v1398_v39, %v7386_v24  ;;  %v1279_v14 = vpop.f32.mrb[4].mxu0  ;;  %5696 = vmatprep.mubr.bf16.mxu0 %v1983_v7 }
 0x200   : > { %v1590_v43 = vpack.c.bf16 %v1397_v38, %v1393_v37  ;;  %v7423_v17 = vadd.f32 %v1279_v14, %v7404_v47  ;;  %v1281_v18 = vpop.f32.mrb[5].mxu0 }
 0x201   : > { %v1992_v45 = vpack.c.bf16 %v1399_v41, %v1395_v40  ;;  %v7426_v22 = vadd.f32 %v1281_v18, %v7408_v49  ;;  %v1283_v23 = vpop.f32.mrb[6].mxu0 }
 0x202   : > { %5618 = vmatprep.subr.bf16.mxu1 %v1590_v43  ;;  %v7429_v25 = vadd.f32 %v1283_v23, %v7404_v47  ;;  %v1285_v26 = vpop.f32.mrb[7].mxu0 }
 0x203   : > { %v1402_v46 = vpop.f32.mrb[8].mxu1  ;;  %5619 = vmatpush3.bf16.xpose.msra.mxu1 %v1590_v43  ;;  %5682 = vmatprep.subr.bf16.mxu0 %v1992_v45  ;;  %v7432_v27 = vadd.f32 %v1285_v26, %v7408_v49 }
 0x204   : > { %v1404_v48 = vpop.f32.mrb[9].mxu1  ;;  %5683 = vmatpush3.bf16.xpose.msra.mxu0 %v1992_v45  ;;  %v1403_v51 = vadd.f32 %v1402_v46, %v7381_v20  ;;  %v1582_v29 = vpack.c.bf16 %v7429_v25, %v7423_v17 }
 0x205   : > { %v1406_v50 = vpop.f32.mrb[10].mxu1  ;;  %v1405_v55 = vadd.f32 %v1404_v48, %v7386_v24  ;;  %v1984_v31 = vpack.c.bf16 %v7432_v27, %v7426_v22  ;;  %v747_v27 = vsub.s32 5, %v7369_v62 }
 0x206   : > { %v1407_v52 = vadd.f32 %v1406_v50, %v7381_v20  ;;  %v1408_v53 = vpop.f32.mrb[11].mxu1 }
 0x207   : > { %v1409_v56 = vadd.f32 %v1408_v53, %v7386_v24  ;;  %v1289_v36 = vpop.f32.mrb[8].mxu0 }
 0x208   : > { %v1591_v59 = vpack.c.bf16 %v1407_v52, %v1403_v51  ;;  %v7443_v39 = vadd.f32 %v1289_v36, %v7404_v47  ;;  %v1291_v40 = vpop.f32.mrb[9].mxu0 }
 0x209   : > { %v1993_v63 = vpack.c.bf16 %v1409_v56, %v1405_v55  ;;  %v7446_v43 = vadd.f32 %v1291_v40, %v7408_v49  ;;  %v1293_v45 = vpop.f32.mrb[10].mxu0 }
 0x20a   : > { %5620 = vmatprep.subr.bf16.mxu1 %v1591_v59  ;;  %v7449_v48 = vadd.f32 %v1293_v45, %v7404_v47  ;;  %v1295_v50 = vpop.f32.mrb[11].mxu0 }
 0x20b   : > { %v1412_v4 = vpop.f32.mrb[12].mxu1  ;;  %5621 = vmatpush3.bf16.xpose.msra.mxu1 %v1591_v59  ;;  %5684 = vmatprep.subr.bf16.mxu0 %v1993_v63  ;;  %v7452_v51 = vadd.f32 %v1295_v50, %v7408_v49 }
 0x20c   : > { %v1414_v6 = vpop.f32.mrb[13].mxu1  ;;  %5685 = vmatpush3.bf16.xpose.msra.mxu0 %v1993_v63  ;;  %v1413_v11 = vadd.f32 %v1412_v4, %v7381_v20  ;;  %v1583_v53 = vpack.c.bf16 %v7449_v48, %v7443_v39 }
 0x20d   : > { %v1416_v9 = vpop.f32.mrb[14].mxu1  ;;  %v1415_v15 = vadd.f32 %v1414_v6, %v7386_v24  ;;  %v1985_v55 = vpack.c.bf16 %v7452_v51, %v7446_v43 }
 0x20e   : > { %v1417_v12 = vadd.f32 %v1416_v9, %v7381_v20  ;;  %v1418_v13 = vpop.f32.mrb[15].mxu1 }
 0x20f   : > { %v1419_v16 = vadd.f32 %v1418_v13, %v7386_v24  ;;  %v1299_v60 = vpop.f32.mrb[12].mxu0 }
 0x210   : > { %v1592_v19 = vpack.c.bf16 %v1417_v12, %v1413_v11  ;;  %v7463_v1 = vadd.f32 %v1299_v60, %v7404_v47  ;;  %v1301_v2 = vpop.f32.mrb[13].mxu0 }
 0x211   : > { %v1994_v21 = vpack.c.bf16 %v1419_v16, %v1415_v15  ;;  %v7466_v4 = vadd.f32 %v1301_v2, %v7408_v49  ;;  %v1303_v5 = vpop.f32.mrb[14].mxu0 }
 0x212   : > { %5622 = vmatprep.subr.bf16.mxu1 %v1592_v19  ;;  %v7469_v7 = vadd.f32 %v1303_v5, %v7404_v47  ;;  %v1305_v9 = vpop.f32.mrb[15].mxu0 }
 0x213   : > { %v1422_v28 = vpop.f32.mrb[16].mxu1  ;;  %5623 = vmatpush3.bf16.xpose.msra.mxu1 %v1592_v19  ;;  %5686 = vmatprep.subr.bf16.mxu0 %v1994_v21  ;;  %v7472_v11 = vadd.f32 %v1305_v9, %v7408_v49 }
 0x214   : > { %v1424_v30 = vpop.f32.mrb[17].mxu1  ;;  %5687 = vmatpush3.bf16.xpose.msra.mxu0 %v1994_v21  ;;  %v1423_v33 = vadd.f32 %v1422_v28, %v7381_v20  ;;  %v1584_v13 = vpack.c.bf16 %v7469_v7, %v7463_v1 }
 0x215   : > { %v1426_v32 = vpop.f32.mrb[18].mxu1  ;;  %v1425_v37 = vadd.f32 %v1424_v30, %v7386_v24  ;;  %v1986_v15 = vpack.c.bf16 %v7472_v11, %v7466_v4 }
 0x216   : > { %v1427_v34 = vadd.f32 %v1426_v32, %v7381_v20  ;;  %v1428_v35 = vpop.f32.mrb[19].mxu1 }
 0x217   : > { %v1429_v38 = vadd.f32 %v1428_v35, %v7386_v24  ;;  %v1309_v21 = vpop.f32.mrb[16].mxu0 }
 0x218   : > { %v1593_v41 = vpack.c.bf16 %v1427_v34, %v1423_v33  ;;  %v7483_v30 = vadd.f32 %v1309_v21, %v7404_v47  ;;  %v1311_v32 = vpop.f32.mrb[17].mxu0 }
 0x219   : > { %v1995_v46 = vpack.c.bf16 %v1429_v38, %v1425_v37  ;;  %v7486_v34 = vadd.f32 %v1311_v32, %v7408_v49  ;;  %v1313_v35 = vpop.f32.mrb[18].mxu0 }
 0x21a   : > { %5624 = vmatprep.subr.bf16.mxu1 %v1593_v41  ;;  %v1314_v37 = vadd.f32 %v1313_v35, %v7404_v47  ;;  %v1315_v38 = vpop.f32.mrb[19].mxu0 }
 0x21b   : > { %v1432_v52 = vpop.f32.mrb[20].mxu1  ;;  %5625 = vmatpush3.bf16.xpose.msra.mxu1 %v1593_v41  ;;  %5688 = vmatprep.subr.bf16.mxu0 %v1995_v46  ;;  %v1316_v40 = vadd.f32 %v1315_v38, %v7408_v49 }
 0x21c   : > { %v1434_v54 = vpop.f32.mrb[21].mxu1  ;;  %5689 = vmatpush3.bf16.xpose.msra.mxu0 %v1995_v46  ;;  %v1433_v57 = vadd.f32 %v1432_v52, %v7381_v20  ;;  %v1585_v45 = vpack.c.bf16 %v1314_v37, %v7483_v30 }
 0x21d   : > { %v1436_v56 = vpop.f32.mrb[22].mxu1  ;;  %v1435_v61 = vadd.f32 %v1434_v54, %v7386_v24  ;;  %v1987_v50 = vpack.c.bf16 %v1316_v40, %v7486_v34 }
 0x21e   : > { %v1437_v58 = vadd.f32 %v1436_v56, %v7381_v20  ;;  %v1438_v59 = vpop.f32.mrb[23].mxu1 }
 0x21f   : > { %v1439_v63 = vadd.f32 %v1438_v59, %v7386_v24 }
 0x220   : > { %v1594_v3 = vpack.c.bf16 %v1437_v58, %v1433_v57  ;;  %v1319_v58 = vpop.f32.mrb[20].mxu0 }
 0x221   : > { %v1996_v6 = vpack.c.bf16 %v1439_v63, %v1435_v61  ;;  %v1320_v61 = vadd.f32 %v1319_v58, %v7404_v47  ;;  %v1321_v63 = vpop.f32.mrb[21].mxu0 }
 0x222   : > { %5626 = vmatprep.subr.bf16.mxu1 %v1594_v3  ;;  %v1323_v5 = vpop.f32.mrb[22].mxu0 }
 0x223   : > { %v1442_v12 = vpop.f32.mrb[24].mxu1  ;;  %5627 = vmatpush3.bf16.xpose.msra.mxu1 %v1594_v3  ;;  %5690 = vmatprep.subr.bf16.mxu0 %v1996_v6  ;;  %v1322_v3 = vadd.f32 %v1321_v63, %v7408_v49  ;;  %v1324_v9 = vadd.f32 %v1323_v5, %v7404_v47 }
 0x224   : > { %v1444_v14 = vpop.f32.mrb[25].mxu1  ;;  %5691 = vmatpush3.bf16.xpose.msra.mxu0 %v1996_v6  ;;  %v1443_v18 = vadd.f32 %v1442_v12, %v7381_v20  ;;  %v1325_v12 = vpop.f32.mrb[23].mxu0 }
 0x225   : > { %v1446_v16 = vpop.f32.mrb[26].mxu1  ;;  %v1445_v26 = vadd.f32 %v1444_v14, %v7386_v24  ;;  %v1586_v14 = vpack.c.bf16 %v1324_v9, %v1320_v61 }
 0x226   : > { %v1447_v19 = vadd.f32 %v1446_v16, %v7381_v20  ;;  %v1448_v23 = vpop.f32.mrb[27].mxu1 }
 0x227   : > { %v1449_v28 = vadd.f32 %v1448_v23, %v7386_v24 }
 0x228   : > { %v1595_v33 = vpack.c.bf16 %v1447_v19, %v1443_v18 }
 0x229   : > { %v1997_v36 = vpack.c.bf16 %v1449_v28, %v1445_v26 }
 0x22a   : > { %5628 = vmatprep.subr.bf16.mxu1 %v1595_v33 }
 0x22b   : > { %v1452_v41 = vpop.f32.mrb[28].mxu1  ;;  %5629 = vmatpush3.bf16.xpose.msra.mxu1 %v1595_v33  ;;  %5692 = vmatprep.subr.bf16.mxu0 %v1997_v36 }
 0x22c   : > { %v1454_v46 = vpop.f32.mrb[29].mxu1  ;;  %5693 = vmatpush3.bf16.xpose.msra.mxu0 %v1997_v36  ;;  %v1453_v54 = vadd.f32 %v1452_v41, %v7381_v20 }
 0x22d   : > { %v1456_v52 = vpop.f32.mrb[30].mxu1  ;;  %v1455_v59 = vadd.f32 %v1454_v46, %v7386_v24 }
 0x22e   : > { %v1457_v56 = vadd.f32 %v1456_v52, %v7381_v20  ;;  %v1458_v57 = vpop.f32.mrb[31].mxu1  ;;  %v1326_v20 = vadd.f32 %v1325_v12, %v7408_v49 }
 0x22f   : > { %v1459_v60 = vadd.f32 %v1458_v57, %v7386_v24  ;;  %v1329_v24 = vpop.f32.mrb[24].mxu0 }
 0x230   : > { %v1596_v2 = vpack.c.bf16 %v1457_v56, %v1453_v54  ;;  %v1988_v16 = vpack.c.bf16 %v1326_v20, %v1322_v3  ;;  %v1330_v18 = vadd.f32 %v1329_v24, %v7404_v47  ;;  %v1331_v19 = vpop.f32.mrb[25].mxu0 }
 0x231   : > { %v1998_v6 = vpack.c.bf16 %v1459_v60, %v1455_v59  ;;  %v1332_v23 = vadd.f32 %v1331_v19, %v7408_v49  ;;  %v1333_v21 = vpop.f32.mrb[26].mxu0 }
 0x232   : > { %5630 = vmatprep.subr.bf16.mxu1 %v1596_v2  ;;  %v1334_v26 = vadd.f32 %v1333_v21, %v7404_v47  ;;  %v1335_v28 = vpop.f32.mrb[27].mxu0 }
 0x233   : > { %5631 = vmatpush3.bf16.xpose.msra.mxu1 %v1596_v2  ;;  %5694 = vmatprep.subr.bf16.mxu0 %v1998_v6  ;;  %v1336_v30 = vadd.f32 %v1335_v28, %v7408_v49  ;;  %v1339_v34 = vpop.f32.mrb[28].mxu0 }
 0x234   : > { %5695 = vmatpush3.bf16.xpose.msra.mxu0 %v1998_v6  ;;  %v1587_v32 = vpack.c.bf16 %v1334_v26, %v1330_v18  ;;  %v1340_v17 = vadd.f32 %v1339_v34, %v7404_v47  ;;  %v1341_v25 = vpop.f32.mrb[29].mxu0 }
 0x235   : > { %v1989_v33 = vpack.c.bf16 %v1336_v30, %v1332_v23  ;;  %v1342_v35 = vadd.f32 %v1341_v25, %v7408_v49  ;;  %v1343_v22 = vpop.f32.mrb[30].mxu0 }
 0x236   : > { %v1345_v39 = vpop.f32.mrb[31].mxu0 }
 0x237   : > { %v1346_v43 = vadd.f32 %v1345_v39, %v7408_v49 }
 0x23a   : > { %5633 = vmatmul.mubr.bf16.vlgmr.msra.gmra.mrb[32].mxu1 %v1582_v29  ;;  %v743_v29 = vsub.s32 4, %v7369_v62 }
 0x23b   : > { %5697 = vmatmul.mubr.bf16.vlgmr.msra.gmra.mrb[64].mxu0 %v1984_v31  ;;  %5636 = vmatprep.mubr.bf16.mxu1 %v1583_v53  ;;  %v1344_v31 = vadd.f32 %v1343_v22, %v7404_v47  ;;  %v1990_v53 = vpack.c.bf16 %v1346_v43, %v1342_v35  ;;  %v7532_v47 = vrot.slane %v7375_v8, %v747_v27 }
 0x23c   : > { %5700 = vmatprep.mubr.bf16.mxu0 %v1985_v55  ;;  %v7529_v51 = vrot.slane %v7375_v8, %v743_v29  ;;  %v1495_v55 = vpop.f32.mrb[32].mxu0 }
 0x23d   : > { %v1588_v48 = vpack.c.bf16 %v1344_v31, %v1340_v17  ;;  %v1497_v7 = vpop.f32.mrb[33].mxu0 }
 0x23e   : > { %v1496_v1 = vadd.f32 %v1495_v55, %v7529_v51  ;;  %v1498_v49 = vadd.f32 %v1497_v7, %v7532_v47 }
 0x242   : > { %5637 = vmatmul.mubr.bf16.gmra.mrb[36].mxu1 %v1584_v13  ;;  %v1499_v13 = vpop.f32.mrb[34].mxu0 }
 0x243   : > { %5701 = vmatmul.mubr.bf16.gmra.mrb[68].mxu0 %v1986_v15  ;;  %5640 = vmatprep.mubr.bf16.mxu1 %v1585_v45  ;;  %v1500_v4 = vadd.f32 %v1499_v13, %v7529_v51  ;;  %v1501_v11 = vpop.f32.mrb[35].mxu0 }
 0x244   : > { %5704 = vmatprep.mubr.bf16.mxu0 %v1987_v50  ;;  %v1502_v15 = vadd.f32 %v1501_v11, %v7532_v47  ;;  %v1505_v8 = vpop.f32.mrb[36].mxu0 }
 0x245   : > { %v1878_v36 = vpack.c.bf16 %v1500_v4, %v1496_v1  ;;  %v1506_v38 = vadd.f32 %v1505_v8, %v7529_v51  ;;  %v1507_v40 = vpop.f32.mrb[37].mxu0 }
 0x246   : > { %v2280_v37 = vpack.c.bf16 %v1502_v15, %v1498_v49  ;;  %v1508_v41 = vadd.f32 %v1507_v40, %v7532_v47  ;;  %v1509_v45 = vpop.f32.mrb[38].mxu0 }
 0x247   : > { %5648 = vmatprep.subr.bf16.mxu1 %v1878_v36  ;;  %v1510_v46 = vadd.f32 %v1509_v45, %v7529_v51  ;;  %v1511_v50 = vpop.f32.mrb[39].mxu0 }
 0x248   : > { %5712 = vmatprep.subr.bf16.mxu0 %v2280_v37  ;;  %5649 = vmatpush3.bf16.msra.mxu1 %v1878_v36  ;;  %v1512_v52 = vadd.f32 %v1511_v50, %v7532_v47  ;;  %v1515_v57 = vpop.f32.mrb[40].mxu0 }
 0x249   : > { %5713 = vmatpush3.bf16.msra.mxu0 %v2280_v37  ;;  %v1879_v54 = vpack.c.bf16 %v1510_v46, %v1506_v38  ;;  %v1516_v58 = vadd.f32 %v1515_v57, %v7529_v51  ;;  %v1517_v59 = vpop.f32.mrb[41].mxu0 }
 0x24a   : > { %5641 = vmatmul.mubr.bf16.gmra.mrb[40].mxu1 %v1586_v14  ;;  %v2281_v56 = vpack.c.bf16 %v1512_v52, %v1508_v41  ;;  %v1518_v60 = vadd.f32 %v1517_v59, %v7532_v47  ;;  %v1519_v61 = vpop.f32.mrb[42].mxu0 }
 0x24b   : > { %5705 = vmatmul.mubr.bf16.gmra.mrb[72].mxu0 %v1988_v16  ;;  %5644 = vmatprep.mubr.bf16.mxu1 %v1587_v32  ;;  %v1520_v63 = vadd.f32 %v1519_v61, %v7529_v51  ;;  %v1521_v2 = vpop.f32.mrb[43].mxu0 }
 0x24c   : > { %5708 = vmatprep.mubr.bf16.mxu0 %v1989_v33  ;;  %5650 = vmatprep.subr.bf16.mxu1 %v1879_v54  ;;  %v1522_v3 = vadd.f32 %v1521_v2, %v7532_v47  ;;  %v7568_v2 = vld [vmem:[%s513_s9] ss:$0 sm:$0xff] }
 0x24d   : > { %5714 = vmatprep.subr.bf16.mxu0 %v2281_v56  ;;  %5651 = vmatpush3.bf16.msra.mxu1 %v1879_v54  ;;  %v1880_v5 = vpack.c.bf16 %v1520_v63, %v1516_v58 }
 0x24e   : > { %5715 = vmatpush3.bf16.msra.mxu0 %v2281_v56  ;;  %v2282_v6 = vpack.c.bf16 %v1522_v3, %v1518_v60 }
 0x24f   : > { %5652 = vmatprep.subr.bf16.mxu1 %v1880_v5  ;;  %v1525_v9 = vpop.f32.mrb[44].mxu0 }
 0x250   : > { %5716 = vmatprep.subr.bf16.mxu0 %v2282_v6  ;;  %v1526_v12 = vadd.f32 %v1525_v9, %v7529_v51  ;;  %v1527_v20 = vpop.f32.mrb[45].mxu0 }
 0x251   : > { %5653 = vmatpush3.bf16.msra.mxu1 %v1880_v5  ;;  %v1528_v14 = vadd.f32 %v1527_v20, %v7532_v47  ;;  %v1529_v16 = vpop.f32.mrb[46].mxu0 }
 0x252   : > { %5645 = vmatmul.mubr.bf16.gmra.mrb[44].mxu1 %v1588_v48  ;;  %5717 = vmatpush3.bf16.msra.mxu0 %v2282_v6  ;;  %v1530_v24 = vadd.f32 %v1529_v16, %v7529_v51  ;;  %v1531_v18 = vpop.f32.mrb[47].mxu0 }
 0x253   : > { %5709 = vmatmul.mubr.bf16.gmra.mrb[76].mxu0 %v1990_v53  ;;  %v1532_v19 = vadd.f32 %v1531_v18, %v7532_v47 }
 0x254   : > { %v1881_v23 = vpack.c.bf16 %v1530_v24, %v1526_v12 }
 0x255   : > { %v2283_v21 = vpack.c.bf16 %v1532_v19, %v1528_v14 }
 0x256   : > { %5654 = vmatprep.subr.bf16.mxu1 %v1881_v23 }
 0x257   : > { %v1535_v26 = vpop.f32.mrb[48].mxu0  ;;  %5718 = vmatprep.subr.bf16.mxu0 %v2283_v21  ;;  %5655 = vmatpush3.bf16.msra.mxu1 %v1881_v23 }
 0x258   : > { %v1536_v28 = vadd.f32 %v1535_v26, %v7529_v51  ;;  %v1537_v30 = vpop.f32.mrb[49].mxu0  ;;  %5719 = vmatpush3.bf16.msra.mxu0 %v2283_v21 }
 0x259   : > { %v1538_v32 = vadd.f32 %v1537_v30, %v7532_v47  ;;  %v1539_v33 = vpop.f32.mrb[50].mxu0 }
 0x25a   : > { %v1540_v34 = vadd.f32 %v1539_v33, %v7529_v51  ;;  %v1541_v17 = vpop.f32.mrb[51].mxu0 }
 0x25b   : > { %v1542_v25 = vadd.f32 %v1541_v17, %v7532_v47 }
 0x25c   : > { %v1882_v29 = vpack.c.bf16 %v1540_v34, %v1536_v28 }
 0x25d   : > { %v2284_v35 = vpack.c.bf16 %v1542_v25, %v1538_v32 }
 0x25e   : > { %5656 = vmatprep.subr.bf16.mxu1 %v1882_v29 }
 0x25f   : > { %v1545_v22 = vpop.f32.mrb[52].mxu0  ;;  %5720 = vmatprep.subr.bf16.mxu0 %v2284_v35  ;;  %5657 = vmatpush3.bf16.msra.mxu1 %v1882_v29 }
 0x260   : > { %v1546_v27 = vadd.f32 %v1545_v22, %v7529_v51  ;;  %v1547_v31 = vpop.f32.mrb[53].mxu0  ;;  %5721 = vmatpush3.bf16.msra.mxu0 %v2284_v35 }
 0x261   : > { %v1548_v39 = vadd.f32 %v1547_v31, %v7532_v47  ;;  %v1549_v43 = vpop.f32.mrb[54].mxu0 }
 0x262   : > { %v1550_v48 = vadd.f32 %v1549_v43, %v7529_v51  ;;  %v1551_v53 = vpop.f32.mrb[55].mxu0 }
 0x263   : > { %v1552_v55 = vadd.f32 %v1551_v53, %v7532_v47 }
 0x264   : > { %v1883_v1 = vpack.c.bf16 %v1550_v48, %v1546_v27 }
 0x265   : > { %v2285_v7 = vpack.c.bf16 %v1552_v55, %v1548_v39 }
 0x266   : > { %5658 = vmatprep.subr.bf16.mxu1 %v1883_v1 }
 0x267   : > { %v1555_v49 = vpop.f32.mrb[56].mxu0  ;;  %5722 = vmatprep.subr.bf16.mxu0 %v2285_v7  ;;  %5659 = vmatpush3.bf16.msra.mxu1 %v1883_v1 }
 0x268   : > { %v1556_v13 = vadd.f32 %v1555_v49, %v7529_v51  ;;  %v1557_v4 = vpop.f32.mrb[57].mxu0  ;;  %5723 = vmatpush3.bf16.msra.mxu0 %v2285_v7 }
 0x269   : > { %v1558_v11 = vadd.f32 %v1557_v4, %v7532_v47  ;;  %v1559_v15 = vpop.f32.mrb[58].mxu0 }
 0x26a   : > { %v1560_v36 = vadd.f32 %v1559_v15, %v7529_v51  ;;  %v1561_v37 = vpop.f32.mrb[59].mxu0 }
 0x26b   : > { %v1562_v8 = vadd.f32 %v1561_v37, %v7532_v47 }
 0x26c   : > { %v1884_v38 = vpack.c.bf16 %v1560_v36, %v1556_v13 }
 0x26d   : > { %v2286_v40 = vpack.c.bf16 %v1562_v8, %v1558_v11 }
 0x26e   : > { %5660 = vmatprep.subr.bf16.mxu1 %v1884_v38 }
 0x26f   : > { %v1565_v41 = vpop.f32.mrb[60].mxu0  ;;  %5724 = vmatprep.subr.bf16.mxu0 %v2286_v40  ;;  %5661 = vmatpush3.bf16.msra.mxu1 %v1884_v38 }
 0x270   : > { %v1566_v45 = vadd.f32 %v1565_v41, %v7529_v51  ;;  %v1567_v46 = vpop.f32.mrb[61].mxu0  ;;  %5725 = vmatpush3.bf16.msra.mxu0 %v2286_v40 }
 0x271   : > { %v1568_v50 = vadd.f32 %v1567_v46, %v7532_v47  ;;  %v1569_v52 = vpop.f32.mrb[62].mxu0 }
 0x272   : > { %v1570_v54 = vadd.f32 %v1569_v52, %v7529_v51  ;;  %v1571_v56 = vpop.f32.mrb[63].mxu0 }
 0x273   : > { %v1572_v57 = vadd.f32 %v1571_v56, %v7532_v47 }
 0x274   : > { %v1885_v58 = vpack.c.bf16 %v1570_v54, %v1566_v45 }
 0x275   : > { %v2287_v59 = vpack.c.bf16 %v1572_v57, %v1568_v50 }
 0x276   : > { %5662 = vmatprep.subr.bf16.mxu1 %v1885_v58 }
 0x277   : > { %5726 = vmatprep.subr.bf16.mxu0 %v2287_v59  ;;  %5663 = vmatpush3.bf16.msra.mxu1 %v1885_v58 }
 0x278   : > { %5727 = vmatpush3.bf16.msra.mxu0 %v2287_v59 }
 0x30d   : > { %v5634_v60 = vpop.f32.mrb[32].mxu1 }
 0x30e   : > { %v1631_v61 = vpop.f32.mrb[33].mxu1  ;;  %v5698_v63 = vpop.f32.mrb[64].mxu0  ;;  %v1696_v25 = vmul.f32 0.088388346, %v5634_v60 }
 0x30f   : > { %v1694_v3 = vmul.f32 0.088388346, %v1631_v61  ;;  %v2098_v5 = vmul.f32 0.088388346, %v5698_v63  ;;  %v5635_v6 = vpop.f32.mrb[34].mxu1  ;;  %v2033_v9 = vpop.f32.mrb[65].mxu0 }
 0x310   : > { %v1634_v51 = vpop.f32.mrb[35].mxu1  ;;  %v5699_v12 = vpop.f32.mrb[66].mxu0  ;;  %v2096_v20 = vmul.f32 0.088388346, %v2033_v9  ;;  %v1697_v29 = vmul.f32 0.088388346, %v5635_v6  ;;  %v7595_v43 = vadd.f32 %v7568_v2, %v1696_v25 }
 0x311   : > { %v1695_v47 = vmul.f32 0.088388346, %v1634_v51  ;;  %v2036_v14 = vpop.f32.mrb[67].mxu0  ;;  %v7571_v16 = vadd.f32 %v7568_v2, %v2098_v5  ;;  %v7574_v24 = vadd.f32 %v7568_v2, %v1694_v3  ;;  %v2099_v18 = vmul.f32 0.088388346, %v5699_v12 }
 0x312   : > { %v2097_v19 = vmul.f32 0.088388346, %v2036_v14  ;;  %v7579_v23 = vadd.f32 %v7568_v2, %v2096_v20  ;;  %v7598_v48 = vadd.f32 %v7568_v2, %v1697_v29 }
 0x313   : > { %2132 = vmax.xlane.f32.xlu0 %v7571_v16  ;;  %1726 = vmax.xlane.f32.xlu1 %v7574_v24  ;;  %v7582_v21 = vadd.f32 %v7568_v2, %v1695_v47  ;;  %v7590_v22 = vadd.f32 %v7568_v2, %v2099_v18 }
 0x314   : > { %v7587_v35 = vadd.f32 %v7568_v2, %v2097_v19 }
 0x315   : > { %v5638_v26 = vpop.f32.mrb[36].mxu1 }
 0x316   : > { %v5702_v28 = vpop.f32.mrb[68].mxu0  ;;  %v1647_v30 = vpop.f32.mrb[37].mxu1  ;;  %v1700_v59 = vmul.f32 0.088388346, %v5638_v26 }
 0x317   : > { %2128 = vmax.xlane.f32.xlu0 %v7579_v23  ;;  %1728 = vmax.xlane.f32.xlu1 %v7582_v21  ;;  %v2049_v32 = vpop.f32.mrb[69].mxu0  ;;  %v5639_v33 = vpop.f32.mrb[38].mxu1  ;;  %v1698_v31 = vmul.f32 0.088388346, %v1647_v30  ;;  %v2102_v36 = vmul.f32 0.088388346, %v5702_v28 }
 0x318   : > { %v5703_v34 = vpop.f32.mrb[70].mxu0  ;;  %v1650_v17 = vpop.f32.mrb[39].mxu1  ;;  %v2100_v38 = vmul.f32 0.088388346, %v2049_v32  ;;  %v1701_v60 = vmul.f32 0.088388346, %v5639_v33  ;;  %v7627_v9 = vadd.f32 %v7568_v2, %v1700_v59 }
 0x319   : > { %v2052_v27 = vpop.f32.mrb[71].mxu0  ;;  %v1699_v39 = vmul.f32 0.088388346, %v1650_v17  ;;  %v7603_v7 = vadd.f32 %v7568_v2, %v1698_v31  ;;  %v2103_v37 = vmul.f32 0.088388346, %v5703_v34  ;;  %v7611_v41 = vadd.f32 %v7568_v2, %v2102_v36 }
 0x31a   : > { %v2101_v40 = vmul.f32 0.088388346, %v2052_v27  ;;  %v7619_v61 = vadd.f32 %v7568_v2, %v2100_v38  ;;  %v7630_v51 = vadd.f32 %v7568_v2, %v1701_v60 }
 0x31b   : > { %2130 = vmax.xlane.f32.xlu0 %v7587_v35  ;;  %2134 = vmax.xlane.f32.xlu1 %v7590_v22  ;;  %v7606_v49 = vadd.f32 %v7568_v2, %v1699_v39  ;;  %v7614_v45 = vadd.f32 %v7568_v2, %v2103_v37 }
 0x31c   : > { %v7622_v63 = vadd.f32 %v7568_v2, %v2101_v40 }
 0x31d   : > { %v5642_v53 = vpop.f32.mrb[40].mxu1 }
 0x31e   : > { %v5706_v55 = vpop.f32.mrb[72].mxu0  ;;  %v1663_v1 = vpop.f32.mrb[41].mxu1  ;;  %v1704_v30 = vmul.f32 0.088388346, %v5642_v53 }
 0x31f   : > { %1730 = vmax.xlane.f32.xlu0 %v7595_v43  ;;  %1732 = vmax.xlane.f32.xlu1 %v7598_v48  ;;  %v2065_v13 = vpop.f32.mrb[73].mxu0  ;;  %v5643_v4 = vpop.f32.mrb[42].mxu1  ;;  %v1702_v5 = vmul.f32 0.088388346, %v1663_v1  ;;  %v2106_v47 = vmul.f32 0.088388346, %v5706_v55 }
 0x320   : > { %v5707_v11 = vpop.f32.mrb[74].mxu0  ;;  %v1666_v15 = vpop.f32.mrb[43].mxu1  ;;  %v2104_v18 = vmul.f32 0.088388346, %v2065_v13  ;;  %v1705_v32 = vmul.f32 0.088388346, %v5643_v4  ;;  %v7659_v29 = vadd.f32 %v7568_v2, %v1704_v30 }
 0x321   : > { %v2068_v8 = vpop.f32.mrb[75].mxu0  ;;  %v1703_v6 = vmul.f32 0.088388346, %v1666_v15  ;;  %v7635_v12 = vadd.f32 %v7568_v2, %v1702_v5  ;;  %v2107_v14 = vmul.f32 0.088388346, %v5707_v11  ;;  %v7643_v26 = vadd.f32 %v7568_v2, %v2106_v47 }
 0x322   : > { %v2105_v19 = vmul.f32 0.088388346, %v2068_v8  ;;  %v7651_v33 = vadd.f32 %v7568_v2, %v2104_v18  ;;  %v7662_v27 = vadd.f32 %v7568_v2, %v1705_v32 }
 0x323   : > { %1734 = vmax.xlane.f32.xlu0 %v7603_v7  ;;  %1736 = vmax.xlane.f32.xlu1 %v7606_v49  ;;  %v7638_v20 = vadd.f32 %v7568_v2, %v1703_v6  ;;  %v7646_v28 = vadd.f32 %v7568_v2, %v2107_v14 }
 0x324   : > { %v7654_v34 = vadd.f32 %v7568_v2, %v2105_v19 }
 0x325   : > { %v5646_v46 = vpop.f32.mrb[44].mxu1 }
 0x326   : > { %v5710_v50 = vpop.f32.mrb[76].mxu0  ;;  %v1679_v52 = vpop.f32.mrb[45].mxu1  ;;  %v1708_v15 = vmul.f32 0.088388346, %v5646_v46 }
 0x327   : > { %2140 = vmax.xlane.f32.xlu0 %v7611_v41  ;;  %2142 = vmax.xlane.f32.xlu1 %v7614_v45  ;;  %v2081_v54 = vpop.f32.mrb[77].mxu0  ;;  %v5647_v56 = vpop.f32.mrb[46].mxu1  ;;  %v1706_v17 = vmul.f32 0.088388346, %v1679_v52  ;;  %v2110_v53 = vmul.f32 0.088388346, %v5710_v50 }
 0x328   : > { %v5711_v57 = vpop.f32.mrb[78].mxu0  ;;  %v1682_v58 = vpop.f32.mrb[47].mxu1  ;;  %v2108_v1 = vmul.f32 0.088388346, %v2081_v54  ;;  %v1709_v36 = vmul.f32 0.088388346, %v5647_v56  ;;  %v7691_v38 = vadd.f32 %v7568_v2, %v1708_v15 }
 0x329   : > { %v2084_v3 = vpop.f32.mrb[79].mxu0  ;;  %v1707_v25 = vmul.f32 0.088388346, %v1682_v58  ;;  %v7667_v31 = vadd.f32 %v7568_v2, %v1706_v17  ;;  %v2111_v55 = vmul.f32 0.088388346, %v5711_v57  ;;  %v7675_v4 = vadd.f32 %v7568_v2, %v2110_v53 }
 0x32a   : > { %v2109_v13 = vmul.f32 0.088388346, %v2084_v3  ;;  %v7683_v37 = vadd.f32 %v7568_v2, %v2108_v1  ;;  %v7694_v40 = vadd.f32 %v7568_v2, %v1709_v36 }
 0x32b   : > { %2136 = vmax.xlane.f32.xlu0 %v7619_v61  ;;  %2138 = vmax.xlane.f32.xlu1 %v7622_v63  ;;  %v7670_v39 = vadd.f32 %v7568_v2, %v1707_v25  ;;  %v7678_v11 = vadd.f32 %v7568_v2, %v2111_v55 }
 0x32c   : > { %v7686_v8 = vadd.f32 %v7568_v2, %v2109_v13 }
 0x32f   : > { %1738 = vmax.xlane.f32.xlu0 %v7627_v9  ;;  %1740 = vmax.xlane.f32.xlu1 %v7630_v51 }
 0x333   : > { %1742 = vmax.xlane.f32.xlu0 %v7635_v12  ;;  %1744 = vmax.xlane.f32.xlu1 %v7638_v20 }
 0x337   : > { %2148 = vmax.xlane.f32.xlu0 %v7643_v26  ;;  %2150 = vmax.xlane.f32.xlu1 %v7646_v28 }
 0x33b   : > { %2144 = vmax.xlane.f32.xlu0 %v7651_v33  ;;  %2146 = vmax.xlane.f32.xlu1 %v7654_v34 }
 0x33f   : > { %1746 = vmax.xlane.f32.xlu0 %v7659_v29  ;;  %1748 = vmax.xlane.f32.xlu1 %v7662_v27 }
 0x343   : > { %1750 = vmax.xlane.f32.xlu0 %v7667_v31  ;;  %1752 = vmax.xlane.f32.xlu1 %v7670_v39 }
 0x347   : > { %2156 = vmax.xlane.f32.xlu0 %v7675_v4  ;;  %2158 = vmax.xlane.f32.xlu1 %v7678_v11 }
 0x34b   : > { %2152 = vmax.xlane.f32.xlu0 %v7683_v37  ;;  %2154 = vmax.xlane.f32.xlu1 %v7686_v8 }
 0x34f   : > { %1754 = vmax.xlane.f32.xlu0 %v7691_v38  ;;  %1756 = vmax.xlane.f32.xlu1 %v7694_v40 }
 0x3a0   : > { %v2133_v46 = vpop.xlane.xlu0 %2132  ;;  %v1727_v50 = vpop.xlane.xlu1 %1726 }
 0x3a1   : > { %v2162_v52 = vsub.f32 %v7571_v16, %v2133_v46  ;;  %v1758_v54 = vsub.f32 %v7574_v24, %v1727_v50 }
 0x3a3   : > { %v1774_v56 = vmul.f32 1.442695, %v1758_v54  ;;  %v2180_v59 = vmul.f32 1.442695, %v2162_v52 }
 0x3a4   : > { %v2129_v57 = vpop.xlane.xlu0 %2128  ;;  %v1729_v58 = vpop.xlane.xlu1 %1728 }
 0x3a5   : > { %v2160_v60 = vsub.f32 %v7579_v23, %v2129_v57  ;;  %v1759_v3 = vsub.f32 %v7582_v21, %v1729_v58  ;;  %6292 = vpow2.f32 %v1774_v56 }
 0x3a6   : > { %6294 = vpow2.f32 %v2180_v59 }
 0x3a7   : > { %v1776_v2 = vmul.f32 1.442695, %v1759_v3  ;;  %v2176_v47 = vmul.f32 1.442695, %v2160_v60 }
 0x3a8   : > { %v2131_v5 = vpop.xlane.xlu0 %2130  ;;  %v2135_v6 = vpop.xlane.xlu1 %2134 }
 0x3a9   : > { %v2163_v14 = vsub.f32 %v7590_v22, %v2135_v6  ;;  %6296 = vpow2.f32 %v1776_v2  ;;  %v2161_v16 = vsub.f32 %v7587_v35, %v2131_v5 }
 0x3aa   : > { %6298 = vpow2.f32 %v2176_v47 }
 0x3ab   : > { %v2182_v24 = vmul.f32 1.442695, %v2163_v14  ;;  %v2178_v23 = vmul.f32 1.442695, %v2161_v16 }
 0x3ac   : > { %v1731_v18 = vpop.xlane.xlu0 %1730  ;;  %v1733_v19 = vpop.xlane.xlu1 %1732 }
 0x3ad   : > { %v1760_v30 = vsub.f32 %v7595_v43, %v1731_v18  ;;  %6300 = vpow2.f32 %v2182_v24  ;;  %v1761_v21 = vsub.f32 %v7598_v48, %v1733_v19 }
 0x3af   : > { %v1778_v32 = vmul.f32 1.442695, %v1760_v30  ;;  %v7706_v17 = vpop.eup %6292  ;;  %v1780_v35 = vmul.f32 1.442695, %v1761_v21 }
 0x3b0   : > { %v1735_v25 = vpop.xlane.xlu0 %1734  ;;  %v1737_v53 = vpop.xlane.xlu1 %1736  ;;  %1806 = vadd.xlane.f32.xlu0 %v7706_v17 }
 0x3b1   : > { %6302 = vpow2.f32 %v1778_v32  ;;  %v1762_v22 = vsub.f32 %v7603_v7, %v1735_v25  ;;  %v1763_v55 = vsub.f32 %v7606_v49, %v1737_v53  ;;  %v7711_v1 = vpop.eup %6294 }
 0x3b2   : > { %6304 = vpow2.f32 %v2178_v23 }
 0x3b3   : > { %v1782_v43 = vmul.f32 1.442695, %v1762_v22  ;;  %v7713_v13 = vpop.eup %6296  ;;  %v1784_v7 = vmul.f32 1.442695, %v1763_v55 }
 0x3b4   : > { %v2141_v48 = vpop.xlane.xlu0 %2140  ;;  %v2143_v15 = vpop.xlane.xlu1 %2142  ;;  %2212 = vadd.xlane.f32.xlu0 %v7711_v1  ;;  %1808 = vadd.xlane.f32.xlu1 %v7713_v13 }
 0x3b5   : > { %6306 = vpow2.f32 %v1782_v43  ;;  %v2166_v36 = vsub.f32 %v7611_v41, %v2141_v48  ;;  %v2167_v46 = vsub.f32 %v7614_v45, %v2143_v15  ;;  %v7719_v50 = vpop.eup %6298 }
 0x3b6   : > { %6308 = vpow2.f32 %v1780_v35 }
 0x3b7   : > { %v2188_v49 = vmul.f32 1.442695, %v2166_v36  ;;  %v7721_v52 = vpop.eup %6300  ;;  %v2190_v41 = vmul.f32 1.442695, %v2167_v46 }
 0x3b8   : > { %v2137_v54 = vpop.xlane.xlu0 %2136  ;;  %v2139_v56 = vpop.xlane.xlu1 %2138  ;;  %2208 = vadd.xlane.f32.xlu0 %v7719_v50  ;;  %2214 = vadd.xlane.f32.xlu1 %v7721_v52 }
 0x3b9   : > { %6310 = vpow2.f32 %v2188_v49  ;;  %v2164_v57 = vsub.f32 %v7619_v61, %v2137_v54  ;;  %v2165_v58 = vsub.f32 %v7622_v63, %v2139_v56 }
 0x3ba   : > { %6312 = vpow2.f32 %v1784_v7 }
 0x3bb   : > { %v7727_v59 = vpop.eup %6302  ;;  %v2184_v45 = vmul.f32 1.442695, %v2164_v57  ;;  %v2186_v61 = vmul.f32 1.442695, %v2165_v58 }
 0x3bc   : > { %v7729_v60 = vpop.eup %6304  ;;  %v1739_v3 = vpop.xlane.xlu0 %1738  ;;  %1810 = vadd.xlane.f32.xlu0 %v7727_v59 }
 0x3bd   : > { %v1741_v2 = vpop.xlane.xlu1 %1740  ;;  %6314 = vpow2.f32 %v2184_v45  ;;  %v1764_v5 = vsub.f32 %v7627_v9, %v1739_v3  ;;  %2210 = vadd.xlane.f32.xlu1 %v7729_v60 }
 0x3be   : > { %6316 = vpow2.f32 %v2190_v41  ;;  %v1765_v6 = vsub.f32 %v7630_v51, %v1741_v2 }
 0x3bf   : > { %v7735_v47 = vpop.eup %6306  ;;  %v1786_v63 = vmul.f32 1.442695, %v1764_v5 }
 0x3c0   : > { %v7737_v14 = vpop.eup %6308  ;;  %v1743_v16 = vpop.xlane.xlu0 %1742  ;;  %1814 = vadd.xlane.f32.xlu0 %v7735_v47  ;;  %v1788_v9 = vmul.f32 1.442695, %v1765_v6 }
 0x3c1   : > { %v1745_v24 = vpop.xlane.xlu1 %1744  ;;  %6318 = vpow2.f32 %v1786_v63  ;;  %v1766_v18 = vsub.f32 %v7635_v12, %v1743_v16  ;;  %1812 = vadd.xlane.f32.xlu1 %v7737_v14 }
 0x3c2   : > { %6320 = vpow2.f32 %v2186_v61  ;;  %v1767_v19 = vsub.f32 %v7638_v20, %v1745_v24 }
 0x3c3   : > { %v7743_v30 = vpop.eup %6310  ;;  %v1790_v51 = vmul.f32 1.442695, %v1766_v18 }
 0x3c4   : > { %v7745_v23 = vpop.eup %6312  ;;  %v2149_v21 = vpop.xlane.xlu0 %2148  ;;  %2220 = vadd.xlane.f32.xlu0 %v7743_v30  ;;  %v1792_v12 = vmul.f32 1.442695, %v1767_v19 }
 0x3c5   : > { %v2151_v32 = vpop.xlane.xlu1 %2150  ;;  %6322 = vpow2.f32 %v1790_v51  ;;  %v2170_v25 = vsub.f32 %v7643_v26, %v2149_v21  ;;  %1816 = vadd.xlane.f32.xlu1 %v7745_v23 }
 0x3c6   : > { %6324 = vpow2.f32 %v1788_v9  ;;  %v2171_v53 = vsub.f32 %v7646_v28, %v2151_v32 }
 0x3c7   : > { %v7751_v22 = vpop.eup %6314  ;;  %v2196_v20 = vmul.f32 1.442695, %v2170_v25 }
 0x3c8   : > { %v7753_v35 = vpop.eup %6316  ;;  %v2145_v55 = vpop.xlane.xlu0 %2144  ;;  %2216 = vadd.xlane.f32.xlu0 %v7751_v22  ;;  %v2198_v26 = vmul.f32 1.442695, %v2171_v53 }
 0x3c9   : > { %v2147_v43 = vpop.xlane.xlu1 %2146  ;;  %6326 = vpow2.f32 %v2196_v20  ;;  %v2168_v48 = vsub.f32 %v7651_v33, %v2145_v55  ;;  %2222 = vadd.xlane.f32.xlu1 %v7753_v35 }
 0x3ca   : > { %6328 = vpow2.f32 %v1792_v12  ;;  %v2169_v15 = vsub.f32 %v7654_v34, %v2147_v43 }
 0x3cb   : > { %v7759_v36 = vpop.eup %6318  ;;  %v2192_v28 = vmul.f32 1.442695, %v2168_v48 }
 0x3cc   : > { %v7761_v7 = vpop.eup %6320  ;;  %v1747_v46 = vpop.xlane.xlu0 %1746  ;;  %1818 = vadd.xlane.f32.xlu0 %v7759_v36  ;;  %v2194_v33 = vmul.f32 1.442695, %v2169_v15 }
 0x3cd   : > { %v1749_v49 = vpop.xlane.xlu1 %1748  ;;  %6330 = vpow2.f32 %v2192_v28  ;;  %v1768_v54 = vsub.f32 %v7659_v29, %v1747_v46  ;;  %2218 = vadd.xlane.f32.xlu1 %v7761_v7 }
 0x3ce   : > { %6332 = vpow2.f32 %v2198_v26  ;;  %v1769_v56 = vsub.f32 %v7662_v27, %v1749_v49 }
 0x3cf   : > { %v7767_v57 = vpop.eup %6322  ;;  %v1794_v34 = vmul.f32 1.442695, %v1768_v54 }
 0x3d0   : > { %v7769_v41 = vpop.eup %6324  ;;  %v1751_v58 = vpop.xlane.xlu0 %1750  ;;  %1822 = vadd.xlane.f32.xlu0 %v7767_v57  ;;  %v1796_v3 = vmul.f32 1.442695, %v1769_v56  ;;  %v6054_v56 = vld [vmem:[#allocation8 + $0x4] ss:$8 sps:$4 sm:$0xff]  }
 0x3d1   : > { %v1753_v45 = vpop.xlane.xlu1 %1752  ;;  %6334 = vpow2.f32 %v1794_v34  ;;  %v1770_v29 = vsub.f32 %v7667_v31, %v1751_v58  ;;  %1820 = vadd.xlane.f32.xlu1 %v7769_v41  ;;  %2605 = vmatprep.subr.bf16.mxu0 %v6054_v56  ;;  %v6052_v56 = vld [vmem:[#allocation8] ss:$8 sps:$4 sm:$0xff]  }
 0x3d2   : > { %6336 = vpow2.f32 %v2194_v33  ;;  %v1771_v2 = vsub.f32 %v7670_v39, %v1753_v45 }
 0x3d3   : > { %v7775_v5 = vpop.eup %6326  ;;  %v1798_v27 = vmul.f32 1.442695, %v1770_v29 }
 0x3d4   : > { %v7777_v61 = vpop.eup %6328  ;;  %v2157_v6 = vpop.xlane.xlu0 %2156  ;;  %2228 = vadd.xlane.f32.xlu0 %v7775_v5  ;;  %v1800_v31 = vmul.f32 1.442695, %v1771_v2 }
 0x3d5   : > { %v2159_v63 = vpop.xlane.xlu1 %2158  ;;  %6338 = vpow2.f32 %v1798_v27  ;;  %v2174_v16 = vsub.f32 %v7675_v4, %v2157_v6  ;;  %1824 = vadd.xlane.f32.xlu1 %v7777_v61 }
 0x3d6   : > { %6340 = vpow2.f32 %v1796_v3  ;;  %v2175_v24 = vsub.f32 %v7678_v11, %v2159_v63 }
 0x3d7   : > { %v7783_v18 = vpop.eup %6330  ;;  %v2204_v39 = vmul.f32 1.442695, %v2174_v16 }
 0x3d8   : > { %v7785_v9 = vpop.eup %6332  ;;  %v2153_v19 = vpop.xlane.xlu0 %2152  ;;  %2224 = vadd.xlane.f32.xlu0 %v7783_v18  ;;  %v2206_v4 = vmul.f32 1.442695, %v2175_v24 }
 0x3d9   : > { %v2155_v51 = vpop.xlane.xlu1 %2154  ;;  %6342 = vpow2.f32 %v2204_v39  ;;  %v2172_v21 = vsub.f32 %v7683_v37, %v2153_v19  ;;  %2230 = vadd.xlane.f32.xlu1 %v7785_v9 }
 0x3da   : > { %6344 = vpow2.f32 %v1800_v31  ;;  %v2173_v32 = vsub.f32 %v7686_v8, %v2155_v51 }
 0x3db   : > { %v7791_v25 = vpop.eup %6334  ;;  %v2200_v11 = vmul.f32 1.442695, %v2172_v21 }
 0x3dc   : > { %v7793_v12 = vpop.eup %6336  ;;  %v1755_v53 = vpop.xlane.xlu0 %1754  ;;  %1826 = vadd.xlane.f32.xlu0 %v7791_v25  ;;  %v2202_v37 = vmul.f32 1.442695, %v2173_v32 }
 0x3dd   : > { %v1757_v20 = vpop.xlane.xlu1 %1756  ;;  %6346 = vpow2.f32 %v2200_v11  ;;  %v1772_v55 = vsub.f32 %v7691_v38, %v1755_v53  ;;  %2226 = vadd.xlane.f32.xlu1 %v7793_v12 }
 0x3de   : > { %6348 = vpow2.f32 %v2206_v4  ;;  %v1773_v43 = vsub.f32 %v7694_v40, %v1757_v20 }
 0x3df   : > { %v7799_v48 = vpop.eup %6338  ;;  %v1802_v8 = vmul.f32 1.442695, %v1772_v55 }
 0x3e0   : > { %v7801_v26 = vpop.eup %6340  ;;  %1830 = vadd.xlane.f32.xlu0 %v7799_v48  ;;  %v1804_v15 = vmul.f32 1.442695, %v1773_v43 }
 0x3e1   : > { %6350 = vpow2.f32 %v1802_v8  ;;  %1828 = vadd.xlane.f32.xlu1 %v7801_v26 }
 0x3e2   : > { %6352 = vpow2.f32 %v2202_v37 }
 0x3e3   : > { %v7805_v28 = vpop.eup %6342  ;;  %6354 = vpow2.f32 %v1804_v15 }
 0x3e4   : > { %v7807_v38 = vpop.eup %6344  ;;  %2236 = vadd.xlane.f32.xlu0 %v7805_v28 }
 0x3e5   : > { %1832 = vadd.xlane.f32.xlu1 %v7807_v38 }
 0x3e7   : > { %v7811_v40 = vpop.eup %6346 }
 0x3e8   : > { %v7813_v46 = vpop.eup %6348  ;;  %2232 = vadd.xlane.f32.xlu0 %v7811_v40 }
 0x3e9   : > { %2238 = vadd.xlane.f32.xlu1 %v7813_v46 }
 0x3eb   : > { %v7817_v49 = vpop.eup %6350 }
 0x3ec   : > { %v7819_v54 = vpop.eup %6352  ;;  %1834 = vadd.xlane.f32.xlu0 %v7817_v49 }
 0x3ed   : > { %2234 = vadd.xlane.f32.xlu1 %v7819_v54  ;;  %v7823_v33 = vpop.eup %6354 }
 0x3f1   : > { %1836 = vadd.xlane.f32.xlu1 %v7823_v33 }
 0x43d   : > { %v1807_v34 = vpop.xlane.xlu0 %1806 }
 0x43e   : > { %6356 = vrcp.f32 %v1807_v34 }
 0x441   : > { %v2213_v58 = vpop.xlane.xlu0 %2212  ;;  %v1809_v45 = vpop.xlane.xlu1 %1808 }
 0x442   : > { %6358 = vrcp.f32 %v1809_v45 }
 0x445   : > { %v2209_v29 = vpop.xlane.xlu0 %2208  ;;  %v2215_v3 = vpop.xlane.xlu1 %2214 }
 0x446   : > { %6360 = vrcp.f32 %v2215_v3  ;;  %v6057_v3 = vld [vmem:[#allocation8 + $0x14] ss:$8 sps:$4 sm:$0xff]  }
 0x447   : > { %6362 = vrcp.f32 %v2209_v29 }
 0x448   : > { %6364 = vrcp.f32 %v2213_v58  ;;  %v6357_v6 = vpop.eup %6356 }
 0x449   : > { %v1811_v2 = vpop.xlane.xlu0 %1810  ;;  %v1854_v24 = vmul.f32 %v6357_v6, %v7706_v17 }
 0x44a   : > { %v2211_v27 = vpop.xlane.xlu1 %2210 }
 0x44b   : > { %6366 = vrcp.f32 %v2211_v27 }
 0x44c   : > { %v6359_v63 = vpop.eup %6358  ;;  %6368 = vrcp.f32 %v1811_v2 }
 0x44d   : > { %v1815_v16 = vpop.xlane.xlu0 %1814  ;;  %v1855_v39 = vmul.f32 %v6359_v63, %v7713_v13 }
 0x44e   : > { %v1813_v31 = vpop.xlane.xlu1 %1812 }
 0x44f   : > { %6370 = vrcp.f32 %v1813_v31  ;;  %v1870_v19 = vpack.c.bf16 %v1855_v39, %v1854_v24  ;;  %v6058_v24 = vld [vmem:[#allocation8 + $0x20] ss:$8 sps:$4 sm:$0xff]  }
 0x450   : > { %6372 = vrcp.f32 %v1815_v16  ;;  %v6361_v4 = vpop.eup %6360  ;;  %v6060_v16 = vld [vmem:[#allocation8 + $0x24] ss:$8 sps:$4 sm:$0xff]  }
 0x451   : > { %v2221_v51 = vpop.xlane.xlu0 %2220  ;;  %5664 = vmatprep.mubr.bf16.mxu1 %v1870_v19  ;;  %v6363_v32 = vpop.eup %6362  ;;  %v2259_v20 = vmul.f32 %v6361_v4, %v7721_v52 }
 0x452   : > { %v1817_v21 = vpop.xlane.xlu1 %1816  ;;  %v6365_v11 = vpop.eup %6364  ;;  %v2256_v43 = vmul.f32 %v6363_v32, %v7719_v50 }
 0x453   : > { %6374 = vrcp.f32 %v1817_v21  ;;  %v2258_v8 = vmul.f32 %v6365_v11, %v7711_v1  ;;  %v6055_v1 = vld [vmem:[#allocation8 + $0x10] ss:$8 sps:$4 sm:$0xff]  }
 0x454   : > { %v6061_v11 = vld [vmem:[#allocation8 + $0x30] ss:$8 sps:$4 sm:$0xff]  }
 0x455   : > { %v6367_v53 = vpop.eup %6366  ;;  %v2217_v55 = vpop.xlane.xlu0 %2216  ;;  %v2273_v29 = vpack.c.bf16 %v2259_v20, %v2258_v8 }
 0x456   : > { %v2223_v37 = vpop.xlane.xlu1 %2222  ;;  %v2257_v17 = vmul.f32 %v6367_v53, %v7729_v60  ;;  %v6369_v13 = vpop.eup %6368 }
 0x457   : > { %6376 = vrcp.f32 %v2223_v37  ;;  %v1856_v52 = vmul.f32 %v6369_v13, %v7727_v59 }
 0x458   : > { %v2272_v15 = vpack.c.bf16 %v2257_v17, %v2256_v43  ;;  %6378 = vrcp.f32 %v2217_v55  ;;  %v6066_v55 = vld [vmem:[#allocation8 + $0x44] ss:$8 sps:$4 sm:$0xff]  }
 0x459   : > { %v6371_v34 = vpop.eup %6370  ;;  %v1819_v58 = vpop.xlane.xlu0 %1818  ;;  %6380 = vrcp.f32 %v2221_v51  ;;  %v6063_v51 = vld [vmem:[#allocation8 + $0x34] ss:$8 sps:$4 sm:$0xff]  }
 0x45a   : > { %v2219_v45 = vpop.xlane.xlu1 %2218  ;;  %v1857_v2 = vmul.f32 %v6371_v34, %v7737_v14  ;;  %5728 = vmatprep.mubr.bf16.mxu0 %v2272_v15  ;;  %v6373_v50 = vpop.eup %6372  ;;  %v6064_v15 = vld [vmem:[#allocation8 + $0x40] ss:$8 sps:$4 sm:$0xff]  }
 0x45b   : > { %6382 = vrcp.f32 %v2219_v45  ;;  %5729 = vmatmul.mubr.bf16.vlgmr.msra.gmra.mrb[80].mxu0 %v2273_v29  ;;  %v1858_v31 = vmul.f32 %v6373_v50, %v7735_v47 }
 0x45c   : > { %v1871_v60 = vpack.c.bf16 %v1857_v2, %v1856_v52  ;;  %2606 = vmatpush1.bf16.msra.mxu0 %v6052_v56  ;;  %6384 = vrcp.f32 %v1819_v58 }
 0x45d   : > { %v6375_v27 = vpop.eup %6374  ;;  %v1823_v6 = vpop.xlane.xlu0 %1822  ;;  %2607 = vmatprep.subr.bf16.mxu0 %v6057_v3  ;;  %v6067_v3 = vld [vmem:[#allocation8 + $0x50] ss:$8 sps:$4 sm:$0xff]  }
 0x45e   : > { %v1821_v63 = vpop.xlane.xlu1 %1820  ;;  %5665 = vmatmul.mubr.bf16.vlgmr.msra.gmra.mrb[48].mxu1 %v1871_v60  ;;  %v1859_v59 = vmul.f32 %v6375_v27, %v7745_v23  ;;  %v6072_v60 = vld [vmem:[#allocation8 + $0x64] ss:$8 sps:$4 sm:$0xff]  }
 0x45f   : > { %6386 = vrcp.f32 %v1821_v63 }
 0x460   : > { %v1872_v14 = vpack.c.bf16 %v1859_v59, %v1858_v31  ;;  %2608 = vmatpush1.bf16.msra.mxu0 %v6055_v1  ;;  %6388 = vrcp.f32 %v1823_v6 }
 0x461   : > { %v2229_v39 = vpop.xlane.xlu0 %2228  ;;  %2609 = vmatprep.subr.bf16.mxu0 %v6060_v16  ;;  %v6377_v21 = vpop.eup %6376  ;;  %v6075_v16 = vld [vmem:[#allocation8 + $0x74] ss:$8 sps:$4 sm:$0xff]  }
 0x462   : > { %v1825_v19 = vpop.xlane.xlu1 %1824  ;;  %5668 = vmatprep.mubr.bf16.mxu1 %v1872_v14  ;;  %v6379_v4 = vpop.eup %6378  ;;  %v2263_v23 = vmul.f32 %v6377_v21, %v7753_v35  ;;  %v6069_v35 = vld [vmem:[#allocation8 + $0x54] ss:$8 sps:$4 sm:$0xff]  }
 0x463   : > { %6390 = vrcp.f32 %v1825_v19  ;;  %v6381_v32 = vpop.eup %6380  ;;  %v2260_v37 = vmul.f32 %v6379_v4, %v7751_v22 }
 0x464   : > { %2610 = vmatpush1.bf16.msra.mxu0 %v6058_v24  ;;  %v2262_v13 = vmul.f32 %v6381_v32, %v7743_v30  ;;  %v6073_v24 = vld [vmem:[#allocation8 + $0x70] ss:$8 sps:$4 sm:$0xff]  }
 0x465   : > { %v6383_v53 = vpop.eup %6382  ;;  %v2225_v47 = vpop.xlane.xlu0 %2224  ;;  %2611 = vmatprep.subr.bf16.mxu0 %v6063_v51  ;;  %v6078_v51 = vld [vmem:[#allocation8 + $0x84] ss:$8 sps:$4 sm:$0xff]  }
 0x466   : > { %v2231_v20 = vpop.xlane.xlu1 %2230  ;;  %v2261_v43 = vmul.f32 %v6383_v53, %v7761_v7  ;;  %v6385_v17 = vpop.eup %6384  ;;  %v2275_v45 = vpack.c.bf16 %v2263_v23, %v2262_v13 }
 0x467   : > { %6392 = vrcp.f32 %v2231_v20  ;;  %v1860_v22 = vmul.f32 %v6385_v17, %v7759_v36  ;;  %v6079_v17 = vld [vmem:[#allocation8 + $0x90] ss:$8 sps:$4 sm:$0xff]  }
 0x468   : > { %v2274_v8 = vpack.c.bf16 %v2261_v43, %v2260_v37  ;;  %2612 = vmatpush1.bf16.msra.mxu0 %v6061_v11  ;;  %6394 = vrcp.f32 %v2225_v47  ;;  %v6076_v47 = vld [vmem:[#allocation8 + $0x80] ss:$8 sps:$4 sm:$0xff]  }
 0x469   : > { %v6387_v56 = vpop.eup %6386  ;;  %v1827_v34 = vpop.xlane.xlu0 %1826  ;;  %2613 = vmatprep.subr.bf16.mxu0 %v6066_v55  ;;  %6396 = vrcp.f32 %v2229_v39 }
 0x46a   : > { %v2227_v58 = vpop.xlane.xlu1 %2226  ;;  %5732 = vmatprep.mubr.bf16.mxu0 %v2274_v8  ;;  %v1861_v7 = vmul.f32 %v6387_v56, %v7769_v41  ;;  %v6389_v29 = vpop.eup %6388  ;;  %v6070_v41 = vld [vmem:[#allocation8 + $0x60] ss:$8 sps:$4 sm:$0xff]  }
 0x46b   : > { %6398 = vrcp.f32 %v2227_v58  ;;  %5733 = vmatmul.mubr.bf16.gmra.mrb[84].mxu0 %v2275_v45  ;;  %v1862_v1 = vmul.f32 %v6389_v29, %v7767_v57  ;;  %v6087_v58 = vld [vmem:[#allocation8 + $0xb4] ss:$8 sps:$4 sm:$0xff]  }
 0x46c   : > { %v1873_v30 = vpack.c.bf16 %v1861_v7, %v1860_v22  ;;  %2614 = vmatpush1.bf16.msra.mxu0 %v6064_v15  ;;  %6400 = vrcp.f32 %v1827_v34  ;;  %v6084_v15 = vld [vmem:[#allocation8 + $0xa4] ss:$8 sps:$4 sm:$0xff]   ;;  %v6085_v7 = vld [vmem:[#allocation8 + $0xb0] ss:$8 sps:$4 sm:$0xff]  }
 0x46d   : > { %v6391_v52 = vpop.eup %6390  ;;  %v1831_v2 = vpop.xlane.xlu0 %1830  ;;  %2615 = vmatprep.subr.bf16.mxu0 %v6069_v35 }
 0x46e   : > { %v1829_v50 = vpop.xlane.xlu1 %1828  ;;  %5669 = vmatmul.mubr.bf16.gmra.mrb[52].mxu1 %v1873_v30  ;;  %v1863_v27 = vmul.f32 %v6391_v52, %v7777_v61 }
 0x46f   : > { %6402 = vrcp.f32 %v1829_v50 }
 0x470   : > { %v1874_v36 = vpack.c.bf16 %v1863_v27, %v1862_v1  ;;  %2616 = vmatpush1.bf16.msra.mxu0 %v6067_v3  ;;  %6404 = vrcp.f32 %v1831_v2  ;;  %v6090_v3 = vld [vmem:[#allocation8 + $0xc4] ss:$8 sps:$4 sm:$0xff]   ;;  %v6088_v1 = vld [vmem:[#allocation8 + $0xc0] ss:$8 sps:$4 sm:$0xff]  }
 0x471   : > { %v2237_v6 = vpop.xlane.xlu0 %2236  ;;  %2617 = vmatprep.subr.bf16.mxu0 %v6072_v60  ;;  %v6393_v31 = vpop.eup %6392 }
 0x472   : > { %v1833_v63 = vpop.xlane.xlu1 %1832  ;;  %5672 = vmatprep.mubr.bf16.mxu1 %v1874_v36  ;;  %v6395_v59 = vpop.eup %6394  ;;  %v2267_v61 = vmul.f32 %v6393_v31, %v7785_v9  ;;  %v6081_v9 = vld [vmem:[#allocation8 + $0x94] ss:$8 sps:$4 sm:$0xff]  }
 0x473   : > { %6406 = vrcp.f32 %v1833_v63  ;;  %v6397_v14 = vpop.eup %6396  ;;  %v2264_v21 = vmul.f32 %v6395_v59, %v7783_v18  ;;  %v6099_v63 = vld [vmem:[#allocation8 + $0xf4] ss:$8 sps:$4 sm:$0xff]  }
 0x474   : > { %2618 = vmatpush1.bf16.msra.mxu0 %v6070_v41  ;;  %v2266_v11 = vmul.f32 %v6397_v14, %v7775_v5 }
 0x475   : > { %v6399_v39 = vpop.eup %6398  ;;  %v2233_v57 = vpop.xlane.xlu0 %2232  ;;  %2619 = vmatprep.subr.bf16.mxu0 %v6075_v16  ;;  %v6097_v16 = vld [vmem:[#allocation8 + $0xf0] ss:$8 sps:$4 sm:$0xff]  }
 0x476   : > { %v2239_v19 = vpop.xlane.xlu1 %2238  ;;  %v2265_v4 = vmul.f32 %v6399_v39, %v7793_v12  ;;  %v6401_v32 = vpop.eup %6400  ;;  %v2277_v37 = vpack.c.bf16 %v2267_v61, %v2266_v11 }
 0x477   : > { %6408 = vrcp.f32 %v2239_v19  ;;  %v1864_v18 = vmul.f32 %v6401_v32, %v7791_v25 }
 0x478   : > { %v2276_v53 = vpack.c.bf16 %v2265_v4, %v2264_v21  ;;  %2620 = vmatpush1.bf16.msra.mxu0 %v6073_v24  ;;  %6410 = vrcp.f32 %v2233_v57 }
 0x479   : > { %v6403_v20 = vpop.eup %6402  ;;  %v1835_v23 = vpop.xlane.xlu0 %1834  ;;  %2621 = vmatprep.subr.bf16.mxu0 %v6078_v51  ;;  %6412 = vrcp.f32 %v2237_v6 }
 0x47a   : > { %v2235_v55 = vpop.xlane.xlu1 %2234  ;;  %5736 = vmatprep.mubr.bf16.mxu0 %v2276_v53  ;;  %v1865_v12 = vmul.f32 %v6403_v20, %v7801_v26  ;;  %v6405_v43 = vpop.eup %6404  ;;  %v6082_v26 = vld [vmem:[#allocation8 + $0xa0] ss:$8 sps:$4 sm:$0xff]  }
 0x47b   : > { %6414 = vrcp.f32 %v2235_v55  ;;  %5737 = vmatmul.mubr.bf16.gmra.mrb[88].mxu0 %v2277_v37  ;;  %v1866_v56 = vmul.f32 %v6405_v43, %v7799_v48 }
 0x47c   : > { %6416 = vrcp.f32 %v1835_v23  ;;  %v1875_v5 = vpack.c.bf16 %v1865_v12, %v1864_v18  ;;  %2622 = vmatpush1.bf16.msra.mxu0 %v6076_v47 }
 0x47d   : > { %v6407_v13 = vpop.eup %6406  ;;  %2623 = vmatprep.subr.bf16.mxu0 %v6081_v9 }
 0x47e   : > { %v1837_v8 = vpop.xlane.xlu1 %1836  ;;  %5673 = vmatmul.mubr.bf16.gmra.mrb[56].mxu1 %v1875_v5  ;;  %v1867_v34 = vmul.f32 %v6407_v13, %v7807_v38 }
 0x47f   : > { %6418 = vrcp.f32 %v1837_v8 }
 0x480   : > { %v1876_v25 = vpack.c.bf16 %v1867_v34, %v1866_v56  ;;  %2624 = vmatpush1.bf16.msra.mxu0 %v6079_v17 }
 0x481   : > { %2625 = vmatprep.subr.bf16.mxu0 %v6084_v15  ;;  %v6409_v45 = vpop.eup %6408 }
 0x482   : > { %5676 = vmatprep.mubr.bf16.mxu1 %v1876_v25  ;;  %v6411_v35 = vpop.eup %6410  ;;  %v2271_v30 = vmul.f32 %v6409_v45, %v7813_v46  ;;  %v6093_v46 = vld [vmem:[#allocation8 + $0xd4] ss:$8 sps:$4 sm:$0xff]  }
 0x483   : > { %v6413_v22 = vpop.eup %6412  ;;  %v2268_v48 = vmul.f32 %v6411_v35, %v7811_v40  ;;  %v6091_v40 = vld [vmem:[#allocation8 + $0xd0] ss:$8 sps:$4 sm:$0xff]  }
 0x484   : > { %2626 = vmatpush1.bf16.msra.mxu0 %v6082_v26  ;;  %v2270_v2 = vmul.f32 %v6413_v22, %v7805_v28  ;;  %v6096_v28 = vld [vmem:[#allocation8 + $0xe4] ss:$8 sps:$4 sm:$0xff]  }
 0x485   : > { %v6415_v29 = vpop.eup %6414  ;;  %2627 = vmatprep.subr.bf16.mxu0 %v6087_v58 }
 0x486   : > { %v6417_v52 = vpop.eup %6416  ;;  %v2269_v38 = vmul.f32 %v6415_v29, %v7819_v54  ;;  %v2279_v27 = vpack.c.bf16 %v2271_v30, %v2270_v2  ;;  %v6094_v54 = vld [vmem:[#allocation8 + $0xe0] ss:$8 sps:$4 sm:$0xff]  }
 0x487   : > { %v1868_v36 = vmul.f32 %v6417_v52, %v7817_v49 }
 0x488   : > { %v2278_v60 = vpack.c.bf16 %v2269_v38, %v2268_v48  ;;  %2628 = vmatpush1.bf16.msra.mxu0 %v6085_v7 }
 0x489   : > { %v6419_v50 = vpop.eup %6418  ;;  %2629 = vmatprep.subr.bf16.mxu0 %v6090_v3 }
 0x48a   : > { %v1869_v41 = vmul.f32 %v6419_v50, %v7823_v33  ;;  %5740 = vmatprep.mubr.bf16.mxu0 %v2278_v60 }
 0x48b   : > { %5741 = vmatmul.mubr.bf16.gmra.mrb[92].mxu0 %v2279_v27 }
 0x48c   : > { %v1877_v6 = vpack.c.bf16 %v1869_v41, %v1868_v36  ;;  %2630 = vmatpush1.bf16.msra.mxu0 %v6088_v1  ;;  %v2433_v1 = vld [vmem:[%s9490_s5] sm:$0x3] }
 0x48d   : > { %2631 = vmatprep.subr.bf16.mxu0 %v6093_v46  ;;  %v7862_v27 = vrot.slane %v2433_v1, %v7397_v42  ;;  %v7865_v36 = vrot.slane %v2433_v1, %v7400_v44 }
 0x48e   : > { %5677 = vmatmul.mubr.bf16.gmra.mrb[60].mxu1 %v1877_v6 }
 0x490   : > { %2632 = vmatpush1.bf16.msra.mxu0 %v6091_v40 }
 0x491   : > { %2633 = vmatprep.subr.bf16.mxu0 %v6096_v28 }
 0x494   : > { %2634 = vmatpush1.bf16.msra.mxu0 %v6094_v54  ;;  %v6612_v54 = vld [vmem:[%s7248_s13] sm:$0xff] }
 0x495   : > { %2635 = vmatprep.subr.bf16.mxu0 %v6099_v63 }
 0x498   : > { %2636 = vmatpush1.bf16.msra.mxu0 %v6097_v16 }
 0x52e   : > { %v5730_v49 = vpop.f32.mrb[80].mxu0 }
 0x52f   : > { %v2322_v33 = vpop.f32.mrb[81].mxu0 }
 0x530   : > { %v5731_v31 = vpop.f32.mrb[82].mxu0 }
 0x531   : > { %v2420_v59 = vpack.c.bf16 %v5731_v31, %v5730_v49  ;;  %v5666_v14 = vpop.f32.mrb[48].mxu1  ;;  %v2325_v24 = vpop.f32.mrb[83].mxu0 }
 0x532   : > { %v2418_v39 = vpack.c.bf16 %v2325_v24, %v2322_v33  ;;  %v1920_v57 = vpop.f32.mrb[49].mxu1  ;;  %v6613_v33 = vld [vmem:[%s7248_s13 + $0x8] sm:$0xff] }
 0x533   : > { %v5667_v19 = vpop.f32.mrb[50].mxu1 }
 0x534   : > { %v2419_v61 = vpack.c.bf16 %v5667_v19, %v5666_v14  ;;  %v1923_v51 = vpop.f32.mrb[51].mxu1  ;;  %2637 = vmatprep.mubr.bf16.mxu0 %v2418_v39  ;;  %v6614_v14 = vld [vmem:[%s7248_s13 + $0x10] sm:$0xff]  ;;  %v6615_v39 = vld [vmem:[%s7248_s13 + $0x18] sm:$0xff] }
 0x535   : > { %v2417_v21 = vpack.c.bf16 %v1923_v51, %v1920_v57 }
 0x537   : > { %2638 = vmatmul.mubr.bf16.vlgmr.msra.gmra.mrb[96].mxu0 %v2417_v21 }
 0x538   : > { %2647 = vmatprep.mubr.bf16.mxu0 %v2420_v59 }
 0x53e   : > { %v5734_v4 = vpop.f32.mrb[84].mxu0 }
 0x53f   : > { %v2338_v32 = vpop.f32.mrb[85].mxu0  ;;  %2648 = vmatmul.mubr.bf16.gmra.mrb[100].mxu0 %v2419_v61 }
 0x540   : > { %v5735_v11 = vpop.f32.mrb[86].mxu0 }
 0x541   : > { %v2424_v53 = vpack.c.bf16 %v5735_v11, %v5734_v4  ;;  %v5670_v47 = vpop.f32.mrb[52].mxu1  ;;  %v2341_v20 = vpop.f32.mrb[87].mxu0 }
 0x542   : > { %v2422_v23 = vpack.c.bf16 %v2341_v20, %v2338_v32  ;;  %v1936_v55 = vpop.f32.mrb[53].mxu1 }
 0x543   : > { %v5671_v37 = vpop.f32.mrb[54].mxu1 }
 0x544   : > { %v2423_v9 = vpack.c.bf16 %v5671_v37, %v5670_v47  ;;  %v1939_v18 = vpop.f32.mrb[55].mxu1  ;;  %2657 = vmatprep.mubr.bf16.mxu0 %v2422_v23 }
 0x545   : > { %v2421_v12 = vpack.c.bf16 %v1939_v18, %v1936_v55  ;;  %v6617_v55 = vld [vmem:[%s7248_s13 + $0x28] sm:$0xff]  ;;  %v6618_v18 = vld [vmem:[%s7248_s13 + $0x30] sm:$0xff] }
 0x547   : > { %2658 = vmatmul.mubr.bf16.gmra.mrb[104].mxu0 %v2421_v12 }
 0x548   : > { %2667 = vmatprep.mubr.bf16.mxu0 %v2424_v53  ;;  %v6616_v53 = vld [vmem:[%s7248_s13 + $0x20] sm:$0xff] }
 0x54e   : > { %v5738_v43 = vpop.f32.mrb[88].mxu0 }
 0x54f   : > { %v2354_v5 = vpop.f32.mrb[89].mxu0  ;;  %2668 = vmatmul.mubr.bf16.gmra.mrb[108].mxu0 %v2423_v9 }
 0x550   : > { %v5739_v17 = vpop.f32.mrb[90].mxu0 }
 0x551   : > { %v2428_v13 = vpack.c.bf16 %v5739_v17, %v5738_v43  ;;  %v5674_v8 = vpop.f32.mrb[56].mxu1  ;;  %v2357_v15 = vpop.f32.mrb[91].mxu0  ;;  %v6619_v43 = vld [vmem:[%s7248_s13 + $0x38] sm:$0xff] }
 0x552   : > { %v2426_v56 = vpack.c.bf16 %v2357_v15, %v2354_v5  ;;  %v1952_v34 = vpop.f32.mrb[57].mxu1 }
 0x553   : > { %v5675_v25 = vpop.f32.mrb[58].mxu1 }
 0x554   : > { %v2427_v26 = vpack.c.bf16 %v5675_v25, %v5674_v8  ;;  %v1955_v58 = vpop.f32.mrb[59].mxu1  ;;  %2677 = vmatprep.mubr.bf16.mxu0 %v2426_v56 }
 0x555   : > { %v2425_v45 = vpack.c.bf16 %v1955_v58, %v1952_v34 }
 0x557   : > { %2678 = vmatmul.mubr.bf16.gmra.mrb[112].mxu0 %v2425_v45 }
 0x558   : > { %2687 = vmatprep.mubr.bf16.mxu0 %v2428_v13 }
 0x55e   : > { %v5742_v35 = vpop.f32.mrb[92].mxu0 }
 0x55f   : > { %v2370_v22 = vpop.f32.mrb[93].mxu0  ;;  %2688 = vmatmul.mubr.bf16.gmra.mrb[116].mxu0 %v2427_v26  ;;  %v6620_v26 = vld [vmem:[%s7248_s13 + $0x40] sm:$0xff] }
 0x560   : > { %v5743_v7 = vpop.f32.mrb[94].mxu0 }
 0x561   : > { %v5678_v29 = vpop.f32.mrb[60].mxu1  ;;  %v2432_v30 = vpack.c.bf16 %v5743_v7, %v5742_v35  ;;  %v2373_v3 = vpop.f32.mrb[95].mxu0 }
 0x562   : > { %v1968_v52 = vpop.f32.mrb[61].mxu1  ;;  %v2430_v48 = vpack.c.bf16 %v2373_v3, %v2370_v22  ;;  %v6621_v22 = vld [vmem:[%s7248_s13 + $0x48] sm:$0xff] }
 0x563   : > { %v5679_v38 = vpop.f32.mrb[62].mxu1 }
 0x564   : > { %v2431_v2 = vpack.c.bf16 %v5679_v38, %v5678_v29  ;;  %v1971_v50 = vpop.f32.mrb[63].mxu1  ;;  %2697 = vmatprep.mubr.bf16.mxu0 %v2430_v48 }
 0x565   : > { %v2429_v60 = vpack.c.bf16 %v1971_v50, %v1968_v52  ;;  %v6623_v52 = vld [vmem:[%s7248_s13 + $0x58] sm:$0xff] }
 0x567   : > { %2698 = vmatmul.mubr.bf16.gmra.mrb[120].mxu0 %v2429_v60 }
 0x568   : > { %2707 = vmatprep.mubr.bf16.mxu0 %v2432_v30  ;;  %v6622_v30 = vld [vmem:[%s7248_s13 + $0x50] sm:$0xff] }
 0x56f   : > { %2708 = vmatmul.mubr.bf16.gmra.mrb[124].mxu0 %v2431_v2 }
 0x60a   : > { %v2639_v41 = vpop.f32.mrb[96].mxu0 }
 0x60b   : > { %v2640_v46 = vadd.f32 %v2639_v41, %v7862_v27  ;;  %v2641_v6 = vpop.f32.mrb[97].mxu0 }
 0x60c   : > { %v2642_v40 = vadd.f32 %v2641_v6, %v7865_v36  ;;  %v2643_v28 = vpop.f32.mrb[98].mxu0  ;;  %v6624_v6 = vld [vmem:[%s7248_s13 + $0x60] sm:$0xff] }
 0x60d   : > { %v7870_v63 = vadd.f32 %v6612_v54, %v2640_v46  ;;  %v2644_v16 = vadd.f32 %v2643_v28, %v7862_v27  ;;  %v2645_v49 = vpop.f32.mrb[99].mxu0 }
 0x60e   : > { %v7874_v31 = vadd.f32 %v6613_v33, %v2642_v40  ;;  %v2646_v59 = vadd.f32 %v2645_v49, %v7865_v36 }
 0x60f   : > { %v7878_v24 = vadd.f32 %v6614_v14, %v2644_v16  ;;  %v6625_v16 = vld [vmem:[%s7248_s13 + $0x68] sm:$0xff] }
 0x610   : > { %v7881_v57 = vadd.f32 %v6615_v39, %v2646_v59  ;;  %v2752_v19 = vadd.f32 %v7874_v31, %v7870_v63  ;;  %v6626_v59 = vld [vmem:[%s7248_s13 + $0x70] sm:$0xff]  ;;  %v6627_v39 = vld [vmem:[%s7248_s13 + $0x78] sm:$0xff] }
 0x612   : > { %v2649_v61 = vpop.f32.mrb[100].mxu0  ;;  %2753 = vadd.xlane.f32.xlu0 %v2752_v19  ;;  %v2755_v51 = vadd.f32 %v7881_v57, %v7878_v24 }
 0x613   : > { %v2650_v21 = vadd.f32 %v2649_v61, %v7862_v27  ;;  %v2651_v4 = vpop.f32.mrb[101].mxu0 }
 0x614   : > { %v2652_v32 = vadd.f32 %v2651_v4, %v7865_v36  ;;  %v2653_v11 = vpop.f32.mrb[102].mxu0  ;;  %2756 = vadd.xlane.f32.xlu1 %v2755_v51 }
 0x615   : > { %v7890_v47 = vadd.f32 %v6616_v53, %v2650_v21  ;;  %v2654_v20 = vadd.f32 %v2653_v11, %v7862_v27  ;;  %v2655_v23 = vpop.f32.mrb[103].mxu0 }
 0x616   : > { %v7894_v37 = vadd.f32 %v6617_v55, %v2652_v32  ;;  %v2656_v9 = vadd.f32 %v2655_v23, %v7865_v36 }
 0x617   : > { %v7898_v12 = vadd.f32 %v6618_v18, %v2654_v20  ;;  %v6628_v20 = vld [vmem:[%s7248_s13 + $0x80] sm:$0xff]  ;;  %v6629_v18 = vld [vmem:[%s7248_s13 + $0x88] sm:$0xff] }
 0x618   : > { %v7901_v5 = vadd.f32 %v6619_v43, %v2656_v9  ;;  %v2758_v17 = vadd.f32 %v7894_v37, %v7890_v47 }
 0x61a   : > { %v2659_v13 = vpop.f32.mrb[104].mxu0  ;;  %2759 = vadd.xlane.f32.xlu0 %v2758_v17  ;;  %v2761_v8 = vadd.f32 %v7901_v5, %v7898_v12 }
 0x61b   : > { %v2660_v15 = vadd.f32 %v2659_v13, %v7862_v27  ;;  %v2661_v56 = vpop.f32.mrb[105].mxu0  ;;  %v6630_v13 = vld [vmem:[%s7248_s13 + $0x90] sm:$0xff] }
 0x61c   : > { %v2662_v34 = vadd.f32 %v2661_v56, %v7865_v36  ;;  %v2663_v25 = vpop.f32.mrb[106].mxu0  ;;  %2762 = vadd.xlane.f32.xlu1 %v2761_v8 }
 0x61d   : > { %v7910_v58 = vadd.f32 %v6620_v26, %v2660_v15  ;;  %v2664_v45 = vadd.f32 %v2663_v25, %v7862_v27  ;;  %v2665_v35 = vpop.f32.mrb[107].mxu0  ;;  %v6631_v15 = vld [vmem:[%s7248_s13 + $0x98] sm:$0xff] }
 0x61e   : > { %v7914_v7 = vadd.f32 %v6621_v22, %v2662_v34  ;;  %v2666_v29 = vadd.f32 %v2665_v35, %v7865_v36 }
 0x61f   : > { %v7918_v3 = vadd.f32 %v6622_v30, %v2664_v45  ;;  %v6632_v30 = vld [vmem:[%s7248_s13 + $0xa0] sm:$0xff] }
 0x620   : > { %v7921_v48 = vadd.f32 %v6623_v52, %v2666_v29  ;;  %v2764_v38 = vadd.f32 %v7914_v7, %v7910_v58 }
 0x622   : > { %v2669_v2 = vpop.f32.mrb[108].mxu0  ;;  %2765 = vadd.xlane.f32.xlu0 %v2764_v38  ;;  %v2767_v50 = vadd.f32 %v7921_v48, %v7918_v3 }
 0x623   : > { %v2670_v60 = vadd.f32 %v2669_v2, %v7862_v27  ;;  %v2671_v1 = vpop.f32.mrb[109].mxu0 }
 0x624   : > { %v2672_v41 = vadd.f32 %v2671_v1, %v7865_v36  ;;  %v2673_v46 = vpop.f32.mrb[110].mxu0  ;;  %2768 = vadd.xlane.f32.xlu1 %v2767_v50  ;;  %v6633_v50 = vld [vmem:[%s7248_s13 + $0xa8] sm:$0xff] }
 0x625   : > { %v7930_v40 = vadd.f32 %v6624_v6, %v2670_v60  ;;  %v2674_v28 = vadd.f32 %v2673_v46, %v7862_v27  ;;  %v2675_v54 = vpop.f32.mrb[111].mxu0  ;;  %v6635_v6 = vld [vmem:[%s7248_s13 + $0xb8] sm:$0xff] }
 0x626   : > { %v7934_v49 = vadd.f32 %v6625_v16, %v2672_v41  ;;  %v2676_v33 = vadd.f32 %v2675_v54, %v7865_v36  ;;  %v6634_v41 = vld [vmem:[%s7248_s13 + $0xb0] sm:$0xff] }
 0x627   : > { %v7938_v14 = vadd.f32 %v6626_v59, %v2674_v28 }
 0x628   : > { %v7941_v19 = vadd.f32 %v6627_v39, %v2676_v33  ;;  %v2770_v61 = vadd.f32 %v7934_v49, %v7930_v40 }
 0x62a   : > { %v2679_v51 = vpop.f32.mrb[112].mxu0  ;;  %2771 = vadd.xlane.f32.xlu0 %v2770_v61  ;;  %v2773_v21 = vadd.f32 %v7941_v19, %v7938_v14 }
 0x62b   : > { %v2680_v4 = vadd.f32 %v2679_v51, %v7862_v27  ;;  %v2681_v32 = vpop.f32.mrb[113].mxu0 }
 0x62c   : > { %v2682_v11 = vadd.f32 %v2681_v32, %v7865_v36  ;;  %v2683_v53 = vpop.f32.mrb[114].mxu0  ;;  %2774 = vadd.xlane.f32.xlu1 %v2773_v21  ;;  %v6636_v21 = vld [vmem:[%s7248_s13 + $0xc0] sm:$0xff] }
 0x62d   : > { %v7950_v23 = vadd.f32 %v6628_v20, %v2680_v4  ;;  %v2684_v55 = vadd.f32 %v2683_v53, %v7862_v27  ;;  %v2685_v9 = vpop.f32.mrb[115].mxu0  ;;  %v6637_v53 = vld [vmem:[%s7248_s13 + $0xc8] sm:$0xff] }
 0x62e   : > { %v7954_v43 = vadd.f32 %v6629_v18, %v2682_v11  ;;  %v2686_v17 = vadd.f32 %v2685_v9, %v7865_v36  ;;  %v6638_v9 = vld [vmem:[%s7248_s13 + $0xd0] sm:$0xff] }
 0x62f   : > { %v7958_v8 = vadd.f32 %v6630_v13, %v2684_v55 }
 0x630   : > { %v7961_v56 = vadd.f32 %v6631_v15, %v2686_v17  ;;  %v2776_v34 = vadd.f32 %v7954_v43, %v7950_v23  ;;  %v6639_v17 = vld [vmem:[%s7248_s13 + $0xd8] sm:$0xff] }
 0x632   : > { %v2689_v25 = vpop.f32.mrb[116].mxu0  ;;  %2777 = vadd.xlane.f32.xlu0 %v2776_v34  ;;  %v2779_v26 = vadd.f32 %v7961_v56, %v7958_v8 }
 0x633   : > { %v2690_v45 = vadd.f32 %v2689_v25, %v7862_v27  ;;  %v2691_v35 = vpop.f32.mrb[117].mxu0 }
 0x634   : > { %v2692_v22 = vadd.f32 %v2691_v35, %v7865_v36  ;;  %v2693_v29 = vpop.f32.mrb[118].mxu0  ;;  %2780 = vadd.xlane.f32.xlu1 %v2779_v26 }
 0x635   : > { %v7970_v52 = vadd.f32 %v6632_v30, %v2690_v45  ;;  %v2694_v38 = vadd.f32 %v2693_v29, %v7862_v27  ;;  %v2695_v2 = vpop.f32.mrb[119].mxu0  ;;  %v6640_v29 = vld [vmem:[%s7248_s13 + $0xe0] sm:$0xff] }
 0x636   : > { %v7974_v60 = vadd.f32 %v6633_v50, %v2692_v22  ;;  %v2696_v1 = vadd.f32 %v2695_v2, %v7865_v36  ;;  %v6641_v50 = vld [vmem:[%s7248_s13 + $0xe8] sm:$0xff] }
 0x637   : > { %v7978_v46 = vadd.f32 %v6634_v41, %v2694_v38 }
 0x638   : > { %v7981_v28 = vadd.f32 %v6635_v6, %v2696_v1  ;;  %v2782_v54 = vadd.f32 %v7974_v60, %v7970_v52  ;;  %v6642_v6 = vld [vmem:[%s7248_s13 + $0xf0] sm:$0xff] }
 0x63a   : > { %2783 = vadd.xlane.f32.xlu0 %v2782_v54  ;;  %v2699_v16 = vpop.f32.mrb[120].mxu0  ;;  %v2785_v33 = vadd.f32 %v7981_v28, %v7978_v46 }
 0x63b   : > { %v2700_v59 = vadd.f32 %v2699_v16, %v7862_v27  ;;  %v2701_v39 = vpop.f32.mrb[121].mxu0  ;;  %v6643_v16 = vld [vmem:[%s7248_s13 + $0xf8] sm:$0xff]  ;;  %s6820_s13 = sshll.u32 %s6912_s23, 4  ;;  %s6821_s13 = int_to_ptr.vmem [resolvable:$false] %s6820_s13 }
 0x63c   : > { %v2702_v61 = vadd.f32 %v2701_v39, %v7865_v36  ;;  %2786 = vadd.xlane.f32.xlu1 %v2785_v33  ;;  %v2703_v51 = vpop.f32.mrb[122].mxu0  ;;  %p6823_p3 = scmp.lt.s32.totalorder %s9435_s11, %s6821_s13 }
 0x63d   : > { %v7990_v4 = vadd.f32 %v6636_v21, %v2700_v59  ;;  %v2704_v32 = vadd.f32 %v2703_v51, %v7862_v27  ;;  %v2705_v11 = vpop.f32.mrb[123].mxu0  ;;  %v6103_v51 = vld [vmem:[#allocation10 + $0x8] ss:$16 sps:$4 sm:$0xff]   ;;  %v6105_v21 = vld [vmem:[#allocation10 + $0xc] ss:$16 sps:$4 sm:$0xff]  }
 0x63e   : > { %v7994_v20 = vadd.f32 %v6637_v53, %v2702_v61  ;;  %v2706_v55 = vadd.f32 %v2705_v11, %v7865_v36  ;;  %v6102_v61 = vld [vmem:[#allocation10 + $0x4] ss:$16 sps:$4 sm:$0xff]   ;;  %3630 = vmatprep.subr.bf16.mxu0 %v6105_v21  ;;  %v6106_v11 = vld [vmem:[#allocation10 + $0x20] ss:$16 sps:$4 sm:$0xff]   ;;  %v6109_v53 = vld [vmem:[#allocation10 + $0x28] ss:$16 sps:$4 sm:$0xff]  }
 0x63f   : > { %v7998_v18 = vadd.f32 %v6638_v9, %v2704_v32  ;;  %v6108_v32 = vld [vmem:[#allocation10 + $0x24] ss:$16 sps:$4 sm:$0xff]   ;;  %3517 = vmatprep.subr.bf16.mxu1 %v6102_v61  ;;  %3631 = vmatpush1.bf16.msra.mxu0 %v6103_v51  ;;  %v6117_v9 = vld [vmem:[#allocation10 + $0x4c] ss:$16 sps:$4 sm:$0xff]   ;;  %v6142_v21 = vld [vmem:[#allocation10 + $0xe0] ss:$16 sps:$4 sm:$0xff]  }
 0x640   : > { %v8001_v13 = vadd.f32 %v6639_v17, %v2706_v55  ;;  %v2788_v15 = vadd.f32 %v7994_v20, %v7990_v4  ;;  %v6114_v55 = vld [vmem:[#allocation10 + $0x44] ss:$16 sps:$4 sm:$0xff]   ;;  %v6112_v17 = vld [vmem:[#allocation10 + $0x40] ss:$16 sps:$4 sm:$0xff]   ;;  %v6147_v51 = vld [vmem:[#allocation10 + $0xec] ss:$16 sps:$4 sm:$0xff]  }
 0x641   : > { %v6144_v61 = vld [vmem:[#allocation10 + $0xe4] ss:$16 sps:$4 sm:$0xff]  }
 0x642   : > { %v2709_v34 = vpop.f32.mrb[124].mxu0  ;;  %2789 = vadd.xlane.f32.xlu0 %v2788_v15  ;;  %v2791_v25 = vadd.f32 %v8001_v13, %v7998_v18  ;;  %v6115_v15 = vld [vmem:[#allocation10 + $0x48] ss:$16 sps:$4 sm:$0xff]  }
 0x643   : > { %v2710_v26 = vadd.f32 %v2709_v34, %v7862_v27  ;;  %v2711_v45 = vpop.f32.mrb[125].mxu0  ;;  %v6120_v34 = vld [vmem:[#allocation10 + $0x64] ss:$16 sps:$4 sm:$0xff]  }
 0x644   : > { %v2712_v35 = vadd.f32 %v2711_v45, %v7865_v36  ;;  %v2713_v22 = vpop.f32.mrb[126].mxu0  ;;  %2792 = vadd.xlane.f32.xlu1 %v2791_v25  ;;  %v6123_v25 = vld [vmem:[#allocation10 + $0x6c] ss:$16 sps:$4 sm:$0xff]   ;;  %v6121_v45 = vld [vmem:[#allocation10 + $0x68] ss:$16 sps:$4 sm:$0xff]  }
 0x645   : > { %v8010_v30 = vadd.f32 %v6640_v29, %v2710_v26  ;;  %v2714_v38 = vadd.f32 %v2713_v22, %v7862_v27  ;;  %v2715_v2 = vpop.f32.mrb[127].mxu0  ;;  %v6100_v27 = vld [vmem:[#allocation10] ss:$16 sps:$4 sm:$0xff]   ;;  %v6129_v22 = vld [vmem:[#allocation10 + $0x8c] ss:$16 sps:$4 sm:$0xff]  }
 0x646   : > { %v8014_v1 = vadd.f32 %v6641_v50, %v2712_v35  ;;  %v2716_v41 = vadd.f32 %v2715_v2, %v7865_v36  ;;  %v6111_v36 = vld [vmem:[#allocation10 + $0x2c] ss:$16 sps:$4 sm:$0xff]   ;;  %3518 = vmatpush1.bf16.msra.mxu1 %v6100_v27  ;;  %v6118_v26 = vld [vmem:[#allocation10 + $0x60] ss:$16 sps:$4 sm:$0xff]   ;;  %v6126_v35 = vld [vmem:[#allocation10 + $0x84] ss:$16 sps:$4 sm:$0xff]  }
 0x647   : > { %v8018_v54 = vadd.f32 %v6642_v6, %v2714_v38  ;;  %3519 = vmatprep.subr.bf16.mxu1 %v6108_v32  ;;  %3632 = vmatprep.subr.bf16.mxu0 %v6111_v36  ;;  %v6124_v29 = vld [vmem:[#allocation10 + $0x80] ss:$16 sps:$4 sm:$0xff]   ;;  %v6127_v38 = vld [vmem:[#allocation10 + $0x88] ss:$16 sps:$4 sm:$0xff]   ;;  %v6132_v2 = vld [vmem:[#allocation10 + $0xa4] ss:$16 sps:$4 sm:$0xff]  }
 0x648   : > { %v8021_v33 = vadd.f32 %v6643_v16, %v2716_v41  ;;  %v2794_v59 = vadd.f32 %v8014_v1, %v8010_v30  ;;  %3633 = vmatpush1.bf16.msra.mxu0 %v6109_v53  ;;  %v6135_v50 = vld [vmem:[#allocation10 + $0xac] ss:$16 sps:$4 sm:$0xff]   ;;  %v6130_v41 = vld [vmem:[#allocation10 + $0xa0] ss:$16 sps:$4 sm:$0xff]   ;;  %v6133_v6 = vld [vmem:[#allocation10 + $0xa8] ss:$16 sps:$4 sm:$0xff]  }
 0x649   : > { %3634 = vmatprep.subr.bf16.mxu0 %v6117_v9  ;;  %v6138_v16 = vld [vmem:[#allocation10 + $0xc4] ss:$16 sps:$4 sm:$0xff]   ;;  %v6139_v27 = vld [vmem:[#allocation10 + $0xc8] ss:$16 sps:$4 sm:$0xff]   ;;  %v6148_v53 = vld [vmem:[#allocation10 + $0x100] ss:$16 sps:$4 sm:$0xff]  }
 0x64a   : > { %2795 = vadd.xlane.f32.xlu0 %v2794_v59  ;;  %v2797_v39 = vadd.f32 %v8021_v33, %v8018_v54  ;;  %3520 = vmatpush1.bf16.msra.mxu1 %v6106_v11  ;;  %v6141_v59 = vld [vmem:[#allocation10 + $0xcc] ss:$16 sps:$4 sm:$0xff]   ;;  %v6145_v32 = vld [vmem:[#allocation10 + $0xe8] ss:$16 sps:$4 sm:$0xff]   ;;  %v6150_v36 = vld [vmem:[#allocation10 + $0x104] ss:$16 sps:$4 sm:$0xff]  }
 0x64b   : > { %3521 = vmatprep.subr.bf16.mxu1 %v6114_v55  ;;  %v6153_v11 = vld [vmem:[#allocation10 + $0x10c] ss:$16 sps:$4 sm:$0xff]   ;;  %v6151_v55 = vld [vmem:[#allocation10 + $0x108] ss:$16 sps:$4 sm:$0xff]   ;;  %v6156_v9 = vld [vmem:[#allocation10 + $0x124] ss:$16 sps:$4 sm:$0xff]  }
 0x64c   : > { %2798 = vadd.xlane.f32.xlu1 %v2797_v39  ;;  %3635 = vmatpush1.bf16.msra.mxu0 %v6115_v15  ;;  %v6136_v39 = vld [vmem:[#allocation10 + $0xc0] ss:$16 sps:$4 sm:$0xff]  }
 0x64d   : > { %3636 = vmatprep.subr.bf16.mxu0 %v6123_v25  ;;  %v6154_v15 = vld [vmem:[#allocation10 + $0x120] ss:$16 sps:$4 sm:$0xff]  }
 0x64e   : > { %3522 = vmatpush1.bf16.msra.mxu1 %v6112_v17  ;;  %v6159_v17 = vld [vmem:[#allocation10 + $0x12c] ss:$16 sps:$4 sm:$0xff]  }
 0x64f   : > { %3523 = vmatprep.subr.bf16.mxu1 %v6120_v34  ;;  %v6157_v34 = vld [vmem:[#allocation10 + $0x128] ss:$16 sps:$4 sm:$0xff]  }
 0x650   : > { %3637 = vmatpush1.bf16.msra.mxu0 %v6121_v45 }
 0x651   : > { %3638 = vmatprep.subr.bf16.mxu0 %v6129_v22 }
 0x652   : > { %3524 = vmatpush1.bf16.msra.mxu1 %v6118_v26 }
 0x653   : > { %3525 = vmatprep.subr.bf16.mxu1 %v6126_v35 }
 0x654   : > { %3639 = vmatpush1.bf16.msra.mxu0 %v6127_v38 }
 0x655   : > { %3640 = vmatprep.subr.bf16.mxu0 %v6135_v50 }
 0x656   : > { %3526 = vmatpush1.bf16.msra.mxu1 %v6124_v29 }
 0x657   : > { %3527 = vmatprep.subr.bf16.mxu1 %v6132_v2 }
 0x658   : > { %3641 = vmatpush1.bf16.msra.mxu0 %v6133_v6 }
 0x659   : > { %3642 = vmatprep.subr.bf16.mxu0 %v6141_v59 }
 0x65a   : > { %3528 = vmatpush1.bf16.msra.mxu1 %v6130_v41 }
 0x65b   : > { %3529 = vmatprep.subr.bf16.mxu1 %v6138_v16 }
 0x65c   : > { %3643 = vmatpush1.bf16.msra.mxu0 %v6139_v27 }
 0x65d   : > { %3644 = vmatprep.subr.bf16.mxu0 %v6147_v51 }
 0x65e   : > { %3530 = vmatpush1.bf16.msra.mxu1 %v6136_v39 }
 0x65f   : > { %3531 = vmatprep.subr.bf16.mxu1 %v6144_v61 }
 0x660   : > { %3645 = vmatpush1.bf16.msra.mxu0 %v6145_v32 }
 0x661   : > { %3646 = vmatprep.subr.bf16.mxu0 %v6153_v11 }
 0x662   : > { %3532 = vmatpush1.bf16.msra.mxu1 %v6142_v21 }
 0x663   : > { %3533 = vmatprep.subr.bf16.mxu1 %v6150_v36 }
 0x664   : > { %3647 = vmatpush1.bf16.msra.mxu0 %v6151_v55 }
 0x665   : > { %3648 = vmatprep.subr.bf16.mxu0 %v6159_v17 }
 0x666   : > { %3534 = vmatpush1.bf16.msra.mxu1 %v6148_v53 }
 0x667   : > { %3535 = vmatprep.subr.bf16.mxu1 %v6156_v9 }
 0x668   : > { %3649 = vmatpush1.bf16.msra.mxu0 %v6157_v34 }
 0x66a   : > { %3536 = vmatpush1.bf16.msra.mxu1 %v6154_v15 }
 0x69f   : > { %v2754_v25 = vpop.xlane.xlu0 %2753 }
 0x6a0   : > { %v2801_v26 = vmul.f32 0.00390625, %v2754_v25 }
 0x6a1   : > { %v2757_v45 = vpop.xlane.xlu1 %2756 }
 0x6a2   : > { %v8028_v35 = vsub.f32 %v7870_v63, %v2801_v26  ;;  %v8031_v22 = vsub.f32 %v7874_v31, %v2801_v26  ;;  %v2802_v29 = vmul.f32 0.00390625, %v2757_v45 }
 0x6a4   : > { %v8034_v38 = vsub.f32 %v7878_v24, %v2802_v29  ;;  %v8037_v2 = vsub.f32 %v7881_v57, %v2802_v29  ;;  %v2849_v50 = vmul.f32 %v8028_v35, %v8028_v35  ;;  %v2850_v41 = vmul.f32 %v8031_v22, %v8031_v22 }
 0x6a6   : > { %v2881_v6 = vadd.f32 %v2850_v41, %v2849_v50  ;;  %v2851_v63 = vmul.f32 %v8034_v38, %v8034_v38  ;;  %v2852_v31 = vmul.f32 %v8037_v2, %v8037_v2  ;;  %v6162_v50 = vld [vmem:[#allocation10 + $0x144] ss:$16 sps:$4 sm:$0xff]   ;;  %v6165_v41 = vld [vmem:[#allocation10 + $0x14c] ss:$16 sps:$4 sm:$0xff]  }
 0x6a7   : > { %v2760_v16 = vpop.xlane.xlu0 %2759  ;;  %3537 = vmatprep.subr.bf16.mxu1 %v6162_v50  ;;  %3650 = vmatprep.subr.bf16.mxu0 %v6165_v41 }
 0x6a8   : > { %v2803_v59 = vmul.f32 0.00390625, %v2760_v16  ;;  %2882 = vadd.xlane.f32.xlu0 %v2881_v6  ;;  %v2884_v24 = vadd.f32 %v2852_v31, %v2851_v63  ;;  %v6160_v6 = vld [vmem:[#allocation10 + $0x140] ss:$16 sps:$4 sm:$0xff]   ;;  %v6163_v63 = vld [vmem:[#allocation10 + $0x148] ss:$16 sps:$4 sm:$0xff]  }
 0x6a9   : > { %v2763_v39 = vpop.xlane.xlu1 %2762  ;;  %3538 = vmatpush1.bf16.msra.mxu1 %v6160_v6  ;;  %3651 = vmatpush1.bf16.msra.mxu0 %v6163_v63  ;;  %v6183_v6 = vld [vmem:[#allocation10 + $0x1ac] ss:$16 sps:$4 sm:$0xff]   ;;  %v6178_v63 = vld [vmem:[#allocation10 + $0x1a0] ss:$16 sps:$4 sm:$0xff]  }
 0x6aa   : > { %v8048_v57 = vsub.f32 %v7890_v47, %v2803_v59  ;;  %v8051_v27 = vsub.f32 %v7894_v37, %v2803_v59  ;;  %v2804_v61 = vmul.f32 0.00390625, %v2763_v39  ;;  %2885 = vadd.xlane.f32.xlu1 %v2884_v24 }
 0x6ac   : > { %v8054_v51 = vsub.f32 %v7898_v12, %v2804_v61  ;;  %v8057_v21 = vsub.f32 %v7901_v5, %v2804_v61  ;;  %v2853_v32 = vmul.f32 %v8048_v57, %v8048_v57  ;;  %v2854_v36 = vmul.f32 %v8051_v27, %v8051_v27  ;;  %v6168_v61 = vld [vmem:[#allocation10 + $0x164] ss:$16 sps:$4 sm:$0xff]  }
 0x6ad   : > { %3539 = vmatprep.subr.bf16.mxu1 %v6168_v61 }
 0x6ae   : > { %v2887_v11 = vadd.f32 %v2854_v36, %v2853_v32  ;;  %v2855_v47 = vmul.f32 %v8054_v51, %v8054_v51  ;;  %v2856_v37 = vmul.f32 %v8057_v21, %v8057_v21  ;;  %v6171_v32 = vld [vmem:[#allocation10 + $0x16c] ss:$16 sps:$4 sm:$0xff]   ;;  %v6166_v36 = vld [vmem:[#allocation10 + $0x160] ss:$16 sps:$4 sm:$0xff]  }
 0x6af   : > { %v2766_v53 = vpop.xlane.xlu0 %2765  ;;  %3652 = vmatprep.subr.bf16.mxu0 %v6171_v32  ;;  %3540 = vmatpush1.bf16.msra.mxu1 %v6166_v36  ;;  %v6186_v32 = vld [vmem:[#allocation10 + $0x1c4] ss:$16 sps:$4 sm:$0xff]  }
 0x6b0   : > { %v2805_v55 = vmul.f32 0.00390625, %v2766_v53  ;;  %2888 = vadd.xlane.f32.xlu0 %v2887_v11  ;;  %v2890_v12 = vadd.f32 %v2856_v37, %v2855_v47  ;;  %v6169_v11 = vld [vmem:[#allocation10 + $0x168] ss:$16 sps:$4 sm:$0xff]  }
 0x6b1   : > { %v2769_v9 = vpop.xlane.xlu1 %2768  ;;  %3653 = vmatpush1.bf16.msra.mxu0 %v6169_v11  ;;  %v6184_v11 = vld [vmem:[#allocation10 + $0x1c0] ss:$16 sps:$4 sm:$0xff]  }
 0x6b2   : > { %v8068_v5 = vsub.f32 %v7910_v58, %v2805_v55  ;;  %v8071_v17 = vsub.f32 %v7914_v7, %v2805_v55  ;;  %v2806_v15 = vmul.f32 0.00390625, %v2769_v9  ;;  %2891 = vadd.xlane.f32.xlu1 %v2890_v12  ;;  %v6174_v12 = vld [vmem:[#allocation10 + $0x184] ss:$16 sps:$4 sm:$0xff]  }
 0x6b3   : > { %3541 = vmatprep.subr.bf16.mxu1 %v6174_v12 }
 0x6b4   : > { %v8074_v34 = vsub.f32 %v7918_v3, %v2806_v15  ;;  %v8077_v25 = vsub.f32 %v7921_v48, %v2806_v15  ;;  %v2857_v26 = vmul.f32 %v8068_v5, %v8068_v5  ;;  %v2858_v45 = vmul.f32 %v8071_v17, %v8071_v17  ;;  %v6172_v15 = vld [vmem:[#allocation10 + $0x180] ss:$16 sps:$4 sm:$0xff]  }
 0x6b5   : > { %3542 = vmatpush1.bf16.msra.mxu1 %v6172_v15  ;;  %v6195_v15 = vld [vmem:[#allocation10 + $0x1ec] ss:$16 sps:$4 sm:$0xff]  }
 0x6b6   : > { %v2893_v29 = vadd.f32 %v2858_v45, %v2857_v26  ;;  %v2859_v58 = vmul.f32 %v8074_v34, %v8074_v34  ;;  %v2860_v7 = vmul.f32 %v8077_v25, %v8077_v25  ;;  %v6175_v26 = vld [vmem:[#allocation10 + $0x188] ss:$16 sps:$4 sm:$0xff]  }
 0x6b7   : > { %v2772_v3 = vpop.xlane.xlu0 %2771 }
 0x6b8   : > { %v2807_v48 = vmul.f32 0.00390625, %v2772_v3  ;;  %2894 = vadd.xlane.f32.xlu0 %v2893_v29  ;;  %v2896_v31 = vadd.f32 %v2860_v7, %v2859_v58  ;;  %v6180_v3 = vld [vmem:[#allocation10 + $0x1a4] ss:$16 sps:$4 sm:$0xff]  }
 0x6b9   : > { %v2775_v16 = vpop.xlane.xlu1 %2774  ;;  %3543 = vmatprep.subr.bf16.mxu1 %v6180_v3 }
 0x6ba   : > { %v8088_v59 = vsub.f32 %v7930_v40, %v2807_v48  ;;  %v8091_v24 = vsub.f32 %v7934_v49, %v2807_v48  ;;  %v2808_v39 = vmul.f32 0.00390625, %v2775_v16  ;;  %2897 = vadd.xlane.f32.xlu1 %v2896_v31  ;;  %v6181_v48 = vld [vmem:[#allocation10 + $0x1a8] ss:$16 sps:$4 sm:$0xff]   ;;  %3544 = vmatpush1.bf16.msra.mxu1 %v6178_v63 }
 0x6bb   : > { %3545 = vmatprep.subr.bf16.mxu1 %v6186_v32 }
 0x6bc   : > { %v8094_v47 = vsub.f32 %v7938_v14, %v2808_v39  ;;  %v8097_v37 = vsub.f32 %v7941_v19, %v2808_v39  ;;  %v2861_v40 = vmul.f32 %v8088_v59, %v8088_v59  ;;  %v2862_v49 = vmul.f32 %v8091_v24, %v8091_v24  ;;  %v6177_v19 = vld [vmem:[#allocation10 + $0x18c] ss:$16 sps:$4 sm:$0xff]  }
 0x6bd   : > { %3654 = vmatprep.subr.bf16.mxu0 %v6177_v19 }
 0x6be   : > { %v2899_v53 = vadd.f32 %v2862_v49, %v2861_v40  ;;  %v2863_v55 = vmul.f32 %v8094_v47, %v8094_v47  ;;  %v2864_v14 = vmul.f32 %v8097_v37, %v8097_v37  ;;  %3655 = vmatpush1.bf16.msra.mxu0 %v6175_v26  ;;  %v6187_v40 = vld [vmem:[#allocation10 + $0x1c8] ss:$16 sps:$4 sm:$0xff]   ;;  %3546 = vmatpush1.bf16.msra.mxu1 %v6184_v11  ;;  %v6190_v26 = vld [vmem:[#allocation10 + $0x1e0] ss:$16 sps:$4 sm:$0xff]  }
 0x6bf   : > { %v2778_v9 = vpop.xlane.xlu0 %2777  ;;  %3656 = vmatprep.subr.bf16.mxu0 %v6183_v6 }
 0x6c0   : > { %v2809_v45 = vmul.f32 0.00390625, %v2778_v9  ;;  %2900 = vadd.xlane.f32.xlu0 %v2899_v53  ;;  %v2902_v29 = vadd.f32 %v2864_v14, %v2863_v55  ;;  %v6192_v9 = vld [vmem:[#allocation10 + $0x1e4] ss:$16 sps:$4 sm:$0xff]  }
 0x6c1   : > { %v2781_v58 = vpop.xlane.xlu1 %2780  ;;  %3547 = vmatprep.subr.bf16.mxu1 %v6192_v9 }
 0x6c2   : > { %v8108_v7 = vsub.f32 %v7950_v23, %v2809_v45  ;;  %v8111_v50 = vsub.f32 %v7954_v43, %v2809_v45  ;;  %v2810_v41 = vmul.f32 0.00390625, %v2781_v58  ;;  %2903 = vadd.xlane.f32.xlu1 %v2902_v29  ;;  %3657 = vmatpush1.bf16.msra.mxu0 %v6181_v48  ;;  %v6193_v45 = vld [vmem:[#allocation10 + $0x1e8] ss:$16 sps:$4 sm:$0xff]  }
 0x6c3   : > { %3548 = vmatpush1.bf16.msra.mxu1 %v6190_v26 }
 0x6c4   : > { %v8114_v31 = vsub.f32 %v7958_v8, %v2810_v41  ;;  %v8117_v16 = vsub.f32 %v7961_v56, %v2810_v41  ;;  %v2865_v23 = vmul.f32 %v8108_v7, %v8108_v7  ;;  %v2866_v43 = vmul.f32 %v8111_v50, %v8111_v50  ;;  %v6189_v56 = vld [vmem:[#allocation10 + $0x1cc] ss:$16 sps:$4 sm:$0xff]  }
 0x6c5   : > { %3658 = vmatprep.subr.bf16.mxu0 %v6189_v56 }
 0x6c6   : > { %v2905_v39 = vadd.f32 %v2866_v43, %v2865_v23  ;;  %v2867_v61 = vmul.f32 %v8114_v31, %v8114_v31  ;;  %v2868_v8 = vmul.f32 %v8117_v16, %v8117_v16  ;;  %3659 = vmatpush1.bf16.msra.mxu0 %v6187_v40 }
 0x6c7   : > { %v2784_v36 = vpop.xlane.xlu0 %2783  ;;  %3660 = vmatprep.subr.bf16.mxu0 %v6195_v15 }
 0x6c8   : > { %v2811_v49 = vmul.f32 0.00390625, %v2784_v36  ;;  %2906 = vadd.xlane.f32.xlu0 %v2905_v39  ;;  %v2908_v53 = vadd.f32 %v2868_v8, %v2867_v61 }
 0x6c9   : > { %v2787_v55 = vpop.xlane.xlu1 %2786 }
 0x6ca   : > { %v8128_v14 = vsub.f32 %v7970_v52, %v2811_v49  ;;  %v8131_v12 = vsub.f32 %v7974_v60, %v2811_v49  ;;  %v2812_v19 = vmul.f32 0.00390625, %v2787_v55  ;;  %2909 = vadd.xlane.f32.xlu1 %v2908_v53  ;;  %3661 = vmatpush1.bf16.msra.mxu0 %v6193_v45 }
 0x6cc   : > { %v8134_v29 = vsub.f32 %v7978_v46, %v2812_v19  ;;  %v8137_v58 = vsub.f32 %v7981_v28, %v2812_v19  ;;  %v2869_v52 = vmul.f32 %v8128_v14, %v8128_v14  ;;  %v2870_v60 = vmul.f32 %v8131_v12, %v8131_v12 }
 0x6ce   : > { %v2911_v41 = vadd.f32 %v2870_v60, %v2869_v52  ;;  %v2871_v3 = vmul.f32 %v8134_v29, %v8134_v29  ;;  %v2872_v46 = vmul.f32 %v8137_v58, %v8137_v58 }
 0x6cf   : > { %v2790_v6 = vpop.xlane.xlu0 %2789 }
 0x6d0   : > { %v2813_v28 = vmul.f32 0.00390625, %v2790_v6  ;;  %2912 = vadd.xlane.f32.xlu0 %v2911_v41  ;;  %v2914_v63 = vadd.f32 %v2872_v46, %v2871_v3 }
 0x6d1   : > { %v2793_v48 = vpop.xlane.xlu1 %2792 }
 0x6d2   : > { %v8148_v23 = vsub.f32 %v7990_v4, %v2813_v28  ;;  %v8151_v43 = vsub.f32 %v7994_v20, %v2813_v28  ;;  %v2814_v39 = vmul.f32 0.00390625, %v2793_v48  ;;  %2915 = vadd.xlane.f32.xlu1 %v2914_v63 }
 0x6d4   : > { %v8154_v61 = vsub.f32 %v7998_v18, %v2814_v39  ;;  %v8157_v8 = vsub.f32 %v8001_v13, %v2814_v39  ;;  %v2873_v32 = vmul.f32 %v8148_v23, %v8148_v23  ;;  %v2874_v56 = vmul.f32 %v8151_v43, %v8151_v43  ;;  %v2750_v39 = vld [vmem:[%s9491_s6] sm:$0x3] }
 0x6d6   : > { %v2917_v36 = vadd.f32 %v2874_v56, %v2873_v32  ;;  %v2875_v4 = vmul.f32 %v8154_v61, %v8154_v61  ;;  %v2876_v20 = vmul.f32 %v8157_v8, %v8157_v8 }
 0x6d7   : > { %v2796_v11 = vpop.xlane.xlu0 %2795 }
 0x6d8   : > { %v2815_v40 = vmul.f32 0.00390625, %v2796_v11  ;;  %2918 = vadd.xlane.f32.xlu0 %v2917_v36  ;;  %v2920_v18 = vadd.f32 %v2876_v20, %v2875_v4  ;;  %v8191_v4 = vrot.slane %v2750_v39, %v7397_v42  ;;  %v2751_v20 = vld [vmem:[%s9492_s7] sm:$0x3]  ;;  %v8197_v11 = vrot.slane %v2750_v39, %v7400_v44 }
 0x6d9   : > { %v2799_v49 = vpop.xlane.xlu1 %2798 }
 0x6da   : > { %v8168_v13 = vsub.f32 %v8010_v30, %v2815_v40  ;;  %v8171_v53 = vsub.f32 %v8014_v1, %v2815_v40  ;;  %v2816_v55 = vmul.f32 0.00390625, %v2799_v49  ;;  %2921 = vadd.xlane.f32.xlu1 %v2920_v18 }
 0x6dc   : > { %v8174_v19 = vsub.f32 %v8018_v54, %v2816_v55  ;;  %v8177_v9 = vsub.f32 %v8021_v33, %v2816_v55  ;;  %v2877_v15 = vmul.f32 %v8168_v13, %v8168_v13  ;;  %v2878_v26 = vmul.f32 %v8171_v53, %v8171_v53  ;;  %v6198_v54 = vld [vmem:[#allocation11 + $0x4] ss:$8 sps:$4 sm:$0xff]  }
 0x6dd   : > { %4491 = vmatprep.subr.bf16.mxu1 %v6198_v54 }
 0x6de   : > { %v2923_v45 = vadd.f32 %v2878_v26, %v2877_v15  ;;  %v2879_v30 = vmul.f32 %v8174_v19, %v8174_v19  ;;  %v2880_v1 = vmul.f32 %v8177_v9, %v8177_v9 }
 0x6e0   : > { %2924 = vadd.xlane.f32.xlu0 %v2923_v45  ;;  %v2926_v52 = vadd.f32 %v2880_v1, %v2879_v30  ;;  %v8202_v45 = vrot.slane %v2751_v20, %v7397_v42  ;;  %v8205_v30 = vrot.slane %v2751_v20, %v7400_v44  ;;  %v6196_v20 = vld [vmem:[#allocation11] ss:$8 sps:$4 sm:$0xff]  }
 0x6e2   : > { %2927 = vadd.xlane.f32.xlu1 %v2926_v52 }
 0x735   : > { %v2883_v33 = vpop.xlane.xlu0 %2882 }
 0x736   : > { %v2929_v60 = vmul.f32 0.00390625, %v2883_v33 }
 0x737   : > { %v2886_v41 = vpop.xlane.xlu1 %2885 }
 0x738   : > { %v2945_v3 = vadd.f32 1e-12, %v2929_v60  ;;  %v2930_v46 = vmul.f32 0.00390625, %v2886_v41 }
 0x73a   : > { %6420 = vrsqrt.f32 %v2945_v3  ;;  %v2946_v6 = vadd.f32 1e-12, %v2930_v46 }
 0x73c   : > { %6422 = vrsqrt.f32 %v2946_v6 }
 0x73d   : > { %v2889_v28 = vpop.xlane.xlu0 %2888 }
 0x73e   : > { %v2931_v63 = vmul.f32 0.00390625, %v2889_v28 }
 0x73f   : > { %v2892_v48 = vpop.xlane.xlu1 %2891 }
 0x740   : > { %v2947_v32 = vadd.f32 1e-12, %v2931_v63  ;;  %v2932_v56 = vmul.f32 0.00390625, %v2892_v48 }
 0x742   : > { %6424 = vrsqrt.f32 %v2947_v32  ;;  %v2948_v36 = vadd.f32 1e-12, %v2932_v56 }
 0x744   : > { %v6421_v40 = vpop.eup %6420  ;;  %6426 = vrsqrt.f32 %v2948_v36 }
 0x745   : > { %v2977_v18 = vmul.f32 %v6421_v40, %v8028_v35  ;;  %v2895_v49 = vpop.xlane.xlu0 %2894  ;;  %v2978_v55 = vmul.f32 %v6421_v40, %v8031_v22 }
 0x746   : > { %v6423_v15 = vpop.eup %6422  ;;  %v2933_v26 = vmul.f32 0.00390625, %v2895_v49  ;;  %v6201_v49 = vld [vmem:[#allocation11 + $0x14] ss:$8 sps:$4 sm:$0xff]  }
 0x747   : > { %v3020_v1 = vmul.f32 %v8191_v4, %v2977_v18  ;;  %v2979_v52 = vmul.f32 %v6423_v15, %v8034_v38  ;;  %v2898_v54 = vpop.xlane.xlu1 %2897  ;;  %v2980_v33 = vmul.f32 %v6423_v15, %v8037_v2  ;;  %v3021_v35 = vmul.f32 %v8197_v11, %v2978_v55 }
 0x748   : > { %v2949_v60 = vadd.f32 1e-12, %v2933_v26  ;;  %v2934_v41 = vmul.f32 0.00390625, %v2898_v54 }
 0x749   : > { %v3022_v22 = vmul.f32 %v8191_v4, %v2979_v52  ;;  %v3023_v3 = vmul.f32 %v8197_v11, %v2980_v33  ;;  %v8214_v6 = vadd.f32 %v8205_v30, %v3021_v35  ;;  %v8220_v38 = vadd.f32 %v8202_v45, %v3020_v1  ;;  %v6199_v35 = vld [vmem:[#allocation11 + $0x10] ss:$8 sps:$4 sm:$0xff]  }
 0x74a   : > { %6428 = vrsqrt.f32 %v2949_v60  ;;  %v2950_v46 = vadd.f32 1e-12, %v2934_v41 }
 0x74b   : > { %9591 = vst [vmem:[#allocation24_spill] sm:$0xff] %v8214_v6  ;;  %v8217_v28 = vadd.f32 %v8205_v30, %v3023_v3  ;;  %9593 = vst [vmem:[#allocation26_spill] sm:$0xff] %v8220_v38  ;;  %v8223_v2 = vadd.f32 %v8202_v45, %v3022_v22 }
 0x74c   : > { %v6425_v63 = vpop.eup %6424  ;;  %6430 = vrsqrt.f32 %v2950_v46 }
 0x74d   : > { %9592 = vst [vmem:[#allocation25_spill] sm:$0xff] %v8217_v28  ;;  %9594 = vst [vmem:[#allocation27_spill] sm:$0xff] %v8223_v2  ;;  %v2901_v48 = vpop.xlane.xlu0 %2900  ;;  %v3160_v39 = vpack.c.bf16 %v8217_v28, %v8214_v6  ;;  %v3159_v32 = vpack.c.bf16 %v8223_v2, %v8220_v38  ;;  %v2982_v56 = vmul.f32 %v6425_v63, %v8051_v27  ;;  %v6244_v28 = vld [vmem:[#allocation11 + $0x100] ss:$8 sps:$4 sm:$0xff]   ;;  %v6249_v2 = vld [vmem:[#allocation11 + $0x114] ss:$8 sps:$4 sm:$0xff]  }
 0x74e   : > { %v2981_v36 = vmul.f32 %v6425_v63, %v8048_v57  ;;  %v6427_v40 = vpop.eup %6426  ;;  %v2935_v18 = vmul.f32 0.00390625, %v2901_v48 }
 0x74f   : > { %3549 = vmatprep.mubr.bf16.mxu1 %v3160_v39  ;;  %3662 = vmatprep.mubr.bf16.mxu0 %v3160_v39  ;;  %v2904_v55 = vpop.xlane.xlu1 %2903  ;;  %v2984_v15 = vmul.f32 %v6427_v40, %v8057_v21  ;;  %v3025_v26 = vmul.f32 %v8197_v11, %v2982_v56  ;;  %v2983_v1 = vmul.f32 %v6427_v40, %v8054_v51  ;;  %v6204_v21 = vld [vmem:[#allocation11 + $0x24] ss:$8 sps:$4 sm:$0xff]  }
 0x750   : > { %v2951_v52 = vadd.f32 1e-12, %v2935_v18  ;;  %v2936_v54 = vmul.f32 0.00390625, %v2904_v55  ;;  %3550 = vmatmul.mubr.bf16.vlgmr.msra.gmra.mrb[64].mxu1 %v3159_v32  ;;  %3663 = vmatmul.mubr.bf16.vlgmr.msra.gmra.mrb[128].mxu0 %v3159_v32  ;;  %v3024_v27 = vmul.f32 %v8191_v4, %v2981_v36  ;;  %v6202_v36 = vld [vmem:[#allocation11 + $0x20] ss:$8 sps:$4 sm:$0xff]  }
 0x751   : > { %v3027_v57 = vmul.f32 %v8197_v11, %v2984_v15  ;;  %v3026_v33 = vmul.f32 %v8191_v4, %v2983_v1  ;;  %4492 = vmatpush1.bf16.msra.mxu1 %v6196_v20  ;;  %v8238_v41 = vadd.f32 %v8205_v30, %v3025_v26  ;;  %v6207_v18 = vld [vmem:[#allocation11 + $0x34] ss:$8 sps:$4 sm:$0xff]  }
 0x752   : > { %6432 = vrsqrt.f32 %v2951_v52  ;;  %v2952_v60 = vadd.f32 1e-12, %v2936_v54  ;;  %4493 = vmatprep.subr.bf16.mxu1 %v6201_v49  ;;  %v8244_v22 = vadd.f32 %v8202_v45, %v3024_v27  ;;  %v6205_v27 = vld [vmem:[#allocation11 + $0x30] ss:$8 sps:$4 sm:$0xff]  }
 0x753   : > { %9595 = vst [vmem:[#allocation28_spill] sm:$0xff] %v8238_v41  ;;  %v8241_v51 = vadd.f32 %v8205_v30, %v3027_v57  ;;  %v8247_v3 = vadd.f32 %v8202_v45, %v3026_v33 }
 0x754   : > { %9597 = vst [vmem:[#allocation30_spill] sm:$0xff] %v8244_v22  ;;  %v6429_v46 = vpop.eup %6428  ;;  %6434 = vrsqrt.f32 %v2952_v60 }
 0x755   : > { %9596 = vst [vmem:[#allocation29_spill] sm:$0xff] %v8241_v51  ;;  %9598 = vst [vmem:[#allocation31_spill] sm:$0xff] %v8247_v3  ;;  %v2907_v63 = vpop.xlane.xlu0 %2906  ;;  %v3162_v48 = vpack.c.bf16 %v8241_v51, %v8238_v41  ;;  %v3161_v39 = vpack.c.bf16 %v8247_v3, %v8244_v22  ;;  %v2986_v32 = vmul.f32 %v6429_v46, %v8071_v17  ;;  %4494 = vmatpush1.bf16.msra.mxu1 %v6199_v35 }
 0x756   : > { %v2985_v56 = vmul.f32 %v6429_v46, %v8068_v5  ;;  %v6431_v20 = vpop.eup %6430  ;;  %v2937_v40 = vmul.f32 0.00390625, %v2907_v63  ;;  %4495 = vmatprep.subr.bf16.mxu1 %v6204_v21 }
 0x757   : > { %3559 = vmatprep.mubr.bf16.mxu1 %v3162_v48  ;;  %3672 = vmatprep.mubr.bf16.mxu0 %v3162_v48  ;;  %v2910_v49 = vpop.xlane.xlu1 %2909  ;;  %v2988_v55 = vmul.f32 %v6431_v20, %v8077_v25  ;;  %v3029_v15 = vmul.f32 %v8197_v11, %v2986_v32  ;;  %v2987_v26 = vmul.f32 %v6431_v20, %v8074_v34  ;;  %v6210_v25 = vld [vmem:[#allocation11 + $0x44] ss:$8 sps:$4 sm:$0xff]  }
 0x758   : > { %v2953_v1 = vadd.f32 1e-12, %v2937_v40  ;;  %v2938_v52 = vmul.f32 0.00390625, %v2910_v49  ;;  %3560 = vmatmul.mubr.bf16.gmra.mrb[68].mxu1 %v3161_v39  ;;  %3673 = vmatmul.mubr.bf16.gmra.mrb[132].mxu0 %v3161_v39  ;;  %v3028_v5 = vmul.f32 %v8191_v4, %v2985_v56  ;;  %v6208_v56 = vld [vmem:[#allocation11 + $0x40] ss:$8 sps:$4 sm:$0xff]  }
 0x759   : > { %v3031_v17 = vmul.f32 %v8197_v11, %v2988_v55  ;;  %v3030_v54 = vmul.f32 %v8191_v4, %v2987_v26  ;;  %4496 = vmatpush1.bf16.msra.mxu1 %v6202_v36  ;;  %v8262_v33 = vadd.f32 %v8205_v30, %v3029_v15  ;;  %v6213_v40 = vld [vmem:[#allocation11 + $0x54] ss:$8 sps:$4 sm:$0xff]  }
 0x75a   : > { %6436 = vrsqrt.f32 %v2953_v1  ;;  %v2954_v57 = vadd.f32 1e-12, %v2938_v52  ;;  %4497 = vmatprep.subr.bf16.mxu1 %v6207_v18  ;;  %v8268_v35 = vadd.f32 %v8202_v45, %v3028_v5  ;;  %v6211_v5 = vld [vmem:[#allocation11 + $0x50] ss:$8 sps:$4 sm:$0xff]  }
 0x75b   : > { %9599 = vst [vmem:[#allocation32_spill] sm:$0xff] %v8262_v33  ;;  %v8265_v34 = vadd.f32 %v8205_v30, %v3031_v17  ;;  %v8271_v60 = vadd.f32 %v8202_v45, %v3030_v54 }
 0x75c   : > { %9601 = vst [vmem:[#allocation34_spill] sm:$0xff] %v8268_v35  ;;  %v6433_v21 = vpop.eup %6432  ;;  %6438 = vrsqrt.f32 %v2954_v57 }
 0x75d   : > { %9600 = vst [vmem:[#allocation33_spill] sm:$0xff] %v8265_v34  ;;  %9602 = vst [vmem:[#allocation35_spill] sm:$0xff] %v8271_v60  ;;  %v2913_v46 = vpop.xlane.xlu0 %2912  ;;  %v3164_v63 = vpack.c.bf16 %v8265_v34, %v8262_v33  ;;  %v3163_v48 = vpack.c.bf16 %v8271_v60, %v8268_v35  ;;  %v2990_v39 = vmul.f32 %v6433_v21, %v8091_v24  ;;  %4498 = vmatpush1.bf16.msra.mxu1 %v6205_v27 }
 0x75e   : > { %v2989_v32 = vmul.f32 %v6433_v21, %v8088_v59  ;;  %v6435_v36 = vpop.eup %6434  ;;  %v2939_v20 = vmul.f32 0.00390625, %v2913_v46  ;;  %4499 = vmatprep.subr.bf16.mxu1 %v6210_v25 }
 0x75f   : > { %3569 = vmatprep.mubr.bf16.mxu1 %v3164_v63  ;;  %3682 = vmatprep.mubr.bf16.mxu0 %v3164_v63  ;;  %v2916_v18 = vpop.xlane.xlu1 %2915  ;;  %v2992_v49 = vmul.f32 %v6435_v36, %v8097_v37  ;;  %v3033_v55 = vmul.f32 %v8197_v11, %v2990_v39  ;;  %v2991_v15 = vmul.f32 %v6435_v36, %v8094_v47  ;;  %v6216_v37 = vld [vmem:[#allocation11 + $0x64] ss:$8 sps:$4 sm:$0xff]  }
 0x760   : > { %v2955_v26 = vadd.f32 1e-12, %v2939_v20  ;;  %v2940_v1 = vmul.f32 0.00390625, %v2916_v18  ;;  %3570 = vmatmul.mubr.bf16.gmra.mrb[72].mxu1 %v3163_v48  ;;  %3683 = vmatmul.mubr.bf16.gmra.mrb[136].mxu0 %v3163_v48  ;;  %v3032_v59 = vmul.f32 %v8191_v4, %v2989_v32  ;;  %v6214_v32 = vld [vmem:[#allocation11 + $0x60] ss:$8 sps:$4 sm:$0xff]  }
 0x761   : > { %v3035_v24 = vmul.f32 %v8197_v11, %v2992_v49  ;;  %v3034_v52 = vmul.f32 %v8191_v4, %v2991_v15  ;;  %4500 = vmatpush1.bf16.msra.mxu1 %v6208_v56  ;;  %v8286_v54 = vadd.f32 %v8205_v30, %v3033_v55  ;;  %v6219_v20 = vld [vmem:[#allocation11 + $0x74] ss:$8 sps:$4 sm:$0xff]  }
 0x762   : > { %6440 = vrsqrt.f32 %v2955_v26  ;;  %v2956_v17 = vadd.f32 1e-12, %v2940_v1  ;;  %4501 = vmatprep.subr.bf16.mxu1 %v6213_v40  ;;  %v8292_v27 = vadd.f32 %v8202_v45, %v3032_v59  ;;  %v6217_v59 = vld [vmem:[#allocation11 + $0x70] ss:$8 sps:$4 sm:$0xff]  }
 0x763   : > { %9603 = vst [vmem:[#allocation36_spill] sm:$0xff] %v8286_v54  ;;  %v8289_v47 = vadd.f32 %v8205_v30, %v3035_v24  ;;  %v8295_v57 = vadd.f32 %v8202_v45, %v3034_v52 }
 0x764   : > { %9605 = vst [vmem:[#allocation38_spill] sm:$0xff] %v8292_v27  ;;  %v6437_v25 = vpop.eup %6436  ;;  %6442 = vrsqrt.f32 %v2956_v17 }
 0x765   : > { %9604 = vst [vmem:[#allocation37_spill] sm:$0xff] %v8289_v47  ;;  %9606 = vst [vmem:[#allocation39_spill] sm:$0xff] %v8295_v57  ;;  %v2919_v21 = vpop.xlane.xlu0 %2918  ;;  %v3166_v46 = vpack.c.bf16 %v8289_v47, %v8286_v54  ;;  %v3165_v63 = vpack.c.bf16 %v8295_v57, %v8292_v27  ;;  %v2994_v48 = vmul.f32 %v6437_v25, %v8111_v50  ;;  %4502 = vmatpush1.bf16.msra.mxu1 %v6211_v5 }
 0x766   : > { %v2993_v39 = vmul.f32 %v6437_v25, %v8108_v7  ;;  %v6439_v56 = vpop.eup %6438  ;;  %v2941_v36 = vmul.f32 0.00390625, %v2919_v21  ;;  %4503 = vmatprep.subr.bf16.mxu1 %v6216_v37 }
 0x767   : > { %3579 = vmatprep.mubr.bf16.mxu1 %v3166_v46  ;;  %3692 = vmatprep.mubr.bf16.mxu0 %v3166_v46  ;;  %v2922_v40 = vpop.xlane.xlu1 %2921  ;;  %v2996_v18 = vmul.f32 %v6439_v56, %v8117_v16  ;;  %v3037_v49 = vmul.f32 %v8197_v11, %v2994_v48  ;;  %v2995_v55 = vmul.f32 %v6439_v56, %v8114_v31  ;;  %v6222_v16 = vld [vmem:[#allocation11 + $0x84] ss:$8 sps:$4 sm:$0xff]  }
 0x768   : > { %v2957_v15 = vadd.f32 1e-12, %v2941_v36  ;;  %v2942_v26 = vmul.f32 0.00390625, %v2922_v40  ;;  %3580 = vmatmul.mubr.bf16.gmra.mrb[76].mxu1 %v3165_v63  ;;  %3693 = vmatmul.mubr.bf16.gmra.mrb[140].mxu0 %v3165_v63  ;;  %v3036_v7 = vmul.f32 %v8191_v4, %v2993_v39  ;;  %v6220_v39 = vld [vmem:[#allocation11 + $0x80] ss:$8 sps:$4 sm:$0xff]  }
 0x769   : > { %v3039_v50 = vmul.f32 %v8197_v11, %v2996_v18  ;;  %v3038_v1 = vmul.f32 %v8191_v4, %v2995_v55  ;;  %4504 = vmatpush1.bf16.msra.mxu1 %v6214_v32  ;;  %v8310_v52 = vadd.f32 %v8205_v30, %v3037_v49  ;;  %v6225_v36 = vld [vmem:[#allocation11 + $0x94] ss:$8 sps:$4 sm:$0xff]  }
 0x76a   : > { %6444 = vrsqrt.f32 %v2957_v15  ;;  %v2958_v24 = vadd.f32 1e-12, %v2942_v26  ;;  %4505 = vmatprep.subr.bf16.mxu1 %v6219_v20  ;;  %v8316_v5 = vadd.f32 %v8202_v45, %v3036_v7  ;;  %v6223_v7 = vld [vmem:[#allocation11 + $0x90] ss:$8 sps:$4 sm:$0xff]  }
 0x76b   : > { %9607 = vst [vmem:[#allocation40_spill] sm:$0xff] %v8310_v52  ;;  %v8313_v31 = vadd.f32 %v8205_v30, %v3039_v50  ;;  %v8319_v17 = vadd.f32 %v8202_v45, %v3038_v1 }
 0x76c   : > { %9609 = vst [vmem:[#allocation42_spill] sm:$0xff] %v8316_v5  ;;  %v6441_v37 = vpop.eup %6440  ;;  %6446 = vrsqrt.f32 %v2958_v24 }
 0x76d   : > { %9608 = vst [vmem:[#allocation41_spill] sm:$0xff] %v8313_v31  ;;  %9610 = vst [vmem:[#allocation43_spill] sm:$0xff] %v8319_v17  ;;  %v2925_v25 = vpop.xlane.xlu0 %2924  ;;  %v3168_v21 = vpack.c.bf16 %v8313_v31, %v8310_v52  ;;  %v3167_v46 = vpack.c.bf16 %v8319_v17, %v8316_v5  ;;  %v2998_v63 = vmul.f32 %v6441_v37, %v8131_v12  ;;  %4506 = vmatpush1.bf16.msra.mxu1 %v6217_v59 }
 0x76e   : > { %v2997_v48 = vmul.f32 %v6441_v37, %v8128_v14  ;;  %v6443_v32 = vpop.eup %6442  ;;  %v2943_v56 = vmul.f32 0.00390625, %v2925_v25  ;;  %4507 = vmatprep.subr.bf16.mxu1 %v6222_v16 }
 0x76f   : > { %3589 = vmatprep.mubr.bf16.mxu1 %v3168_v21  ;;  %3702 = vmatprep.mubr.bf16.mxu0 %v3168_v21  ;;  %v2928_v20 = vpop.xlane.xlu1 %2927  ;;  %v3000_v40 = vmul.f32 %v6443_v32, %v8137_v58  ;;  %v3041_v18 = vmul.f32 %v8197_v11, %v2998_v63  ;;  %v2999_v49 = vmul.f32 %v6443_v32, %v8134_v29 }
 0x770   : > { %v2959_v55 = vadd.f32 1e-12, %v2943_v56  ;;  %v2944_v15 = vmul.f32 0.00390625, %v2928_v20  ;;  %3590 = vmatmul.mubr.bf16.gmra.mrb[80].mxu1 %v3167_v46  ;;  %3703 = vmatmul.mubr.bf16.gmra.mrb[144].mxu0 %v3167_v46  ;;  %v3040_v14 = vmul.f32 %v8191_v4, %v2997_v48 }
 0x771   : > { %v3043_v12 = vmul.f32 %v8197_v11, %v3000_v40  ;;  %v3042_v26 = vmul.f32 %v8191_v4, %v2999_v49  ;;  %4508 = vmatpush1.bf16.msra.mxu1 %v6220_v39  ;;  %v8334_v58 = vadd.f32 %v8205_v30, %v3041_v18 }
 0x772   : > { %6448 = vrsqrt.f32 %v2959_v55  ;;  %v2960_v50 = vadd.f32 1e-12, %v2944_v15  ;;  %4509 = vmatprep.subr.bf16.mxu1 %v6225_v36  ;;  %v8340_v1 = vadd.f32 %v8202_v45, %v3040_v14 }
 0x773   : > { %9611 = vst [vmem:[#allocation44_spill] sm:$0xff] %v8334_v58  ;;  %v8337_v29 = vadd.f32 %v8205_v30, %v3043_v12  ;;  %v8343_v59 = vadd.f32 %v8202_v45, %v3042_v26 }
 0x774   : > { %9613 = vst [vmem:[#allocation46_spill] sm:$0xff] %v8340_v1  ;;  %v6445_v24 = vpop.eup %6444  ;;  %6450 = vrsqrt.f32 %v2960_v50 }
 0x775   : > { %9612 = vst [vmem:[#allocation45_spill] sm:$0xff] %v8337_v29  ;;  %9614 = vst [vmem:[#allocation47_spill] sm:$0xff] %v8343_v59  ;;  %v3170_v16 = vpack.c.bf16 %v8337_v29, %v8334_v58  ;;  %v3169_v37 = vpack.c.bf16 %v8343_v59, %v8340_v1  ;;  %v3002_v25 = vmul.f32 %v6445_v24, %v8151_v43  ;;  %4510 = vmatpush1.bf16.msra.mxu1 %v6223_v7 }
 0x776   : > { %v3001_v21 = vmul.f32 %v6445_v24, %v8148_v23  ;;  %v6447_v46 = vpop.eup %6446 }
 0x777   : > { %3599 = vmatprep.mubr.bf16.mxu1 %v3170_v16  ;;  %3712 = vmatprep.mubr.bf16.mxu0 %v3170_v16  ;;  %v3004_v63 = vmul.f32 %v6447_v46, %v8157_v8  ;;  %v3045_v48 = vmul.f32 %v8197_v11, %v3002_v25  ;;  %v3003_v39 = vmul.f32 %v6447_v46, %v8154_v61  ;;  %v6229_v25 = vld [vmem:[#allocation11 + $0xb0] ss:$8 sps:$4 sm:$0xff]   ;;  %v6237_v46 = vld [vmem:[#allocation11 + $0xd4] ss:$8 sps:$4 sm:$0xff]  }
 0x778   : > { %3600 = vmatmul.mubr.bf16.gmra.mrb[84].mxu1 %v3169_v37  ;;  %3713 = vmatmul.mubr.bf16.gmra.mrb[148].mxu0 %v3169_v37  ;;  %v3044_v32 = vmul.f32 %v8191_v4, %v3001_v21  ;;  %v6226_v37 = vld [vmem:[#allocation11 + $0xa0] ss:$8 sps:$4 sm:$0xff]  }
 0x779   : > { %v3047_v56 = vmul.f32 %v8197_v11, %v3004_v63  ;;  %v3046_v43 = vmul.f32 %v8191_v4, %v3003_v39  ;;  %v8358_v23 = vadd.f32 %v8205_v30, %v3045_v48  ;;  %v6232_v21 = vld [vmem:[#allocation11 + $0xc0] ss:$8 sps:$4 sm:$0xff]   ;;  %v6235_v63 = vld [vmem:[#allocation11 + $0xd0] ss:$8 sps:$4 sm:$0xff]   ;;  %v6240_v48 = vld [vmem:[#allocation11 + $0xe4] ss:$8 sps:$4 sm:$0xff]  }
 0x77a   : > { %v8364_v8 = vadd.f32 %v8202_v45, %v3044_v32  ;;  %v6238_v39 = vld [vmem:[#allocation11 + $0xe0] ss:$8 sps:$4 sm:$0xff]   ;;  %v6243_v32 = vld [vmem:[#allocation11 + $0xf4] ss:$8 sps:$4 sm:$0xff]  }
 0x77b   : > { %9615 = vst [vmem:[#allocation48_spill] sm:$0xff] %v8358_v23  ;;  %v8361_v36 = vadd.f32 %v8205_v30, %v3047_v56  ;;  %v8367_v20 = vadd.f32 %v8202_v45, %v3046_v43  ;;  %v6241_v56 = vld [vmem:[#allocation11 + $0xf0] ss:$8 sps:$4 sm:$0xff]   ;;  %v6246_v43 = vld [vmem:[#allocation11 + $0x104] ss:$8 sps:$4 sm:$0xff]  }
 0x77c   : > { %9617 = vst [vmem:[#allocation50_spill] sm:$0xff] %v8364_v8  ;;  %v6449_v61 = vpop.eup %6448 }
 0x77d   : > { %9616 = vst [vmem:[#allocation49_spill] sm:$0xff] %v8361_v36  ;;  %9618 = vst [vmem:[#allocation51_spill] sm:$0xff] %v8367_v20  ;;  %v3172_v40 = vpack.c.bf16 %v8361_v36, %v8358_v23  ;;  %v3171_v18 = vpack.c.bf16 %v8367_v20, %v8364_v8  ;;  %v3006_v49 = vmul.f32 %v6449_v61, %v8171_v53 }
 0x77e   : > { %v3005_v55 = vmul.f32 %v6449_v61, %v8168_v13  ;;  %v6451_v15 = vpop.eup %6450  ;;  %v3175_v61 = vld [vmem:[%s9623_s27] sm:$0xf]  ;;  %s6816_s27 = scalar_lea.vmem %s9435_s11, 4096 }
 0x77f   : > { %3609 = vmatprep.mubr.bf16.mxu1 %v3172_v40  ;;  %3722 = vmatprep.mubr.bf16.mxu0 %v3172_v40  ;;  %v3008_v14 = vmul.f32 %v6451_v15, %v8177_v9  ;;  %v3049_v12 = vmul.f32 %v8197_v11, %v3006_v49  ;;  %v3007_v26 = vmul.f32 %v6451_v15, %v8174_v19  ;;  %p6817_p1 = scmp.ne.s32.totalorder %s9435_s11, %s6816_s27 }
 0x780   : > { %3610 = vmatmul.mubr.bf16.gmra.mrb[88].mxu1 %v3171_v18  ;;  %3723 = vmatmul.mubr.bf16.gmra.mrb[152].mxu0 %v3171_v18  ;;  %v3048_v7 = vmul.f32 %v8191_v4, %v3005_v55  ;;  %v8401_v40 = vrot.slane %v3175_v61, %v7397_v42  ;;  %v8405_v18 = vrot.slane %v3175_v61, %v735_v0 }
 0x781   : > { %v3051_v50 = vmul.f32 %v8197_v11, %v3008_v14  ;;  %v3050_v24 = vmul.f32 %v8191_v4, %v3007_v26  ;;  %v8382_v53 = vadd.f32 %v8205_v30, %v3049_v12  ;;  %v6228_v4 = vld [vmem:[#allocation11 + $0xa4] ss:$8 sps:$4 sm:$0xff]   ;;  %v8408_v49 = vrot.slane %v3175_v61, %v7400_v44  ;;  %p6818_p0 = pnand %p6817_p1, %p9694_p13 }
 0x782   : > { %v8388_v9 = vadd.f32 %v8202_v45, %v3048_v7  ;;  %4511 = vmatprep.subr.bf16.mxu1 %v6228_v4  ;;  %v8412_v55 = vrot.slane %v3175_v61, %v739_v10 }
 0x783   : > { %9619 = vst [vmem:[#allocation52_spill] sm:$0xff] %v8382_v53  ;;  %v8385_v13 = vadd.f32 %v8205_v30, %v3051_v50  ;;  %v8391_v16 = vadd.f32 %v8202_v45, %v3050_v24  ;;  %4512 = vmatpush1.bf16.msra.mxu1 %v6226_v37  ;;  %v6231_v30 = vld [vmem:[#allocation11 + $0xb4] ss:$8 sps:$4 sm:$0xff]   ;;  %v6234_v45 = vld [vmem:[#allocation11 + $0xc4] ss:$8 sps:$4 sm:$0xff]   ;;  %p6819_p4 = pneg %p6818_p0 }
 0x784   : > { %9621 = vst [vmem:[#allocation54_spill] sm:$0xff] %v8388_v9  ;;  %4513 = vmatprep.subr.bf16.mxu1 %v6231_v30 }
 0x785   : > { %9620 = vst [vmem:[#allocation53_spill] sm:$0xff] %v8385_v13  ;;  %9622 = vst [vmem:[#allocation55_spill] sm:$0xff] %v8391_v16  ;;  %v3174_v19 = vpack.c.bf16 %v8385_v13, %v8382_v53  ;;  %v3173_v11 = vpack.c.bf16 %v8391_v16, %v8388_v9 }
 0x787   : > { %3619 = vmatprep.mubr.bf16.mxu1 %v3174_v19  ;;  %3732 = vmatprep.mubr.bf16.mxu0 %v3174_v19 }
 0x788   : > { %3620 = vmatmul.mubr.bf16.gmra.mrb[92].mxu1 %v3173_v11  ;;  %3733 = vmatmul.mubr.bf16.gmra.mrb[156].mxu0 %v3173_v11 }
 0x789   : > { %4514 = vmatpush1.bf16.msra.mxu1 %v6229_v25 }
 0x78a   : > { %4515 = vmatprep.subr.bf16.mxu1 %v6234_v45 }
 0x78d   : > { %4516 = vmatpush1.bf16.msra.mxu1 %v6232_v21 }
 0x78e   : > { %4517 = vmatprep.subr.bf16.mxu1 %v6237_v46 }
 0x791   : > { %4518 = vmatpush1.bf16.msra.mxu1 %v6235_v63 }
 0x792   : > { %4519 = vmatprep.subr.bf16.mxu1 %v6240_v48 }
 0x795   : > { %4520 = vmatpush1.bf16.msra.mxu1 %v6238_v39 }
 0x796   : > { %4521 = vmatprep.subr.bf16.mxu1 %v6243_v32 }
 0x799   : > { %4522 = vmatpush1.bf16.msra.mxu1 %v6241_v56 }
 0x79a   : > { %4604 = vmatprep.subr.bf16.mxu1 %v6246_v43 }
 0x823   : > { %v3551_v15 = vpop.f32.mrb[64].mxu1  ;;  %v3664_v14 = vpop.f32.mrb[128].mxu0 }
 0x824   : > { %v3552_v12 = vadd.f32 %v3551_v15, %v8401_v40  ;;  %v3665_v26 = vadd.f32 %v3664_v14, %v8405_v18  ;;  %v3553_v7 = vpop.f32.mrb[65].mxu1  ;;  %v3666_v50 = vpop.f32.mrb[129].mxu0 }
 0x825   : > { %v3554_v24 = vadd.f32 %v3553_v7, %v8408_v49  ;;  %v3667_v0 = vadd.f32 %v3666_v50, %v8412_v55  ;;  %v3555_v19 = vpop.f32.mrb[66].mxu1  ;;  %v3668_v11 = vpop.f32.mrb[130].mxu0 }
 0x826   : > { %v3807_v4 = vmul.f32 0.70710677, %v3552_v12  ;;  %v3809_v37 = vmul.f32 0.70710677, %v3665_v26  ;;  %v3556_v10 = vadd.f32 %v3555_v19, %v8401_v40  ;;  %v3669_v25 = vadd.f32 %v3668_v11, %v8405_v18  ;;  %v3557_v45 = vpop.f32.mrb[67].mxu1  ;;  %v3670_v21 = vpop.f32.mrb[131].mxu0 }
 0x827   : > { %v3808_v30 = vmul.f32 0.70710677, %v3554_v24  ;;  %v3810_v62 = vmul.f32 0.70710677, %v3667_v0  ;;  %v3558_v46 = vadd.f32 %v3557_v45, %v8408_v49  ;;  %v3671_v63 = vadd.f32 %v3670_v21, %v8412_v55 }
 0x828   : > { %6452 = verf.f32 %v3807_v4  ;;  %v3811_v48 = vmul.f32 0.70710677, %v3556_v10  ;;  %v3813_v39 = vmul.f32 0.70710677, %v3669_v25  ;;  %v8430_v53 = vmul.f32 0.5, %v3667_v0 }
 0x829   : > { %6454 = verf.f32 %v3809_v37  ;;  %v3812_v32 = vmul.f32 0.70710677, %v3558_v46  ;;  %v3814_v43 = vmul.f32 0.70710677, %v3671_v63  ;;  %v8433_v20 = vmul.f32 0.5, %v3558_v46 }
 0x82a   : > { %6456 = verf.f32 %v3808_v30 }
 0x82b   : > { %6458 = verf.f32 %v3810_v62  ;;  %v3561_v56 = vpop.f32.mrb[68].mxu1  ;;  %v3674_v15 = vpop.f32.mrb[132].mxu0 }
 0x82c   : > { %6460 = verf.f32 %v3811_v48  ;;  %v3562_v61 = vadd.f32 %v3561_v56, %v8401_v40  ;;  %v3563_v14 = vpop.f32.mrb[69].mxu1  ;;  %v3675_v7 = vadd.f32 %v3674_v15, %v8405_v18  ;;  %v3676_v19 = vpop.f32.mrb[133].mxu0  ;;  %v3743_v48 = vmul.f32 0.5, %v3552_v12 }
 0x82d   : > { %6462 = verf.f32 %v3813_v39  ;;  %v3564_v50 = vadd.f32 %v3563_v14, %v8408_v49  ;;  %v3565_v11 = vpop.f32.mrb[70].mxu1  ;;  %v3677_v37 = vadd.f32 %v3676_v19, %v8412_v55  ;;  %v3678_v30 = vpop.f32.mrb[134].mxu0  ;;  %v3745_v39 = vmul.f32 0.5, %v3665_v26 }
 0x82e   : > { %6464 = verf.f32 %v3812_v32  ;;  %v3815_v4 = vmul.f32 0.70710677, %v3562_v61  ;;  %v3567_v62 = vpop.f32.mrb[71].mxu1  ;;  %v3817_v45 = vmul.f32 0.70710677, %v3675_v7  ;;  %v3680_v21 = vpop.f32.mrb[135].mxu0  ;;  %v3566_v15 = vadd.f32 %v3565_v11, %v8401_v40 }
 0x82f   : > { %6466 = verf.f32 %v3814_v43  ;;  %v3816_v56 = vmul.f32 0.70710677, %v3564_v50  ;;  %v3818_v13 = vmul.f32 0.70710677, %v3677_v37  ;;  %v3679_v14 = vadd.f32 %v3678_v30, %v8405_v18 }
 0x830   : > { %6468 = verf.f32 %v3815_v4  ;;  %v8428_v32 = vmul.f32 0.5, %v3554_v24  ;;  %v3568_v43 = vadd.f32 %v3567_v62, %v8408_v49  ;;  %v3747_v12 = vmul.f32 0.5, %v3556_v10 }
 0x831   : > { %6470 = verf.f32 %v3817_v45  ;;  %v3749_v4 = vmul.f32 0.5, %v3669_v25  ;;  %v8435_v11 = vmul.f32 0.5, %v3671_v63  ;;  %v3819_v30 = vmul.f32 0.70710677, %v3566_v15 }
 0x832   : > { %v6453_v16 = vpop.eup %6452  ;;  %6472 = verf.f32 %v3816_v56  ;;  %v3681_v24 = vadd.f32 %v3680_v21, %v8412_v55  ;;  %v8438_v56 = vmul.f32 0.5, %v3562_v61  ;;  %v8440_v62 = vmul.f32 0.5, %v3675_v7 }
 0x833   : > { %v6455_v19 = vpop.eup %6454  ;;  %v3935_v9 = vadd.f32 1.0, %v6453_v16  ;;  %6474 = verf.f32 %v3818_v13  ;;  %v3571_v36 = vpop.f32.mrb[72].mxu1  ;;  %v3821_v16 = vmul.f32 0.70710677, %v3679_v14  ;;  %v8442_v29 = vmul.f32 0.5, %v3564_v50 }
 0x834   : > { %v3684_v26 = vpop.f32.mrb[136].mxu0  ;;  %v6457_v45 = vpop.eup %6456  ;;  %v3937_v8 = vadd.f32 1.0, %v6455_v19  ;;  %v3820_v46 = vmul.f32 0.70710677, %v3568_v43  ;;  %v8448_v61 = vmul.f32 0.5, %v3677_v37  ;;  %6476 = verf.f32 %v3819_v30 }
 0x835   : > { %v3573_v0 = vpop.f32.mrb[73].mxu1  ;;  %v6459_v23 = vpop.eup %6458  ;;  %v8446_v1 = vmul.f32 %v3935_v9, %v3743_v48  ;;  %v3936_v21 = vadd.f32 1.0, %v6457_v45  ;;  %v3822_v5 = vmul.f32 0.70710677, %v3681_v24  ;;  %v3572_v50 = vadd.f32 %v3571_v36, %v8401_v40 }
 0x836   : > { %v3686_v10 = vpop.f32.mrb[137].mxu0  ;;  %v3575_v25 = vpop.f32.mrb[74].mxu1  ;;  %v3938_v47 = vadd.f32 1.0, %v6459_v23  ;;  %6478 = verf.f32 %v3821_v16  ;;  %v3685_v9 = vadd.f32 %v3684_v26, %v8405_v18  ;;  %v8456_v45 = vmul.f32 %v3937_v8, %v3745_v39 }
 0x837   : > { %v6461_v13 = vpop.eup %6460  ;;  %v3688_v59 = vpop.f32.mrb[138].mxu0  ;;  %6480 = verf.f32 %v3820_v46  ;;  %v8462_v30 = vmul.f32 0.5, %v3566_v15  ;;  %v8464_v36 = vmul.f32 0.5, %v3679_v14  ;;  %v8471_v39 = vmul.f32 0.5, %v3568_v43 }
 0x838   : > { %v8444_v63 = vpop.f32.mrb[75].mxu1  ;;  %v6463_v58 = vpop.eup %6462  ;;  %v3939_v31 = vadd.f32 1.0, %v6461_v13  ;;  %9624 = vst [vmem:[#allocation56_spill] sm:$0xff] %v8456_v45  ;;  %v3823_v13 = vmul.f32 0.70710677, %v3572_v50  ;;  %6482 = verf.f32 %v3822_v5  ;;  %v8476_v14 = vmul.f32 %v3936_v21, %v8428_v32 }
 0x839   : > { %v8450_v7 = vpop.f32.mrb[139].mxu0  ;;  %v6465_v17 = vpop.eup %6464  ;;  %v3941_v52 = vadd.f32 1.0, %v6463_v58  ;;  %v8481_v46 = vmul.f32 0.5, %v3681_v24  ;;  %v3825_v58 = vmul.f32 0.70710677, %v3685_v9  ;;  %v3687_v5 = vadd.f32 %v3686_v10, %v8412_v55 }
 0x83a   : > { %v6467_v19 = vpop.eup %6466  ;;  %v8453_v57 = vmul.f32 %v3939_v31, %v3747_v12  ;;  %v3574_v31 = vadd.f32 %v3573_v0, %v8408_v49  ;;  %v3940_v8 = vadd.f32 1.0, %v6465_v17  ;;  %v8479_v0 = vmul.f32 %v3938_v47, %v8430_v53 }
 0x83b   : > { %v6469_v48 = vpop.eup %6468  ;;  %v8458_v37 = vmul.f32 %v3941_v52, %v3749_v4  ;;  %v3581_v23 = vpop.f32.mrb[76].mxu1  ;;  %v3942_v17 = vadd.f32 1.0, %v6467_v19  ;;  %6484 = verf.f32 %v3823_v13  ;;  %v3576_v47 = vadd.f32 %v3575_v25, %v8401_v40 }
 0x83c   : > { %v6471_v54 = vpop.eup %6470  ;;  %v8467_v12 = vpop.f32.mrb[140].mxu0  ;;  %9626 = vst [vmem:[#allocation58_spill] sm:$0xff] %v8479_v0  ;;  %v3943_v43 = vadd.f32 1.0, %v6469_v48  ;;  %v3824_v21 = vmul.f32 0.70710677, %v3574_v31  ;;  %v3689_v53 = vadd.f32 %v3688_v59, %v8405_v18  ;;  %v4004_v24 = vmul.f32 %v3940_v8, %v8433_v20 }
 0x83d   : > { %9625 = vst [vmem:[#allocation57_spill] sm:$0xff] %v8458_v37  ;;  %v6473_v26 = vpop.eup %6472  ;;  %v3583_v4 = vpop.f32.mrb[77].mxu1  ;;  %v3945_v32 = vadd.f32 1.0, %v6471_v54  ;;  %v8493_v51 = vmul.f32 0.5, %v3572_v50  ;;  %v8495_v19 = vmul.f32 0.5, %v3685_v9  ;;  %6486 = verf.f32 %v3825_v58 }
 0x83e   : > { %v8473_v16 = vpop.f32.mrb[141].mxu0  ;;  %v6475_v15 = vpop.eup %6474  ;;  %v3944_v33 = vadd.f32 1.0, %v6473_v26  ;;  %v3826_v10 = vmul.f32 0.70710677, %v3687_v5  ;;  %v3827_v48 = vmul.f32 0.70710677, %v3576_v47  ;;  %v8498_v3 = vmul.f32 %v3942_v17, %v8435_v11 }
 0x83f   : > { %v3585_v27 = vpop.f32.mrb[78].mxu1  ;;  %v8483_v34 = vpop.f32.mrb[142].mxu0  ;;  %v3946_v35 = vadd.f32 1.0, %v6475_v15  ;;  %v8501_v54 = vmul.f32 %v3943_v43, %v8438_v56  ;;  %v8503_v25 = vmul.f32 0.5, %v3574_v31  ;;  %v3829_v59 = vmul.f32 0.70710677, %v3689_v53 }
 0x840   : > { %v8486_v52 = vpop.f32.mrb[79].mxu1  ;;  %v8488_v60 = vpop.f32.mrb[143].mxu0  ;;  %9627 = vst [vmem:[#allocation59_spill] sm:$0xff] %v8498_v3  ;;  %v8506_v26 = vmul.f32 %v3945_v32, %v8440_v62  ;;  %6488 = verf.f32 %v3824_v21  ;;  %v3578_v50 = vadd.f32 %v8444_v63, %v8408_v49  ;;  %v3691_v9 = vadd.f32 %v8450_v7, %v8412_v55 }
 0x841   : > { %v6477_v13 = vpop.eup %6476  ;;  %v8517_v31 = vmul.f32 %v3944_v33, %v8442_v29  ;;  %v8520_v8 = vmul.f32 %v3946_v35, %v8448_v61  ;;  %6490 = verf.f32 %v3826_v10  ;;  %v3582_v62 = vadd.f32 %v3581_v23, %v8401_v40 }
 0x842   : > { %v6479_v20 = vpop.eup %6478  ;;  %9628 = vst [vmem:[#allocation60_spill] sm:$0xff] %v8506_v26  ;;  %v3947_v17 = vadd.f32 1.0, %v6477_v13  ;;  %v8527_v7 = vmul.f32 0.5, %v3687_v5  ;;  %6492 = verf.f32 %v3827_v48  ;;  %v3828_v43 = vmul.f32 0.70710677, %v3578_v50 }
 0x843   : > { %v8512_v58 = vpop.f32.mrb[80].mxu1  ;;  %v8514_v11 = vpop.f32.mrb[144].mxu0  ;;  %9629 = vst [vmem:[#allocation61_spill] sm:$0xff] %v8520_v8  ;;  %v3949_v29 = vadd.f32 1.0, %v6479_v20  ;;  %6494 = verf.f32 %v3829_v59  ;;  %v3830_v35 = vmul.f32 0.70710677, %v3691_v9  ;;  %v3695_v13 = vadd.f32 %v8467_v12, %v8405_v18 }
 0x844   : > { %v6481_v56 = vpop.eup %6480  ;;  %v8523_v15 = vpop.f32.mrb[81].mxu1  ;;  %v3831_v61 = vmul.f32 0.70710677, %v3582_v62  ;;  %6496 = verf.f32 %v3828_v43  ;;  %v3584_v5 = vadd.f32 %v3583_v4, %v8408_v49  ;;  %v3697_v22 = vadd.f32 %v8473_v16, %v8412_v55 }
 0x845   : > { %v8525_v63 = vpop.f32.mrb[145].mxu0  ;;  %v8529_v32 = vpop.f32.mrb[82].mxu1  ;;  %v3948_v23 = vadd.f32 1.0, %v6481_v56  ;;  %6498 = verf.f32 %v3830_v35  ;;  %v4128_v59 = vpack.c.bf16 %v4004_v24, %v8476_v14  ;;  %v8544_v20 = vadd.f32 %v3585_v27, %v8401_v40  ;;  %v6247_v14 = vld [vmem:[#allocation11 + $0x110] ss:$8 sps:$4 sm:$0xff]  }
 0x846   : > { %v8531_v21 = vpop.f32.mrb[146].mxu0  ;;  %v6483_v33 = vpop.eup %6482  ;;  %v8546_v43 = vmul.f32 0.5, %v3576_v47  ;;  %6500 = verf.f32 %v3831_v61  ;;  %v3833_v12 = vmul.f32 0.70710677, %v3695_v13  ;;  %v8549_v4 = vmul.f32 %v3947_v17, %v8462_v30 }
 0x847   : > { %v8533_v10 = vpop.f32.mrb[83].mxu1  ;;  %v8538_v48 = vpop.f32.mrb[147].mxu0  ;;  %v3950_v56 = vadd.f32 1.0, %v6483_v33  ;;  %v8552_v35 = vmul.f32 %v3949_v29, %v8464_v36  ;;  %v8554_v6 = vmul.f32 0.5, %v3689_v53  ;;  %v3832_v16 = vmul.f32 0.70710677, %v3584_v5  ;;  %4523 = vmatprep.mubr.bf16.mxu1 %v4128_v59 }
 0x848   : > { %v6485_v41 = vpop.eup %6484  ;;  %v8557_v24 = vmul.f32 %v3948_v23, %v8471_v39  ;;  %v8559_v33 = vmul.f32 0.5, %v3578_v50  ;;  %v3834_v61 = vmul.f32 0.70710677, %v3697_v22  ;;  %v9631_v30 = vpack.c.bf16 %v8453_v57, %v8446_v1  ;;  %v6252_v59 = vld [vmem:[#allocation11 + $0x124] ss:$8 sps:$4 sm:$0xff]  }
 0x849   : > { %9630 = vst [vmem:[#allocation62_spill] sm:$0xff] %v8552_v35  ;;  %v6487_v27 = vpop.eup %6486  ;;  %v3951_v47 = vadd.f32 1.0, %v6485_v41  ;;  %v8568_v53 = vmul.f32 0.5, %v3691_v9  ;;  %6502 = verf.f32 %v3833_v12  ;;  %v3835_v29 = vmul.f32 0.70710677, %v8544_v20 }
 0x84a   : > { %4524 = vmatmul.mubr.bf16.vlgmr.msra.gmra.mrb[96].mxu1 %v9631_v30  ;;  %v3699_v39 = vadd.f32 %v8483_v34, %v8405_v18  ;;  %v6489_v23 = vpop.eup %6488  ;;  %v8578_v57 = vmul.f32 %v3950_v56, %v8481_v46  ;;  %6504 = verf.f32 %v3832_v16  ;;  %v3588_v1 = vadd.f32 %v8486_v52, %v8408_v49 }
 0x84b   : > { %v8564_v17 = vpop.f32.mrb[84].mxu1  ;;  %v8566_v36 = vpop.f32.mrb[148].mxu0  ;;  %4605 = vmatpush1.bf16.msra.mxu1 %v6244_v28  ;;  %v3701_v9 = vadd.f32 %v8488_v60, %v8412_v55  ;;  %v3953_v30 = vadd.f32 1.0, %v6487_v27  ;;  %v8588_v38 = vmul.f32 0.5, %v3582_v62  ;;  %6506 = verf.f32 %v3834_v61  ;;  %v6250_v27 = vld [vmem:[#allocation11 + $0x120] ss:$8 sps:$4 sm:$0xff]  }
 0x84c   : > { %v8573_v41 = vpop.f32.mrb[85].mxu1  ;;  %v8575_v50 = vpop.f32.mrb[149].mxu0  ;;  %9632 = vst [vmem:[#allocation63_spill] sm:$0xff] %v8578_v57  ;;  %4606 = vmatprep.subr.bf16.mxu1 %v6249_v2  ;;  %v3837_v46 = vmul.f32 0.70710677, %v3699_v39  ;;  %v8595_v44 = vmul.f32 %v3951_v47, %v8493_v51  ;;  %v8597_v2 = vmul.f32 0.5, %v3695_v13  ;;  %6508 = verf.f32 %v3835_v29 }
 0x84d   : > { %v8584_v12 = vpop.f32.mrb[86].mxu1  ;;  %v8586_v28 = vpop.f32.mrb[150].mxu0  ;;  %v3836_v60 = vmul.f32 0.70710677, %v3588_v1  ;;  %v3952_v45 = vadd.f32 1.0, %v6489_v23  ;;  %v8599_v37 = vmul.f32 0.5, %v3584_v5  ;;  %v3592_v51 = vadd.f32 %v8512_v58, %v8401_v40 }
 0x84e   : > { %v6491_v34 = vpop.eup %6490  ;;  %v8590_v56 = vpop.f32.mrb[87].mxu1  ;;  %6510 = verf.f32 %v3837_v46  ;;  %v3838_v62 = vmul.f32 0.70710677, %v3701_v9  ;;  %v8601_v26 = vmul.f32 0.5, %v3697_v22  ;;  %v6255_v13 = vld [vmem:[#allocation11 + $0x134] ss:$8 sps:$4 sm:$0xff]   ;;  %v8606_v29 = vmul.f32 %v3953_v30, %v8495_v19 }
 0x84f   : > { %v8592_v16 = vpop.f32.mrb[151].mxu0  ;;  %v6493_v52 = vpop.eup %6492  ;;  %4607 = vmatpush1.bf16.msra.mxu1 %v6247_v14  ;;  %v3954_v35 = vadd.f32 1.0, %v6491_v34  ;;  %6512 = verf.f32 %v3836_v60  ;;  %v8609_v5 = vmul.f32 0.5, %v8544_v20  ;;  %v3705_v14 = vadd.f32 %v8514_v11, %v8405_v18  ;;  %v6253_v23 = vld [vmem:[#allocation11 + $0x130] ss:$8 sps:$4 sm:$0xff]  }
 0x850   : > { %v6495_v42 = vpop.eup %6494  ;;  %4608 = vmatprep.subr.bf16.mxu1 %v6252_v59  ;;  %9633 = vst [vmem:[#allocation64_spill] sm:$0xff] %v8606_v29  ;;  %6514 = verf.f32 %v3838_v62  ;;  %v3955_v34 = vadd.f32 1.0, %v6493_v52  ;;  %v3839_v60 = vmul.f32 0.70710677, %v3592_v51  ;;  %v3594_v58 = vadd.f32 %v8523_v15, %v8408_v49 }
 0x851   : > { %v6497_v61 = vpop.eup %6496  ;;  %v3957_v46 = vadd.f32 1.0, %v6495_v42  ;;  %v8618_v19 = vmul.f32 %v3952_v45, %v8503_v25  ;;  %v8620_v30 = vmul.f32 0.5, %v3699_v39  ;;  %v8622_v20 = vmul.f32 0.5, %v3588_v1  ;;  %v6258_v25 = vld [vmem:[#allocation11 + $0x144] ss:$8 sps:$4 sm:$0xff]  }
 0x852   : > { %v6499_v47 = vpop.eup %6498  ;;  %v8624_v62 = vmul.f32 0.5, %v3701_v9  ;;  %v8631_v42 = vmul.f32 %v3954_v35, %v8527_v7  ;;  %v3956_v15 = vadd.f32 1.0, %v6497_v61  ;;  %v3707_v45 = vadd.f32 %v8525_v63, %v8412_v55 }
 0x853   : > { %v6501_v22 = vpop.eup %6500  ;;  %v8615_v59 = vpop.f32.mrb[88].mxu1  ;;  %4609 = vmatpush1.bf16.msra.mxu1 %v6250_v27  ;;  %v3958_v29 = vadd.f32 1.0, %v6499_v47  ;;  %6516 = verf.f32 %v3839_v60  ;;  %v3841_v57 = vmul.f32 0.70710677, %v3705_v14  ;;  %v4132_v8 = vpack.c.bf16 %v8557_v24, %v8517_v31 }
 0x854   : > { %v8626_v11 = vpop.f32.mrb[152].mxu0  ;;  %v8628_v52 = vpop.f32.mrb[89].mxu1  ;;  %9634 = vst [vmem:[#allocation65_spill] sm:$0xff] %v8631_v42  ;;  %4610 = vmatprep.subr.bf16.mxu1 %v6255_v13  ;;  %v3959_v27 = vadd.f32 1.0, %v6501_v22  ;;  %v8646_v63 = vmul.f32 %v3955_v34, %v8546_v43  ;;  %v8649_v13 = vmul.f32 %v3957_v46, %v8554_v6  ;;  %v8651_v47 = vmul.f32 0.5, %v3592_v51 }
 0x855   : > { %v8635_v39 = vpop.f32.mrb[153].mxu0  ;;  %v8637_v1 = vpop.f32.mrb[90].mxu1  ;;  %v3840_v42 = vmul.f32 0.70710677, %v3594_v58  ;;  %v8655_v3 = vmul.f32 0.5, %v3705_v14  ;;  %4533 = vmatprep.mubr.bf16.mxu1 %v4132_v8  ;;  %v3596_v24 = vadd.f32 %v8529_v32, %v8401_v40  ;;  %v3709_v43 = vadd.f32 %v8531_v21, %v8405_v18 }
 0x856   : > { %v6503_v9 = vpop.eup %6502  ;;  %v8641_v7 = vpop.f32.mrb[154].mxu0  ;;  %9635 = vst [vmem:[#allocation66_spill] sm:$0xff] %v8649_v13  ;;  %v3842_v31 = vmul.f32 0.70710677, %v3707_v45  ;;  %v6256_v34 = vld [vmem:[#allocation11 + $0x140] ss:$8 sps:$4 sm:$0xff]   ;;  %v8662_v51 = vmul.f32 %v3956_v15, %v8559_v33  ;;  %v4131_v14 = vpack.c.bf16 %v8549_v4, %v8501_v54  ;;  %v8669_v32 = vmul.f32 %v3958_v29, %v8568_v53 }
 0x857   : > { %v8643_v35 = vpop.f32.mrb[91].mxu1  ;;  %v6505_v61 = vpop.eup %6504  ;;  %4611 = vmatpush1.bf16.msra.mxu1 %v6253_v23  ;;  %v3961_v46 = vadd.f32 1.0, %v6503_v9  ;;  %v8664_v13 = vmul.f32 0.5, %v3594_v58  ;;  %v6261_v8 = vld [vmem:[#allocation11 + $0x154] ss:$8 sps:$4 sm:$0xff]   ;;  %v8672_v21 = vmul.f32 %v3959_v27, %v8588_v38  ;;  %6518 = verf.f32 %v3841_v57 }
 0x858   : > { %v8653_v22 = vpop.f32.mrb[155].mxu0  ;;  %v6507_v60 = vpop.eup %6506  ;;  %4612 = vmatprep.subr.bf16.mxu1 %v6258_v25  ;;  %9637 = vst [vmem:[#allocation68_spill] sm:$0xff] %v8669_v32  ;;  %v3843_v23 = vmul.f32 0.70710677, %v3596_v24  ;;  %v3960_v33 = vadd.f32 1.0, %v6505_v61  ;;  %6520 = verf.f32 %v3840_v42  ;;  %4534 = vmatmul.mubr.bf16.gmra.mrb[100].mxu1 %v4131_v14  ;;  %v3598_v58 = vadd.f32 %v8533_v10, %v8408_v49 }
 0x859   : > { %9636 = vst [vmem:[#allocation67_spill] sm:$0xff] %v8653_v22  ;;  %v6509_v6 = vpop.eup %6508  ;;  %v3845_v15 = vmul.f32 0.70710677, %v3709_v43  ;;  %v8680_v53 = vmul.f32 0.5, %v3707_v45  ;;  %6522 = verf.f32 %v3842_v31  ;;  %v3711_v38 = vadd.f32 %v8538_v48, %v8412_v55  ;;  %v6259_v29 = vld [vmem:[#allocation11 + $0x150] ss:$8 sps:$4 sm:$0xff]  }
 0x85a   : > { %v6511_v0 = vpop.eup %6510  ;;  %v3602_v57 = vadd.f32 %v8564_v17, %v8401_v40  ;;  %v8691_v10 = vmul.f32 %v3961_v46, %v8597_v2  ;;  %v3962_v27 = vadd.f32 1.0, %v6507_v60  ;;  %v3963_v61 = vadd.f32 1.0, %v6509_v6  ;;  %v6264_v45 = vld [vmem:[#allocation11 + $0x164] ss:$8 sps:$4 sm:$0xff]  }
 0x85b   : > { %v6513_v22 = vpop.eup %6512  ;;  %v8676_v54 = vpop.f32.mrb[92].mxu1  ;;  %4613 = vmatpush1.bf16.msra.mxu1 %v6256_v34  ;;  %6524 = verf.f32 %v3843_v23  ;;  %v3965_v14 = vadd.f32 1.0, %v6511_v0  ;;  %v3844_v17 = vmul.f32 0.70710677, %v3598_v58  ;;  %v3846_v34 = vmul.f32 0.70710677, %v3711_v38 }
 0x85c   : > { %v8678_v4 = vpop.f32.mrb[156].mxu0  ;;  %v6515_v25 = vpop.eup %6514  ;;  %9639 = vst [vmem:[#allocation70_spill] sm:$0xff] %v8691_v10  ;;  %4614 = vmatprep.subr.bf16.mxu1 %v6261_v8  ;;  %6526 = verf.f32 %v3845_v15  ;;  %v3964_v2 = vadd.f32 1.0, %v6513_v22  ;;  %v3715_v60 = vadd.f32 %v8566_v36, %v8405_v18  ;;  %v3847_v23 = vmul.f32 0.70710677, %v3602_v57 }
 0x85d   : > { %v8686_v42 = vpop.f32.mrb[93].mxu1  ;;  %v8688_v9 = vpop.f32.mrb[157].mxu0  ;;  %v3966_v46 = vadd.f32 1.0, %v6515_v25  ;;  %6528 = verf.f32 %v3844_v17  ;;  %v3604_v0 = vadd.f32 %v8573_v41, %v8408_v49  ;;  %v8710_v15 = vadd.f32 %v8575_v50, %v8412_v55  ;;  %v6267_v17 = vld [vmem:[#allocation11 + $0x174] ss:$8 sps:$4 sm:$0xff]  }
 0x85e   : > { %9638 = vst [vmem:[#allocation69_spill] sm:$0xff] %v8688_v9  ;;  %v8693_v31 = vpop.f32.mrb[94].mxu1  ;;  %v8695_v48 = vpop.f32.mrb[158].mxu0  ;;  %v8700_v9 = vmul.f32 %v3960_v33, %v8599_v37  ;;  %v6262_v37 = vld [vmem:[#allocation11 + $0x160] ss:$8 sps:$4 sm:$0xff]   ;;  %v8713_v22 = vmul.f32 %v3962_v27, %v8601_v26  ;;  %v8715_v33 = vmul.f32 0.5, %v3596_v24  ;;  %v8720_v10 = vmul.f32 %v3963_v61, %v8609_v5 }
 0x85f   : > { %v8697_v32 = vpop.f32.mrb[95].mxu1  ;;  %v8704_v6 = vpop.f32.mrb[159].mxu0  ;;  %4615 = vmatpush1.bf16.msra.mxu1 %v6259_v29  ;;  %v8717_v36 = vmul.f32 0.5, %v3709_v43  ;;  %v3849_v25 = vmul.f32 0.70710677, %v3715_v60  ;;  %v8723_v41 = vmul.f32 %v3965_v14, %v8620_v30  ;;  %v8725_v50 = vmul.f32 0.5, %v3598_v58 }
 0x860   : > { %v6517_v8 = vpop.eup %6516  ;;  %4616 = vmatprep.subr.bf16.mxu1 %v6264_v45  ;;  %6530 = verf.f32 %v3846_v34  ;;  %v8728_v29 = vmul.f32 %v3964_v2, %v8622_v20  ;;  %v8730_v24 = vmul.f32 0.5, %v3711_v38  ;;  %v3848_v43 = vmul.f32 0.70710677, %v3604_v0  ;;  %v6265_v58 = vld [vmem:[#allocation11 + $0x170] ss:$8 sps:$4 sm:$0xff]  }
 0x861   : > { %v3967_v26 = vadd.f32 1.0, %v6517_v8  ;;  %v6519_v27 = vpop.eup %6518  ;;  %v8733_v45 = vmul.f32 %v3966_v46, %v8624_v62  ;;  %6532 = verf.f32 %v3847_v23  ;;  %v3850_v5 = vmul.f32 0.70710677, %v8710_v15  ;;  %v6270_v14 = vld [vmem:[#allocation11 + $0x184] ss:$8 sps:$4 sm:$0xff]  }
 0x862   : > { %v4136_v30 = vpack.c.bf16 %v8662_v51, %v8618_v19  ;;  %v6521_v61 = vpop.eup %6520  ;;  %6534 = verf.f32 %v3849_v25  ;;  %v3606_v20 = vadd.f32 %v8584_v12, %v8401_v40  ;;  %v3719_v38 = vadd.f32 %v8586_v28, %v8405_v18 }
 0x863   : > { %4617 = vmatpush1.bf16.msra.mxu1 %v6262_v37  ;;  %v4135_v62 = vpack.c.bf16 %v8646_v63, %v8595_v44  ;;  %v6523_v34 = vpop.eup %6522  ;;  %v8744_v2 = vmul.f32 0.5, %v3602_v57  ;;  %6536 = verf.f32 %v3848_v43  ;;  %v3608_v19 = vadd.f32 %v8590_v56, %v8408_v49  ;;  %v6268_v63 = vld [vmem:[#allocation11 + $0x180] ss:$8 sps:$4 sm:$0xff]  }
 0x864   : > { %4618 = vmatprep.subr.bf16.mxu1 %v6267_v17  ;;  %4543 = vmatprep.mubr.bf16.mxu1 %v4136_v30  ;;  %v3721_v51 = vadd.f32 %v8592_v16, %v8412_v55  ;;  %v8751_v46 = vmul.f32 %v3967_v26, %v8651_v47  ;;  %v3969_v28 = vadd.f32 1.0, %v6519_v27  ;;  %v8753_v8 = vmul.f32 0.5, %v3715_v60  ;;  %v6273_v47 = vld [vmem:[#allocation11 + $0x194] ss:$8 sps:$4 sm:$0xff]  }
 0x865   : > { %v6525_v12 = vpop.eup %6524  ;;  %v3851_v44 = vmul.f32 0.70710677, %v3606_v20  ;;  %4544 = vmatmul.mubr.bf16.gmra.mrb[104].mxu1 %v4135_v62  ;;  %v3968_v23 = vadd.f32 1.0, %v6521_v61  ;;  %6538 = verf.f32 %v3850_v5  ;;  %v3853_v37 = vmul.f32 0.70710677, %v3719_v38 }
 0x866   : > { %v6527_v57 = vpop.eup %6526  ;;  %v3852_v25 = vmul.f32 0.70710677, %v3608_v19  ;;  %v3970_v56 = vadd.f32 1.0, %v6523_v34  ;;  %v8755_v17 = vmul.f32 0.5, %v3604_v0  ;;  %v3854_v16 = vmul.f32 0.70710677, %v3721_v51 }
 0x867   : > { %4619 = vmatpush1.bf16.msra.mxu1 %v6265_v58  ;;  %6540 = verf.f32 %v3851_v44  ;;  %v6529_v26 = vpop.eup %6528  ;;  %v3971_v43 = vadd.f32 1.0, %v6525_v12  ;;  %v3612_v60 = vadd.f32 %v8615_v59, %v8401_v40  ;;  %v3725_v27 = vadd.f32 %v8626_v11, %v8405_v18  ;;  %v6271_v11 = vld [vmem:[#allocation11 + $0x190] ss:$8 sps:$4 sm:$0xff]  }
 0x868   : > { %4620 = vmatprep.subr.bf16.mxu1 %v6270_v14  ;;  %6542 = verf.f32 %v3853_v37  ;;  %v8762_v5 = vmul.f32 %v3969_v28, %v8655_v3  ;;  %v3973_v30 = vadd.f32 1.0, %v6527_v57  ;;  %v8766_v0 = vadd.f32 %v8628_v52, %v8408_v49 }
 0x869   : > { %6544 = verf.f32 %v3852_v25  ;;  %v8769_v61 = vmul.f32 0.5, %v8710_v15  ;;  %v3855_v62 = vmul.f32 0.70710677, %v3612_v60  ;;  %v8773_v59 = vadd.f32 %v8635_v39, %v8412_v55  ;;  %v6276_v15 = vld [vmem:[#allocation11 + $0x1a4] ss:$8 sps:$4 sm:$0xff]  }
 0x86a   : > { %v6531_v58 = vpop.eup %6530  ;;  %6546 = verf.f32 %v3854_v16  ;;  %v8776_v3 = vmul.f32 %v3968_v23, %v8664_v13  ;;  %v8779_v14 = vmul.f32 %v3970_v56, %v8680_v53  ;;  %v3972_v52 = vadd.f32 1.0, %v6529_v26  ;;  %v6274_v16 = vld [vmem:[#allocation11 + $0x1a0] ss:$8 sps:$4 sm:$0xff]  }
 0x86b   : > { %4621 = vmatpush1.bf16.msra.mxu1 %v6268_v63  ;;  %v8781_v34 = vmul.f32 0.5, %v3606_v20  ;;  %v6533_v12 = vpop.eup %6532  ;;  %v8784_v28 = vmul.f32 %v3971_v43, %v8715_v33  ;;  %v8786_v44 = vmul.f32 0.5, %v3719_v38  ;;  %v8788_v39 = vmul.f32 0.5, %v3608_v19 }
 0x86c   : > { %4622 = vmatprep.subr.bf16.mxu1 %v6273_v47  ;;  %v3857_v63 = vmul.f32 0.70710677, %v3725_v27  ;;  %v6535_v57 = vpop.eup %6534  ;;  %v8791_v13 = vmul.f32 %v3973_v30, %v8717_v36  ;;  %v3974_v53 = vadd.f32 1.0, %v6531_v58  ;;  %v8793_v23 = vmul.f32 0.5, %v3721_v51 }
 0x86d   : > { %v3856_v20 = vmul.f32 0.70710677, %v8766_v0  ;;  %v6537_v37 = vpop.eup %6536  ;;  %v8796_v25 = vmul.f32 0.5, %v3612_v60  ;;  %6548 = verf.f32 %v3855_v62  ;;  %v3858_v33 = vmul.f32 0.70710677, %v8773_v59 }
 0x86e   : > { %v4140_v38 = vpack.c.bf16 %v8728_v29, %v8700_v9  ;;  %v8802_v19 = vmul.f32 %v3972_v52, %v8725_v50  ;;  %v3975_v36 = vadd.f32 1.0, %v6533_v12  ;;  %v3616_v51 = vadd.f32 %v8637_v1, %v8401_v40  ;;  %v6279_v29 = vld [vmem:[#allocation11 + $0x1b4] ss:$8 sps:$4 sm:$0xff]  }
 0x86f   : > { %4623 = vmatpush1.bf16.msra.mxu1 %v6271_v11  ;;  %v3729_v56 = vadd.f32 %v8641_v7, %v8405_v18  ;;  %v6539_v47 = vpop.eup %6538  ;;  %v8808_v26 = vmul.f32 0.5, %v3725_v27  ;;  %6550 = verf.f32 %v3857_v63  ;;  %v4139_v9 = vpack.c.bf16 %v8720_v10, %v8672_v21  ;;  %v9640_v21 = vld [vmem:[#allocation67_spill] sm:$0xff] }
 0x870   : > { %4624 = vmatprep.subr.bf16.mxu1 %v6276_v15  ;;  %4553 = vmatprep.mubr.bf16.mxu1 %v4140_v38  ;;  %v3618_v50 = vadd.f32 %v8643_v35, %v8408_v49  ;;  %v3977_v60 = vadd.f32 1.0, %v6535_v57  ;;  %v3976_v1 = vadd.f32 1.0, %v6537_v37  ;;  %6552 = verf.f32 %v3856_v20  ;;  %v6277_v15 = vld [vmem:[#allocation11 + $0x1b0] ss:$8 sps:$4 sm:$0xff]  }
 0x871   : > { %v6541_v43 = vpop.eup %6540  ;;  %v3859_v30 = vmul.f32 0.70710677, %v3616_v51  ;;  %v8815_v58 = vmul.f32 %v3974_v53, %v8730_v24  ;;  %6554 = verf.f32 %v3858_v33  ;;  %v3861_v27 = vmul.f32 0.70710677, %v3729_v56  ;;  %4554 = vmatmul.mubr.bf16.gmra.mrb[108].mxu1 %v4139_v9  ;;  %v6282_v53 = vld [vmem:[#allocation11 + $0x1c4] ss:$8 sps:$4 sm:$0xff]  }
 0x872   : > { %v6543_v7 = vpop.eup %6542  ;;  %v3860_v62 = vmul.f32 0.70710677, %v3618_v50  ;;  %v3978_v52 = vadd.f32 1.0, %v6539_v47  ;;  %v3731_v35 = vadd.f32 %v9640_v21, %v8412_v55  ;;  %v8821_v10 = vadd.f32 %v8676_v54, %v8401_v40 }
 0x873   : > { %v6545_v11 = vpop.eup %6544  ;;  %6556 = verf.f32 %v3859_v30  ;;  %4625 = vmatpush1.bf16.msra.mxu1 %v6274_v16  ;;  %v8824_v24 = vmul.f32 %v3975_v36, %v8744_v2  ;;  %v8827_v63 = vmul.f32 0.5, %v8766_v0  ;;  %v8831_v57 = vadd.f32 %v8678_v4, %v8405_v18 }
 0x874   : > { %v6547_v12 = vpop.eup %6546  ;;  %6558 = verf.f32 %v3861_v27  ;;  %4626 = vmatprep.subr.bf16.mxu1 %v6279_v29  ;;  %v8834_v20 = vmul.f32 %v3977_v60, %v8753_v8  ;;  %v8837_v54 = vmul.f32 %v3976_v1, %v8755_v17  ;;  %v8840_v37 = vmul.f32 0.5, %v8773_v59  ;;  %v6280_v8 = vld [vmem:[#allocation11 + $0x1c0] ss:$8 sps:$4 sm:$0xff]   ;;  %v9641_v29 = vld [vmem:[#allocation69_spill] sm:$0xff] }
 0x875   : > { %6560 = verf.f32 %v3860_v62  ;;  %v3979_v2 = vadd.f32 1.0, %v6541_v43  ;;  %v3981_v0 = vadd.f32 1.0, %v6543_v7  ;;  %v3980_v33 = vadd.f32 1.0, %v6545_v11 }
 0x876   : > { %v3862_v38 = vmul.f32 0.70710677, %v3731_v35  ;;  %v8843_v36 = vmul.f32 %v3978_v52, %v8769_v61  ;;  %v3982_v4 = vadd.f32 1.0, %v6547_v12  ;;  %v3795_v16 = vmul.f32 0.5, %v3616_v51  ;;  %v6285_v61 = vld [vmem:[#allocation11 + $0x1d4] ss:$8 sps:$4 sm:$0xff]  }
 0x877   : > { %v3863_v47 = vmul.f32 0.70710677, %v8821_v10  ;;  %4627 = vmatpush1.bf16.msra.mxu1 %v6277_v15  ;;  %v6549_v9 = vpop.eup %6548  ;;  %v3865_v17 = vmul.f32 0.70710677, %v8831_v57  ;;  %v8849_v59 = vadd.f32 %v8686_v42, %v8408_v49  ;;  %v8853_v43 = vadd.f32 %v9641_v29, %v8412_v55 }
 0x878   : > { %6562 = verf.f32 %v3862_v38  ;;  %4628 = vmatprep.subr.bf16.mxu1 %v6282_v53  ;;  %v3797_v60 = vmul.f32 0.5, %v3729_v56  ;;  %v3796_v51 = vmul.f32 0.5, %v3618_v50  ;;  %v4144_v1 = vpack.c.bf16 %v8802_v19, %v8776_v3  ;;  %v6286_v38 = vld [vmem:[#allocation11 + $0x1e0] ss:$8 sps:$4 sm:$0xff]  }
 0x879   : > { %v8859_v30 = vadd.f32 %v8693_v31, %v8401_v40  ;;  %v6551_v7 = vpop.eup %6550  ;;  %v8862_v27 = vmul.f32 %v3979_v2, %v8781_v34  ;;  %v8865_v42 = vmul.f32 %v3981_v0, %v8786_v44  ;;  %v4044_v62 = vmul.f32 %v3980_v33, %v8788_v39  ;;  %v6283_v39 = vld [vmem:[#allocation11 + $0x1d0] ss:$8 sps:$4 sm:$0xff]  }
 0x87a   : > { %v3798_v11 = vmul.f32 0.5, %v3731_v35  ;;  %v6553_v52 = vpop.eup %6552  ;;  %v3983_v56 = vadd.f32 1.0, %v6549_v9  ;;  %6564 = verf.f32 %v3863_v47  ;;  %v3864_v50 = vmul.f32 0.70710677, %v8849_v59  ;;  %4563 = vmatprep.mubr.bf16.mxu1 %v4144_v1  ;;  %v9643_v1 = vld [vmem:[#allocation59_spill] sm:$0xff] }
 0x87b   : > { %v3866_v3 = vmul.f32 0.70710677, %v8853_v43  ;;  %4629 = vmatpush1.bf16.msra.mxu1 %v6280_v8  ;;  %v6555_v40 = vpop.eup %6554  ;;  %v8871_v31 = vmul.f32 %v3982_v4, %v8793_v23  ;;  %6566 = verf.f32 %v3865_v17  ;;  %v3867_v34 = vmul.f32 0.70710677, %v8859_v30  ;;  %v6288_v23 = vld [vmem:[#allocation11 + $0x1e4] ss:$8 sps:$4 sm:$0xff]  }
 0x87c   : > { %v8876_v44 = vadd.f32 %v8695_v48, %v8405_v18  ;;  %4630 = vmatprep.subr.bf16.mxu1 %v6285_v61  ;;  %v3985_v21 = vadd.f32 1.0, %v6551_v7  ;;  %6568 = verf.f32 %v3864_v50  ;;  %v4143_v35 = vpack.c.bf16 %v8784_v28, %v8751_v46  ;;  %v6291_v8 = vld [vmem:[#allocation11 + $0x1f4] ss:$8 sps:$4 sm:$0xff]   ;;  %v9642_v61 = vld [vmem:[#allocation58_spill] sm:$0xff] }
 0x87d   : > { %v6557_v19 = vpop.eup %6556  ;;  %v8882_v15 = vadd.f32 %v8697_v32, %v8408_v49  ;;  %v3984_v53 = vadd.f32 1.0, %v6553_v52  ;;  %6570 = verf.f32 %v3866_v3  ;;  %v8886_v0 = vmul.f32 %v3983_v56, %v8796_v25  ;;  %v9648_v3 = vld [vmem:[#allocation65_spill] sm:$0xff] }
 0x87e   : > { %v6559_v12 = vpop.eup %6558  ;;  %v3987_v2 = vadd.f32 1.0, %v6557_v19  ;;  %v3869_v18 = vmul.f32 0.70710677, %v8876_v44  ;;  %6572 = verf.f32 %v3867_v34  ;;  %4564 = vmatmul.mubr.bf16.gmra.mrb[112].mxu1 %v4143_v35  ;;  %v8893_v32 = vadd.f32 %v8704_v6, %v8412_v55 }
 0x87f   : > { %v6561_v48 = vpop.eup %6560  ;;  %v3989_v33 = vadd.f32 1.0, %v6559_v12  ;;  %v3868_v46 = vmul.f32 0.70710677, %v8882_v15  ;;  %4631 = vmatpush1.bf16.msra.mxu1 %v6283_v39  ;;  %v3986_v4 = vadd.f32 1.0, %v6555_v40  ;;  %v4148_v25 = vpack.c.bf16 %v4044_v62, %v8837_v54  ;;  %v9644_v54 = vld [vmem:[#allocation61_spill] sm:$0xff]  ;;  %v9645_v62 = vld [vmem:[#allocation63_spill] sm:$0xff] }
 0x880   : > { %v8889_v28 = vmul.f32 %v3987_v2, %v3795_v16  ;;  %v3988_v49 = vadd.f32 1.0, %v6561_v48  ;;  %6574 = verf.f32 %v3869_v18  ;;  %v4147_v47 = vpack.c.bf16 %v8862_v27, %v8824_v24  ;;  %4632 = vmatprep.subr.bf16.mxu1 %v6288_v23  ;;  %v9646_v24 = vld [vmem:[#allocation60_spill] sm:$0xff]  ;;  %v9647_v27 = vld [vmem:[#allocation62_spill] sm:$0xff] }
 0x881   : > { %6576 = verf.f32 %v3868_v46  ;;  %v4048_v16 = vmul.f32 %v3984_v53, %v8827_v63  ;;  %v3870_v29 = vmul.f32 0.70710677, %v8893_v32  ;;  %4573 = vmatprep.mubr.bf16.mxu1 %v4148_v25  ;;  %v4130_v7 = vpack.c.bf16 %v9643_v1, %v9642_v61  ;;  %v9649_v40 = vld [vmem:[#allocation68_spill] sm:$0xff]  ;;  %v9651_v12 = vld [vmem:[#allocation66_spill] sm:$0xff]  ;;  %v9658_v61 = vld [vmem:[#allocation23_spill] sm:$0xff] }
 0x882   : > { %v6563_v9 = vpop.eup %6562  ;;  %v4052_v17 = vmul.f32 %v3988_v49, %v3796_v51  ;;  %v4151_v55 = vpack.c.bf16 %v8889_v28, %v8886_v0  ;;  %v4134_v52 = vpack.c.bf16 %v9645_v62, %v9644_v54  ;;  %v4133_v56 = vpack.c.bf16 %v9647_v27, %v9646_v24  ;;  %v6289_v51 = vld [vmem:[#allocation11 + $0x1f0] ss:$8 sps:$4 sm:$0xff]   ;;  %v9652_v48 = vld [vmem:[#allocation70_spill] sm:$0xff] }
 0x883   : > { %v3990_v6 = vadd.f32 1.0, %v6563_v9  ;;  %v8908_v50 = vmul.f32 %v3989_v33, %v3797_v60  ;;  %6578 = verf.f32 %v3870_v29  ;;  %4633 = vmatpush1.bf16.msra.mxu1 %v6286_v38  ;;  %v4138_v34 = vpack.c.bf16 %v9649_v40, %v9648_v3  ;;  %v9650_v23 = vld [vmem:[#allocation64_spill] sm:$0xff]  ;;  %v9659_v27 = vld [vmem:[#allocation26_spill] sm:$0xff] }
 0x884   : > { %v4152_v63 = vpack.c.bf16 %v4052_v17, %v4048_v16  ;;  %v6565_v39 = vpop.eup %6564  ;;  %v8913_v19 = vmul.f32 %v3986_v4, %v8840_v37  ;;  %4634 = vmatprep.subr.bf16.mxu1 %v6291_v8  ;;  %v4137_v53 = vpack.c.bf16 %v9651_v12, %v9650_v23  ;;  %v4142_v60 = vpack.c.bf16 %v8733_v45, %v8713_v22  ;;  %v9660_v12 = vld [vmem:[#allocation24_spill] sm:$0xff] }
 0x885   : > { %v8915_v35 = vmul.f32 %v3990_v6, %v3798_v11  ;;  %v6567_v2 = vpop.eup %6566  ;;  %v4049_v18 = vmul.f32 %v3985_v21, %v8808_v26  ;;  %v4141_v0 = vpack.c.bf16 %v8723_v41, %v9652_v48  ;;  %v4146_v33 = vpack.c.bf16 %v8815_v58, %v8779_v14  ;;  %v9662_v48 = vld [vmem:[#allocation25_spill] sm:$0xff] }
 0x886   : > { %v4145_v37 = vpack.c.bf16 %v8791_v13, %v8762_v5  ;;  %v6569_v11 = vpop.eup %6568  ;;  %4574 = vmatmul.mubr.bf16.gmra.mrb[116].mxu1 %v4147_v47  ;;  %v4150_v46 = vpack.c.bf16 %v8871_v31, %v8843_v36  ;;  %v4149_v22 = vpack.c.bf16 %v8865_v42, %v8834_v20  ;;  %v3991_v21 = vadd.f32 1.0, %v6565_v39  ;;  %v9653_v39 = vld [vmem:[#allocation57_spill] sm:$0xff] }
 0x887   : > { %v4154_v45 = vpack.c.bf16 %v8915_v35, %v8913_v19  ;;  %v6571_v26 = vpop.eup %6570  ;;  %4583 = vmatprep.mubr.bf16.mxu1 %v4152_v63  ;;  %4635 = vmatpush1.bf16.msra.mxu1 %v6289_v51  ;;  %v4153_v41 = vpack.c.bf16 %v8908_v50, %v4049_v18  ;;  %v3993_v58 = vadd.f32 1.0, %v6567_v2  ;;  %v3799_v13 = vmul.f32 0.5, %v8821_v10  ;;  %v9654_v19 = vld [vmem:[#allocation56_spill] sm:$0xff]  ;;  %v9661_v2 = vld [vmem:[#allocation27_spill] sm:$0xff] }
 0x888   : > { %v6573_v14 = vpop.eup %6572  ;;  %v3992_v28 = vadd.f32 1.0, %v6569_v11  ;;  %v3803_v36 = vmul.f32 0.5, %v8859_v30  ;;  %v3801_v20 = vmul.f32 0.5, %v8831_v57  ;;  %v3800_v42 = vmul.f32 0.5, %v8849_v59 }
 0x889   : > { %v3995_v31 = vadd.f32 1.0, %v6573_v14  ;;  %v3805_v38 = vmul.f32 0.5, %v8876_v44  ;;  %v4055_v25 = vmul.f32 %v3991_v21, %v3799_v13  ;;  %v3804_v8 = vmul.f32 0.5, %v8882_v15  ;;  %v9663_v21 = vld [vmem:[#allocation30_spill] sm:$0xff] }
 0x88a   : > { %v6575_v5 = vpop.eup %6574  ;;  %v4057_v16 = vmul.f32 %v3993_v58, %v3801_v20  ;;  %v3994_v17 = vadd.f32 1.0, %v6571_v26  ;;  %v4056_v6 = vmul.f32 %v3992_v28, %v3800_v42  ;;  %v3802_v63 = vmul.f32 0.5, %v8853_v43  ;;  %v4159_v43 = vld [vmem:[%s9656_s4] sm:$0x3]  ;;  %s6822_s4 = scalar_lea.vmem %s6821_s13, 8192 }
 0x88b   : > { %v6577_v49 = vpop.eup %6576  ;;  %v3997_v4 = vadd.f32 1.0, %v6575_v5  ;;  %v4059_v47 = vmul.f32 %v3995_v31, %v3803_v36  ;;  %v3806_v57 = vmul.f32 0.5, %v8893_v32  ;;  %v9655_v35 = vpack.c.bf16 %v9653_v39, %v9654_v19  ;;  %v9657_v32 = vld [vmem:[#allocation22_spill] sm:$0xff]  ;;  %v9664_v5 = vld [vmem:[#allocation28_spill] sm:$0xff]  ;;  %v9665_v36 = vld [vmem:[#allocation31_spill] sm:$0xff]  ;;  %p6824_p6 = scmp.lt.s32.totalorder %s6822_s4, %s6816_s27 }
 0x88c   : > { %v3996_v9 = vadd.f32 1.0, %v6577_v49  ;;  %v4058_v3 = vmul.f32 %v3994_v17, %v3802_v63  ;;  %v8962_v1 = vrot.slane %v4159_v43, %v9658_v61  ;;  %v9666_v49 = vld [vmem:[#allocation29_spill] sm:$0xff]  ;;  %v9669_v63 = vld [vmem:[#allocation35_spill] sm:$0xff] }
 0x88d   : > { %v4061_v10 = vmul.f32 %v3997_v4, %v3805_v38  ;;  %v6579_v29 = vpop.eup %6578  ;;  %v4155_v50 = vpack.c.bf16 %v4059_v47, %v4055_v25  ;;  %p6825_p8 = por %p6824_p6, %p6823_p3 }
 0x88e   : > { %v4060_v30 = vmul.f32 %v3996_v9, %v3804_v8  ;;  %v3998_v59 = vadd.f32 1.0, %v6579_v29  ;;  %4584 = vmatmul.mubr.bf16.gmra.mrb[120].mxu1 %v4151_v55  ;;  %v8959_v55 = vrot.slane %v4159_v43, %v9657_v32  ;;  %v9671_v43 = vld [vmem:[#allocation38_spill] sm:$0xff] }
 0x88f   : > { %v4157_v44 = vpack.c.bf16 %v4061_v10, %v4057_v16  ;;  %v9667_v16 = vld [vmem:[#allocation34_spill] sm:$0xff]  ;;  %p6826_p10 = pnand %p6825_p8, %p6819_p4 }
 0x890   : > { %v4156_v51 = vpack.c.bf16 %v4060_v30, %v4056_v6  ;;  %v4062_v40 = vmul.f32 %v3998_v59, %v3806_v57  ;;  %v9668_v6 = vld [vmem:[#allocation32_spill] sm:$0xff]  ;;  %v9670_v59 = vld [vmem:[#allocation33_spill] sm:$0xff] }
 0x892   : > { %4593 = vmatprep.mubr.bf16.mxu1 %v4156_v51  ;;  %v4158_v15 = vpack.c.bf16 %v4062_v40, %v4058_v3 }
 0x896   : > { %4594 = vmatmul.mubr.bf16.gmra.mrb[124].mxu1 %v4155_v50 }
 0x897   : > { %4636 = vmatprep.mubr.bf16.mxu1 %v4130_v7 }
 0x89e   : > { %4637 = vmatmul.mubr.bf16.vlgmr.msra.gmra.mrb[96].mxu1 %v9655_v35 }
 0x89f   : > { %4646 = vmatprep.mubr.bf16.mxu1 %v4134_v52 }
 0x8a6   : > { %4647 = vmatmul.mubr.bf16.gmra.mrb[100].mxu1 %v4133_v56 }
 0x8a7   : > { %4656 = vmatprep.mubr.bf16.mxu1 %v4138_v34 }
 0x8ae   : > { %4657 = vmatmul.mubr.bf16.gmra.mrb[104].mxu1 %v4137_v53 }
 0x8af   : > { %4666 = vmatprep.mubr.bf16.mxu1 %v4142_v60 }
 0x8b6   : > { %4667 = vmatmul.mubr.bf16.gmra.mrb[108].mxu1 %v4141_v0 }
 0x8b7   : > { %4676 = vmatprep.mubr.bf16.mxu1 %v4146_v33 }
 0x8be   : > { %4677 = vmatmul.mubr.bf16.gmra.mrb[112].mxu1 %v4145_v37 }
 0x8bf   : > { %4686 = vmatprep.mubr.bf16.mxu1 %v4150_v46 }
 0x8c6   : > { %4687 = vmatmul.mubr.bf16.gmra.mrb[116].mxu1 %v4149_v22 }
 0x8c7   : > { %4696 = vmatprep.mubr.bf16.mxu1 %v4154_v45 }
 0x8ce   : > { %4697 = vmatmul.mubr.bf16.gmra.mrb[120].mxu1 %v4153_v41 }
 0x8cf   : > { %4706 = vmatprep.mubr.bf16.mxu1 %v4158_v15 }
 0x8d6   : > { %4707 = vmatmul.mubr.bf16.gmra.mrb[124].mxu1 %v4157_v44 }
 0x971   : > { %v4638_v7 = vpop.f32.mrb[96].mxu1 }
 0x972   : > { %v5744_v54 = vadd.f32 %v4638_v7, %v8959_v55  ;;  %v4640_v62 = vpop.f32.mrb[97].mxu1 }
 0x973   : > { %v5745_v52 = vadd.f32 %v4640_v62, %v8962_v1  ;;  %v4642_v24 = vpop.f32.mrb[98].mxu1 }
 0x974   : > { %v8967_v56 = vadd.f32 %v5744_v54, %v9659_v27  ;;  %v5746_v34 = vadd.f32 %v4642_v24, %v8959_v55  ;;  %v4644_v23 = vpop.f32.mrb[99].mxu1 }
 0x975   : > { %v8971_v53 = vadd.f32 %v5745_v52, %v9660_v12  ;;  %v5747_v60 = vadd.f32 %v4644_v23, %v8962_v1  ;;  %v9672_v52 = vld [vmem:[#allocation36_spill] sm:$0xff]  ;;  %v9674_v12 = vld [vmem:[#allocation37_spill] sm:$0xff] }
 0x976   : > { %v8975_v18 = vadd.f32 %v5746_v34, %v9661_v2  ;;  %v9673_v34 = vld [vmem:[#allocation39_spill] sm:$0xff] }
 0x977   : > { %v8978_v0 = vadd.f32 %v5747_v60, %v9662_v48  ;;  %v4751_v33 = vadd.f32 %v8971_v53, %v8967_v56 }
 0x979   : > { %v4648_v37 = vpop.f32.mrb[100].mxu1  ;;  %4752 = vadd.xlane.f32.xlu0 %v4751_v33  ;;  %v4754_v11 = vadd.f32 %v8978_v0, %v8975_v18 }
 0x97a   : > { %v5748_v46 = vadd.f32 %v4648_v37, %v8959_v55  ;;  %v4650_v22 = vpop.f32.mrb[101].mxu1 }
 0x97b   : > { %v5749_v45 = vadd.f32 %v4650_v22, %v8962_v1  ;;  %v4652_v26 = vpop.f32.mrb[102].mxu1  ;;  %4755 = vadd.xlane.f32.xlu1 %v4754_v11 }
 0x97c   : > { %v8987_v41 = vadd.f32 %v5748_v46, %v9663_v21  ;;  %v5750_v14 = vadd.f32 %v4652_v26, %v8959_v55  ;;  %v4654_v58 = vpop.f32.mrb[103].mxu1 }
 0x97d   : > { %v8991_v13 = vadd.f32 %v5749_v45, %v9664_v5  ;;  %v5751_v28 = vadd.f32 %v4654_v58, %v8962_v1  ;;  %v9675_v45 = vld [vmem:[#allocation42_spill] sm:$0xff]  ;;  %v9676_v58 = vld [vmem:[#allocation40_spill] sm:$0xff] }
 0x97e   : > { %v8995_v31 = vadd.f32 %v5750_v14, %v9665_v36  ;;  %v9677_v36 = vld [vmem:[#allocation43_spill] sm:$0xff] }
 0x97f   : > { %v8998_v20 = vadd.f32 %v5751_v28, %v9666_v49  ;;  %v4757_v42 = vadd.f32 %v8991_v13, %v8987_v41 }
 0x981   : > { %v4658_v38 = vpop.f32.mrb[104].mxu1  ;;  %4758 = vadd.xlane.f32.xlu0 %v4757_v42  ;;  %v4760_v4 = vadd.f32 %v8998_v20, %v8995_v31  ;;  %v9678_v42 = vld [vmem:[#allocation41_spill] sm:$0xff] }
 0x982   : > { %v5752_v25 = vadd.f32 %v4658_v38, %v8959_v55  ;;  %v4660_v47 = vpop.f32.mrb[105].mxu1 }
 0x983   : > { %v5753_v8 = vadd.f32 %v4660_v47, %v8962_v1  ;;  %v4662_v9 = vpop.f32.mrb[106].mxu1  ;;  %4761 = vadd.xlane.f32.xlu1 %v4760_v4 }
 0x984   : > { %v9007_v17 = vadd.f32 %v5752_v25, %v9667_v16  ;;  %v5754_v10 = vadd.f32 %v4662_v9, %v8959_v55  ;;  %v4664_v29 = vpop.f32.mrb[107].mxu1 }
 0x985   : > { %v9011_v30 = vadd.f32 %v5753_v8, %v9668_v6  ;;  %v5755_v50 = vadd.f32 %v4664_v29, %v8962_v1  ;;  %v9679_v29 = vld [vmem:[#allocation46_spill] sm:$0xff] }
 0x986   : > { %v9015_v57 = vadd.f32 %v5754_v10, %v9669_v63 }
 0x987   : > { %v9018_v44 = vadd.f32 %v5755_v50, %v9670_v59  ;;  %v4763_v51 = vadd.f32 %v9011_v30, %v9007_v17  ;;  %v9680_v59 = vld [vmem:[#allocation44_spill] sm:$0xff] }
 0x989   : > { %v4668_v3 = vpop.f32.mrb[108].mxu1  ;;  %4764 = vadd.xlane.f32.xlu0 %v4763_v51  ;;  %v4766_v40 = vadd.f32 %v9018_v44, %v9015_v57 }
 0x98a   : > { %v5756_v15 = vadd.f32 %v4668_v3, %v8959_v55  ;;  %v4670_v39 = vpop.f32.mrb[109].mxu1 }
 0x98b   : > { %v5757_v19 = vadd.f32 %v4670_v39, %v8962_v1  ;;  %v4672_v35 = vpop.f32.mrb[110].mxu1  ;;  %4767 = vadd.xlane.f32.xlu1 %v4766_v40  ;;  %v9681_v40 = vld [vmem:[#allocation47_spill] sm:$0xff]  ;;  %v9682_v39 = vld [vmem:[#allocation45_spill] sm:$0xff] }
 0x98c   : > { %v9027_v7 = vadd.f32 %v5756_v15, %v9671_v43  ;;  %v5758_v54 = vadd.f32 %v4672_v35, %v8959_v55  ;;  %v4674_v62 = vpop.f32.mrb[111].mxu1 }
 0x98d   : > { %v9031_v24 = vadd.f32 %v5757_v19, %v9672_v52  ;;  %v5759_v27 = vadd.f32 %v4674_v62, %v8962_v1 }
 0x98e   : > { %v9035_v23 = vadd.f32 %v5758_v54, %v9673_v34 }
 0x98f   : > { %v9038_v60 = vadd.f32 %v5759_v27, %v9674_v12  ;;  %v4769_v2 = vadd.f32 %v9031_v24, %v9027_v7  ;;  %v9683_v12 = vld [vmem:[#allocation50_spill] sm:$0xff] }
 0x991   : > { %v4678_v48 = vpop.f32.mrb[112].mxu1  ;;  %4770 = vadd.xlane.f32.xlu0 %v4769_v2  ;;  %v4772_v33 = vadd.f32 %v9038_v60, %v9035_v23 }
 0x992   : > { %v5760_v37 = vadd.f32 %v4678_v48, %v8959_v55  ;;  %v4680_v11 = vpop.f32.mrb[113].mxu1 }
 0x993   : > { %v5761_v46 = vadd.f32 %v4680_v11, %v8962_v1  ;;  %v4682_v22 = vpop.f32.mrb[114].mxu1  ;;  %4773 = vadd.xlane.f32.xlu1 %v4772_v33 }
 0x994   : > { %v9047_v26 = vadd.f32 %v5760_v37, %v9675_v45  ;;  %v5762_v21 = vadd.f32 %v4682_v22, %v8959_v55  ;;  %v4684_v14 = vpop.f32.mrb[115].mxu1  ;;  %v9684_v37 = vld [vmem:[#allocation48_spill] sm:$0xff]  ;;  %v9685_v22 = vld [vmem:[#allocation51_spill] sm:$0xff] }
 0x995   : > { %v9051_v5 = vadd.f32 %v5761_v46, %v9676_v58  ;;  %v5763_v28 = vadd.f32 %v4684_v14, %v8962_v1 }
 0x996   : > { %v9055_v49 = vadd.f32 %v5762_v21, %v9677_v36  ;;  %v9686_v21 = vld [vmem:[#allocation49_spill] sm:$0xff] }
 0x997   : > { %v9058_v38 = vadd.f32 %v5763_v28, %v9678_v42  ;;  %v4775_v4 = vadd.f32 %v9051_v5, %v9047_v26 }
 0x999   : > { %v4688_v25 = vpop.f32.mrb[116].mxu1  ;;  %4776 = vadd.xlane.f32.xlu0 %v4775_v4  ;;  %v4778_v47 = vadd.f32 %v9058_v38, %v9055_v49 }
 0x99a   : > { %v5764_v8 = vadd.f32 %v4688_v25, %v8959_v55  ;;  %v4690_v9 = vpop.f32.mrb[117].mxu1 }
 0x99b   : > { %v5765_v16 = vadd.f32 %v4690_v9, %v8962_v1  ;;  %v4692_v10 = vpop.f32.mrb[118].mxu1  ;;  %4779 = vadd.xlane.f32.xlu1 %v4778_v47 }
 0x99c   : > { %v9067_v6 = vadd.f32 %v5764_v8, %v9679_v29  ;;  %v5766_v50 = vadd.f32 %v4692_v10, %v8959_v55  ;;  %v4694_v63 = vpop.f32.mrb[119].mxu1  ;;  %v9687_v8 = vld [vmem:[#allocation54_spill] sm:$0xff]  ;;  %v9688_v29 = vld [vmem:[#allocation52_spill] sm:$0xff] }
 0x99d   : > { %v9071_v51 = vadd.f32 %v5765_v16, %v9680_v59  ;;  %v5767_v3 = vadd.f32 %v4694_v63, %v8962_v1  ;;  %v9689_v59 = vld [vmem:[#allocation55_spill] sm:$0xff] }
 0x99e   : > { %v9075_v15 = vadd.f32 %v5766_v50, %v9681_v40  ;;  %v9690_v40 = vld [vmem:[#allocation53_spill] sm:$0xff] }
 0x99f   : > { %v9078_v19 = vadd.f32 %v5767_v3, %v9682_v39  ;;  %v4781_v35 = vadd.f32 %v9071_v51, %v9067_v6 }
 0x9a1   : > { %v4698_v43 = vpop.f32.mrb[120].mxu1  ;;  %4782 = vadd.xlane.f32.xlu0 %v4781_v35  ;;  %v4784_v54 = vadd.f32 %v9078_v19, %v9075_v15 }
 0x9a2   : > { %v5768_v62 = vadd.f32 %v4698_v43, %v8959_v55  ;;  %v4700_v52 = vpop.f32.mrb[121].mxu1 }
 0x9a3   : > { %v5769_v27 = vadd.f32 %v4700_v52, %v8962_v1  ;;  %v4702_v34 = vpop.f32.mrb[122].mxu1  ;;  %4785 = vadd.xlane.f32.xlu1 %v4784_v54 }
 0x9a4   : > { %v9087_v2 = vadd.f32 %v5768_v62, %v9683_v12  ;;  %v5770_v48 = vadd.f32 %v4702_v34, %v8959_v55  ;;  %v4704_v33 = vpop.f32.mrb[123].mxu1 }
 0x9a5   : > { %v9091_v11 = vadd.f32 %v5769_v27, %v9684_v37  ;;  %v5771_v46 = vadd.f32 %v4704_v33, %v8962_v1 }
 0x9a6   : > { %v9095_v45 = vadd.f32 %v5770_v48, %v9685_v22 }
 0x9a7   : > { %v9098_v14 = vadd.f32 %v5771_v46, %v9686_v21  ;;  %v4787_v58 = vadd.f32 %v9091_v11, %v9087_v2 }
 0x9a9   : > { %v4708_v28 = vpop.f32.mrb[124].mxu1  ;;  %4788 = vadd.xlane.f32.xlu0 %v4787_v58  ;;  %v4790_v36 = vadd.f32 %v9098_v14, %v9095_v45 }
 0x9aa   : > { %v5772_v42 = vadd.f32 %v4708_v28, %v8959_v55  ;;  %v4710_v4 = vpop.f32.mrb[125].mxu1 }
 0x9ab   : > { %v5773_v25 = vadd.f32 %v4710_v4, %v8962_v1  ;;  %v4712_v47 = vpop.f32.mrb[126].mxu1  ;;  %4791 = vadd.xlane.f32.xlu1 %v4790_v36 }
 0x9ac   : > { %v9107_v9 = vadd.f32 %v5772_v42, %v9687_v8  ;;  %v5774_v16 = vadd.f32 %v4712_v47, %v8959_v55  ;;  %v4714_v10 = vpop.f32.mrb[127].mxu1 }
 0x9ad   : > { %v9111_v50 = vadd.f32 %v5773_v25, %v9688_v29  ;;  %v5775_v63 = vadd.f32 %v4714_v10, %v8962_v1 }
 0x9ae   : > { %v9115_v3 = vadd.f32 %v5774_v16, %v9689_v59 }
 0x9af   : > { %v9118_v39 = vadd.f32 %v5775_v63, %v9690_v40  ;;  %v4793_v35 = vadd.f32 %v9111_v50, %v9107_v9 }
 0x9b1   : > { %4794 = vadd.xlane.f32.xlu0 %v4793_v35  ;;  %v4796_v43 = vadd.f32 %v9118_v39, %v9115_v3 }
 0x9b3   : > { %4797 = vadd.xlane.f32.xlu1 %v4796_v43 }
 0xa06   : > { %v4753_v55 = vpop.xlane.xlu0 %4752 }
 0xa07   : > { %v4799_v54 = vmul.f32 0.00390625, %v4753_v55 }
 0xa08   : > { %v4756_v62 = vpop.xlane.xlu1 %4755 }
 0xa09   : > { %v9125_v52 = vsub.f32 %v8967_v56, %v4799_v54  ;;  %v9128_v1 = vsub.f32 %v8971_v53, %v4799_v54  ;;  %v4800_v27 = vmul.f32 0.00390625, %v4756_v62 }
 0xa0b   : > { %v4847_v34 = vmul.f32 %v9125_v52, %v9125_v52  ;;  %v4848_v12 = vmul.f32 %v9128_v1, %v9128_v1  ;;  %v9135_v48 = vsub.f32 %v8975_v18, %v4800_v27  ;;  %v9138_v33 = vsub.f32 %v8978_v0, %v4800_v27 }
 0xa0d   : > { %v4849_v56 = vmul.f32 %v9135_v48, %v9135_v48  ;;  %v4850_v53 = vmul.f32 %v9138_v33, %v9138_v33  ;;  %v4879_v37 = vadd.f32 %v4848_v12, %v4847_v34 }
 0xa0e   : > { %v4759_v46 = vpop.xlane.xlu0 %4758 }
 0xa0f   : > { %v4801_v22 = vmul.f32 0.00390625, %v4759_v46  ;;  %4880 = vadd.xlane.f32.xlu0 %v4879_v37  ;;  %v4882_v21 = vadd.f32 %v4850_v53, %v4849_v56 }
 0xa10   : > { %v4762_v58 = vpop.xlane.xlu1 %4761 }
 0xa11   : > { %v9145_v28 = vsub.f32 %v8987_v41, %v4801_v22  ;;  %v9148_v18 = vsub.f32 %v8991_v13, %v4801_v22  ;;  %v4802_v0 = vmul.f32 0.00390625, %v4762_v58  ;;  %4883 = vadd.xlane.f32.xlu1 %v4882_v21 }
 0xa13   : > { %v4851_v36 = vmul.f32 %v9145_v28, %v9145_v28  ;;  %v4852_v42 = vmul.f32 %v9148_v18, %v9148_v18  ;;  %v9155_v4 = vsub.f32 %v8995_v31, %v4802_v0  ;;  %v9158_v25 = vsub.f32 %v8998_v20, %v4802_v0 }
 0xa15   : > { %v4853_v41 = vmul.f32 %v9155_v4, %v9155_v4  ;;  %v4854_v13 = vmul.f32 %v9158_v25, %v9158_v25  ;;  %v4885_v47 = vadd.f32 %v4852_v42, %v4851_v36 }
 0xa16   : > { %v4765_v8 = vpop.xlane.xlu0 %4764 }
 0xa17   : > { %v4803_v16 = vmul.f32 0.00390625, %v4765_v8  ;;  %4886 = vadd.xlane.f32.xlu0 %v4885_v47  ;;  %v4888_v10 = vadd.f32 %v4854_v13, %v4853_v41 }
 0xa18   : > { %v4768_v29 = vpop.xlane.xlu1 %4767 }
 0xa19   : > { %v9165_v63 = vsub.f32 %v9007_v17, %v4803_v16  ;;  %v9168_v31 = vsub.f32 %v9011_v30, %v4803_v16  ;;  %v4804_v20 = vmul.f32 0.00390625, %v4768_v29  ;;  %4889 = vadd.xlane.f32.xlu1 %v4888_v10 }
 0xa1b   : > { %v4855_v59 = vmul.f32 %v9165_v63, %v9165_v63  ;;  %v4856_v40 = vmul.f32 %v9168_v31, %v9168_v31  ;;  %v9175_v35 = vsub.f32 %v9015_v57, %v4804_v20  ;;  %v9178_v43 = vsub.f32 %v9018_v44, %v4804_v20 }
 0xa1d   : > { %v4857_v17 = vmul.f32 %v9175_v35, %v9175_v35  ;;  %v4858_v30 = vmul.f32 %v9178_v43, %v9178_v43  ;;  %v4891_v55 = vadd.f32 %v4856_v40, %v4855_v59 }
 0xa1e   : > { %v4771_v54 = vpop.xlane.xlu0 %4770 }
 0xa1f   : > { %v4805_v62 = vmul.f32 0.00390625, %v4771_v54  ;;  %4892 = vadd.xlane.f32.xlu0 %v4891_v55  ;;  %v4894_v27 = vadd.f32 %v4858_v30, %v4857_v17 }
 0xa20   : > { %v4774_v34 = vpop.xlane.xlu1 %4773 }
 0xa21   : > { %v9185_v12 = vsub.f32 %v9027_v7, %v4805_v62  ;;  %v9188_v57 = vsub.f32 %v9031_v24, %v4805_v62  ;;  %v4806_v44 = vmul.f32 0.00390625, %v4774_v34  ;;  %4895 = vadd.xlane.f32.xlu1 %v4894_v27 }
 0xa23   : > { %v4859_v56 = vmul.f32 %v9185_v12, %v9185_v12  ;;  %v4860_v53 = vmul.f32 %v9188_v57, %v9188_v57  ;;  %v9195_v37 = vsub.f32 %v9035_v23, %v4806_v44  ;;  %v9198_v46 = vsub.f32 %v9038_v60, %v4806_v44 }
 0xa25   : > { %v4861_v7 = vmul.f32 %v9195_v37, %v9195_v37  ;;  %v4862_v24 = vmul.f32 %v9198_v46, %v9198_v46  ;;  %v4897_v22 = vadd.f32 %v4860_v53, %v4859_v56 }
 0xa26   : > { %v4777_v21 = vpop.xlane.xlu0 %4776 }
 0xa27   : > { %v4807_v58 = vmul.f32 0.00390625, %v4777_v21  ;;  %4898 = vadd.xlane.f32.xlu0 %v4897_v22  ;;  %v4900_v0 = vadd.f32 %v4862_v24, %v4861_v7 }
 0xa28   : > { %v4780_v36 = vpop.xlane.xlu1 %4779 }
 0xa29   : > { %v9205_v42 = vsub.f32 %v9047_v26, %v4807_v58  ;;  %v9208_v23 = vsub.f32 %v9051_v5, %v4807_v58  ;;  %v4808_v60 = vmul.f32 0.00390625, %v4780_v36  ;;  %4901 = vadd.xlane.f32.xlu1 %v4900_v0 }
 0xa2b   : > { %v4863_v41 = vmul.f32 %v9205_v42, %v9205_v42  ;;  %v4864_v13 = vmul.f32 %v9208_v23, %v9208_v23  ;;  %v9215_v47 = vsub.f32 %v9055_v49, %v4808_v60  ;;  %v9218_v8 = vsub.f32 %v9058_v38, %v4808_v60 }
 0xa2d   : > { %v4865_v26 = vmul.f32 %v9215_v47, %v9215_v47  ;;  %v4866_v5 = vmul.f32 %v9218_v8, %v9218_v8  ;;  %v4903_v16 = vadd.f32 %v4864_v13, %v4863_v41 }
 0xa2e   : > { %v4783_v10 = vpop.xlane.xlu0 %4782 }
 0xa2f   : > { %v4809_v29 = vmul.f32 0.00390625, %v4783_v10  ;;  %4904 = vadd.xlane.f32.xlu0 %v4903_v16  ;;  %v4906_v20 = vadd.f32 %v4866_v5, %v4865_v26 }
 0xa30   : > { %v4786_v59 = vpop.xlane.xlu1 %4785 }
 0xa31   : > { %v9225_v40 = vsub.f32 %v9067_v6, %v4809_v29  ;;  %v9228_v49 = vsub.f32 %v9071_v51, %v4809_v29  ;;  %v4810_v38 = vmul.f32 0.00390625, %v4786_v59  ;;  %4907 = vadd.xlane.f32.xlu1 %v4906_v20 }
 0xa33   : > { %v4867_v17 = vmul.f32 %v9225_v40, %v9225_v40  ;;  %v4868_v30 = vmul.f32 %v9228_v49, %v9228_v49  ;;  %v9235_v55 = vsub.f32 %v9075_v15, %v4810_v38  ;;  %v9238_v54 = vsub.f32 %v9078_v19, %v4810_v38 }
 0xa35   : > { %v4869_v6 = vmul.f32 %v9235_v55, %v9235_v55  ;;  %v4870_v51 = vmul.f32 %v9238_v54, %v9238_v54  ;;  %v4909_v62 = vadd.f32 %v4868_v30, %v4867_v17 }
 0xa36   : > { %v4789_v27 = vpop.xlane.xlu0 %4788 }
 0xa37   : > { %v4811_v34 = vmul.f32 0.00390625, %v4789_v27  ;;  %4910 = vadd.xlane.f32.xlu0 %v4909_v62  ;;  %v4912_v44 = vadd.f32 %v4870_v51, %v4869_v6  ;;  %v4749_v27 = vld [vmem:[%s9691_s19] sm:$0x3] }
 0xa38   : > { %v4792_v56 = vpop.xlane.xlu1 %4791 }
 0xa39   : > { %v9245_v53 = vsub.f32 %v9087_v2, %v4811_v34  ;;  %v9248_v15 = vsub.f32 %v9091_v11, %v4811_v34  ;;  %v4812_v19 = vmul.f32 0.00390625, %v4792_v56  ;;  %4913 = vadd.xlane.f32.xlu1 %v4912_v44  ;;  %v4750_v56 = vld [vmem:[%s9692_s20] sm:$0x3] }
 0xa3b   : > { %v4871_v7 = vmul.f32 %v9245_v53, %v9245_v53  ;;  %v4872_v24 = vmul.f32 %v9248_v15, %v9248_v15  ;;  %v9255_v22 = vsub.f32 %v9095_v45, %v4812_v19  ;;  %v9258_v21 = vsub.f32 %v9098_v14, %v4812_v19 }
 0xa3d   : > { %v4873_v2 = vmul.f32 %v9255_v22, %v9255_v22  ;;  %v4874_v11 = vmul.f32 %v9258_v21, %v9258_v21  ;;  %v4915_v58 = vadd.f32 %v4872_v24, %v4871_v7  ;;  %v9291_v7 = vrot.slane %v4749_v27, %v9657_v32 }
 0xa3e   : > { %v4795_v0 = vpop.xlane.xlu0 %4794  ;;  %v9294_v24 = vrot.slane %v4749_v27, %v9658_v61 }
 0xa3f   : > { %v4813_v36 = vmul.f32 0.00390625, %v4795_v0  ;;  %4916 = vadd.xlane.f32.xlu0 %v4915_v58  ;;  %v4918_v60 = vadd.f32 %v4874_v11, %v4873_v2  ;;  %v9297_v11 = vrot.slane %v4750_v56, %v9657_v32  ;;  %v9300_v58 = vrot.slane %v4750_v56, %v9658_v61 }
 0xa40   : > { %v4798_v41 = vpop.xlane.xlu1 %4797 }
 0xa41   : > { %v9265_v13 = vsub.f32 %v9107_v9, %v4813_v36  ;;  %v9268_v45 = vsub.f32 %v9111_v50, %v4813_v36  ;;  %v4814_v14 = vmul.f32 0.00390625, %v4798_v41  ;;  %4919 = vadd.xlane.f32.xlu1 %v4918_v60 }
 0xa43   : > { %v4875_v26 = vmul.f32 %v9265_v13, %v9265_v13  ;;  %v4876_v5 = vmul.f32 %v9268_v45, %v9268_v45  ;;  %v9275_v16 = vsub.f32 %v9115_v3, %v4814_v14  ;;  %v9278_v10 = vsub.f32 %v9118_v39, %v4814_v14 }
 0xa45   : > { %v4877_v9 = vmul.f32 %v9275_v16, %v9275_v16  ;;  %v4878_v50 = vmul.f32 %v9278_v10, %v9278_v10  ;;  %v4921_v29 = vadd.f32 %v4876_v5, %v4875_v26 }
 0xa47   : > { %4922 = vadd.xlane.f32.xlu0 %v4921_v29  ;;  %v4924_v20 = vadd.f32 %v4878_v50, %v4877_v9 }
 0xa49   : > { %4925 = vadd.xlane.f32.xlu1 %v4924_v20 }
 0xa9c   : > { %v4881_v59 = vpop.xlane.xlu0 %4880 }
 0xa9d   : > { %v4927_v38 = vmul.f32 0.00390625, %v4881_v59 }
 0xa9e   : > { %v4884_v17 = vpop.xlane.xlu1 %4883 }
 0xa9f   : > { %v4943_v30 = vadd.f32 1e-12, %v4927_v38  ;;  %v4928_v6 = vmul.f32 0.00390625, %v4884_v17 }
 0xaa1   : > { %6580 = vrsqrt.f32 %v4943_v30  ;;  %v4944_v3 = vadd.f32 1e-12, %v4928_v6 }
 0xaa3   : > { %6582 = vrsqrt.f32 %v4944_v3 }
 0xaa4   : > { %v4887_v39 = vpop.xlane.xlu0 %4886 }
 0xaa5   : > { %v4929_v51 = vmul.f32 0.00390625, %v4887_v39 }
 0xaa6   : > { %v4890_v62 = vpop.xlane.xlu1 %4889 }
 0xaa7   : > { %v4945_v34 = vadd.f32 1e-12, %v4929_v51  ;;  %v4930_v44 = vmul.f32 0.00390625, %v4890_v62 }
 0xaa9   : > { %6584 = vrsqrt.f32 %v4945_v34  ;;  %v4946_v19 = vadd.f32 1e-12, %v4930_v44 }
 0xaab   : > { %v6581_v2 = vpop.eup %6580  ;;  %6586 = vrsqrt.f32 %v4946_v19 }
 0xaac   : > { %v4975_v0 = vmul.f32 %v6581_v2, %v9125_v52  ;;  %v4976_v36 = vmul.f32 %v6581_v2, %v9128_v1  ;;  %v4893_v60 = vpop.xlane.xlu0 %4892 }
 0xaad   : > { %v6583_v41 = vpop.eup %6582  ;;  %v4931_v14 = vmul.f32 0.00390625, %v4893_v60 }
 0xaae   : > { %v5018_v26 = vmul.f32 %v9291_v7, %v4975_v0  ;;  %v5019_v5 = vmul.f32 %v9294_v24, %v4976_v36  ;;  %v4977_v9 = vmul.f32 %v6583_v41, %v9135_v48  ;;  %v4978_v32 = vmul.f32 %v6583_v41, %v9138_v33  ;;  %v4896_v50 = vpop.xlane.xlu1 %4895 }
 0xaaf   : > { %v4947_v29 = vadd.f32 1e-12, %v4931_v14  ;;  %v4932_v61 = vmul.f32 0.00390625, %v4896_v50 }
 0xab0   : > { %v5061_v20 = vadd.f32 %v9297_v11, %v5018_v26  ;;  %v5062_v52 = vadd.f32 %v9300_v58, %v5019_v5  ;;  %v5020_v1 = vmul.f32 %v9291_v7, %v4977_v9  ;;  %v5021_v59 = vmul.f32 %v9294_v24, %v4978_v32 }
 0xab1   : > { %6588 = vrsqrt.f32 %v4947_v29  ;;  %v4948_v38 = vadd.f32 1e-12, %v4932_v61 }
 0xab2   : > { %5093 = vst [vmem:[%s9314_s2] sm:$0xff] %v5061_v20  ;;  %5094 = vst [vmem:[%s9314_s2 + $0x8] sm:$0xff] %v5062_v52  ;;  %v5063_v48 = vadd.f32 %v9297_v11, %v5020_v1  ;;  %v5064_v33 = vadd.f32 %v9300_v58, %v5021_v59 }
 0xab3   : > { %v6585_v17 = vpop.eup %6584  ;;  %6590 = vrsqrt.f32 %v4948_v38 }
 0xab4   : > { %5095 = vst [vmem:[%s9314_s2 + $0x10] sm:$0xff] %v5063_v48  ;;  %5096 = vst [vmem:[%s9314_s2 + $0x18] sm:$0xff] %v5064_v33  ;;  %v4979_v30 = vmul.f32 %v6585_v17, %v9145_v28  ;;  %v4980_v6 = vmul.f32 %v6585_v17, %v9148_v18  ;;  %v4899_v3 = vpop.xlane.xlu0 %4898 }
 0xab5   : > { %v6587_v39 = vpop.eup %6586  ;;  %v4933_v51 = vmul.f32 0.00390625, %v4899_v3 }
 0xab6   : > { %v5022_v62 = vmul.f32 %v9291_v7, %v4979_v30  ;;  %v5023_v27 = vmul.f32 %v9294_v24, %v4980_v6  ;;  %v4981_v34 = vmul.f32 %v6587_v39, %v9155_v4  ;;  %v4982_v44 = vmul.f32 %v6587_v39, %v9158_v25  ;;  %v4902_v56 = vpop.xlane.xlu1 %4901 }
 0xab7   : > { %v4949_v19 = vadd.f32 1e-12, %v4933_v51  ;;  %v4934_v28 = vmul.f32 0.00390625, %v4902_v56 }
 0xab8   : > { %v5065_v18 = vadd.f32 %v9297_v11, %v5022_v62  ;;  %v5066_v2 = vadd.f32 %v9300_v58, %v5023_v27  ;;  %v5024_v0 = vmul.f32 %v9291_v7, %v4981_v34  ;;  %v5025_v36 = vmul.f32 %v9294_v24, %v4982_v44 }
 0xab9   : > { %6592 = vrsqrt.f32 %v4949_v19  ;;  %v4950_v60 = vadd.f32 1e-12, %v4934_v28 }
 0xaba   : > { %5097 = vst [vmem:[%s9314_s2 + $0x20] sm:$0xff] %v5065_v18  ;;  %5098 = vst [vmem:[%s9314_s2 + $0x28] sm:$0xff] %v5066_v2  ;;  %v5067_v4 = vadd.f32 %v9297_v11, %v5024_v0  ;;  %v5068_v25 = vadd.f32 %v9300_v58, %v5025_v36 }
 0xabb   : > { %v6589_v41 = vpop.eup %6588  ;;  %6594 = vrsqrt.f32 %v4950_v60 }
 0xabc   : > { %5099 = vst [vmem:[%s9314_s2 + $0x30] sm:$0xff] %v5067_v4  ;;  %5100 = vst [vmem:[%s9314_s2 + $0x38] sm:$0xff] %v5068_v25  ;;  %v4983_v14 = vmul.f32 %v6589_v41, %v9165_v63  ;;  %v4984_v26 = vmul.f32 %v6589_v41, %v9168_v31  ;;  %v4905_v5 = vpop.xlane.xlu0 %4904 }
 0xabd   : > { %v6591_v9 = vpop.eup %6590  ;;  %v4935_v32 = vmul.f32 0.00390625, %v4905_v5 }
 0xabe   : > { %v5026_v50 = vmul.f32 %v9291_v7, %v4983_v14  ;;  %v5027_v29 = vmul.f32 %v9294_v24, %v4984_v26  ;;  %v4985_v61 = vmul.f32 %v6591_v9, %v9175_v35  ;;  %v4986_v20 = vmul.f32 %v6591_v9, %v9178_v43  ;;  %v4908_v52 = vpop.xlane.xlu1 %4907 }
 0xabf   : > { %v4951_v1 = vadd.f32 1e-12, %v4935_v32  ;;  %v4936_v63 = vmul.f32 0.00390625, %v4908_v52 }
 0xac0   : > { %v5069_v31 = vadd.f32 %v9297_v11, %v5026_v50  ;;  %v5070_v59 = vadd.f32 %v9300_v58, %v5027_v29  ;;  %v5028_v38 = vmul.f32 %v9291_v7, %v4985_v61  ;;  %v5029_v48 = vmul.f32 %v9294_v24, %v4986_v20 }
 0xac1   : > { %6596 = vrsqrt.f32 %v4951_v1  ;;  %v4952_v33 = vadd.f32 1e-12, %v4936_v63 }
 0xac2   : > { %5101 = vst [vmem:[%s9314_s2 + $0x40] sm:$0xff] %v5069_v31  ;;  %5102 = vst [vmem:[%s9314_s2 + $0x48] sm:$0xff] %v5070_v59  ;;  %v5071_v35 = vadd.f32 %v9297_v11, %v5028_v38  ;;  %v5072_v43 = vadd.f32 %v9300_v58, %v5029_v48 }
 0xac3   : > { %v6593_v17 = vpop.eup %6592  ;;  %6598 = vrsqrt.f32 %v4952_v33 }
 0xac4   : > { %5103 = vst [vmem:[%s9314_s2 + $0x50] sm:$0xff] %v5071_v35  ;;  %5104 = vst [vmem:[%s9314_s2 + $0x58] sm:$0xff] %v5072_v43  ;;  %v4987_v30 = vmul.f32 %v6593_v17, %v9185_v12  ;;  %v4988_v6 = vmul.f32 %v6593_v17, %v9188_v57  ;;  %v4911_v3 = vpop.xlane.xlu0 %4910 }
 0xac5   : > { %v6595_v39 = vpop.eup %6594  ;;  %v4937_v51 = vmul.f32 0.00390625, %v4911_v3 }
 0xac6   : > { %v5030_v62 = vmul.f32 %v9291_v7, %v4987_v30  ;;  %v5031_v27 = vmul.f32 %v9294_v24, %v4988_v6  ;;  %v4989_v34 = vmul.f32 %v6595_v39, %v9195_v37  ;;  %v4990_v44 = vmul.f32 %v6595_v39, %v9198_v46  ;;  %v4914_v56 = vpop.xlane.xlu1 %4913 }
 0xac7   : > { %v4953_v19 = vadd.f32 1e-12, %v4937_v51  ;;  %v4938_v12 = vmul.f32 0.00390625, %v4914_v56 }
 0xac8   : > { %v5073_v57 = vadd.f32 %v9297_v11, %v5030_v62  ;;  %v5074_v28 = vadd.f32 %v9300_v58, %v5031_v27  ;;  %v5032_v18 = vmul.f32 %v9291_v7, %v4989_v34  ;;  %v5033_v2 = vmul.f32 %v9294_v24, %v4990_v44 }
 0xac9   : > { %6600 = vrsqrt.f32 %v4953_v19  ;;  %v4954_v0 = vadd.f32 1e-12, %v4938_v12 }
 0xaca   : > { %5105 = vst [vmem:[%s9314_s2 + $0x60] sm:$0xff] %v5073_v57  ;;  %5106 = vst [vmem:[%s9314_s2 + $0x68] sm:$0xff] %v5074_v28  ;;  %v5075_v37 = vadd.f32 %v9297_v11, %v5032_v18  ;;  %v5076_v46 = vadd.f32 %v9300_v58, %v5033_v2 }
 0xacb   : > { %v6597_v36 = vpop.eup %6596  ;;  %6602 = vrsqrt.f32 %v4954_v0 }
 0xacc   : > { %5107 = vst [vmem:[%s9314_s2 + $0x70] sm:$0xff] %v5075_v37  ;;  %5108 = vst [vmem:[%s9314_s2 + $0x78] sm:$0xff] %v5076_v46  ;;  %v4991_v60 = vmul.f32 %v6597_v36, %v9205_v42  ;;  %v4992_v4 = vmul.f32 %v6597_v36, %v9208_v23  ;;  %v4917_v25 = vpop.xlane.xlu0 %4916 }
 0xacd   : > { %v6599_v41 = vpop.eup %6598  ;;  %v4939_v14 = vmul.f32 0.00390625, %v4917_v25 }
 0xace   : > { %v5034_v26 = vmul.f32 %v9291_v7, %v4991_v60  ;;  %v5035_v5 = vmul.f32 %v9294_v24, %v4992_v4  ;;  %v4993_v9 = vmul.f32 %v6599_v41, %v9215_v47  ;;  %v4994_v32 = vmul.f32 %v6599_v41, %v9218_v8  ;;  %v4920_v50 = vpop.xlane.xlu1 %4919 }
 0xacf   : > { %v4955_v29 = vadd.f32 1e-12, %v4939_v14  ;;  %v4940_v42 = vmul.f32 0.00390625, %v4920_v50 }
 0xad0   : > { %v5077_v23 = vadd.f32 %v9297_v11, %v5034_v26  ;;  %v5078_v61 = vadd.f32 %v9300_v58, %v5035_v5  ;;  %v5036_v20 = vmul.f32 %v9291_v7, %v4993_v9  ;;  %v5037_v52 = vmul.f32 %v9294_v24, %v4994_v32 }
 0xad1   : > { %6604 = vrsqrt.f32 %v4955_v29  ;;  %v4956_v1 = vadd.f32 1e-12, %v4940_v42 }
 0xad2   : > { %5109 = vst [vmem:[%s9314_s2 + $0x80] sm:$0xff] %v5077_v23  ;;  %5110 = vst [vmem:[%s9314_s2 + $0x88] sm:$0xff] %v5078_v61  ;;  %v5079_v47 = vadd.f32 %v9297_v11, %v5036_v20  ;;  %v5080_v8 = vadd.f32 %v9300_v58, %v5037_v52 }
 0xad3   : > { %v6601_v63 = vpop.eup %6600  ;;  %6606 = vrsqrt.f32 %v4956_v1 }
 0xad4   : > { %5111 = vst [vmem:[%s9314_s2 + $0x90] sm:$0xff] %v5079_v47  ;;  %5112 = vst [vmem:[%s9314_s2 + $0x98] sm:$0xff] %v5080_v8  ;;  %v4995_v31 = vmul.f32 %v6601_v63, %v9225_v40  ;;  %v4996_v59 = vmul.f32 %v6601_v63, %v9228_v49  ;;  %v4923_v38 = vpop.xlane.xlu0 %4922 }
 0xad5   : > { %v6603_v48 = vpop.eup %6602  ;;  %v4941_v33 = vmul.f32 0.00390625, %v4923_v38 }
 0xad6   : > { %v5038_v35 = vmul.f32 %v9291_v7, %v4995_v31  ;;  %v5039_v43 = vmul.f32 %v9294_v24, %v4996_v59  ;;  %v4997_v17 = vmul.f32 %v6603_v48, %v9235_v55  ;;  %v4998_v30 = vmul.f32 %v6603_v48, %v9238_v54  ;;  %v4926_v6 = vpop.xlane.xlu1 %4925 }
 0xad7   : > { %v4957_v3 = vadd.f32 1e-12, %v4941_v33  ;;  %v4942_v40 = vmul.f32 0.00390625, %v4926_v6 }
 0xad8   : > { %v5081_v49 = vadd.f32 %v9297_v11, %v5038_v35  ;;  %v5082_v39 = vadd.f32 %v9300_v58, %v5039_v43  ;;  %v5040_v51 = vmul.f32 %v9291_v7, %v4997_v17  ;;  %v5041_v62 = vmul.f32 %v9294_v24, %v4998_v30 }
 0xad9   : > { %6608 = vrsqrt.f32 %v4957_v3  ;;  %v4958_v27 = vadd.f32 1e-12, %v4942_v40 }
 0xada   : > { %5113 = vst [vmem:[%s9314_s2 + $0xa0] sm:$0xff] %v5081_v49  ;;  %5114 = vst [vmem:[%s9314_s2 + $0xa8] sm:$0xff] %v5082_v39  ;;  %v5083_v55 = vadd.f32 %v9297_v11, %v5040_v51  ;;  %v5084_v54 = vadd.f32 %v9300_v58, %v5041_v62 }
 0xadb   : > { %v6605_v34 = vpop.eup %6604  ;;  %6610 = vrsqrt.f32 %v4958_v27 }
 0xadc   : > { %5115 = vst [vmem:[%s9314_s2 + $0xb0] sm:$0xff] %v5083_v55  ;;  %5116 = vst [vmem:[%s9314_s2 + $0xb8] sm:$0xff] %v5084_v54  ;;  %v4999_v44 = vmul.f32 %v6605_v34, %v9245_v53  ;;  %v5000_v56 = vmul.f32 %v6605_v34, %v9248_v15 }
 0xadd   : > { %v6607_v19 = vpop.eup %6606 }
 0xade   : > { %v5042_v12 = vmul.f32 %v9291_v7, %v4999_v44  ;;  %v5043_v57 = vmul.f32 %v9294_v24, %v5000_v56  ;;  %v5001_v28 = vmul.f32 %v6607_v19, %v9255_v22  ;;  %v5002_v18 = vmul.f32 %v6607_v19, %v9258_v21 }
 0xae0   : > { %v5085_v2 = vadd.f32 %v9297_v11, %v5042_v12  ;;  %v5086_v0 = vadd.f32 %v9300_v58, %v5043_v57  ;;  %v5044_v37 = vmul.f32 %v9291_v7, %v5001_v28  ;;  %v5045_v53 = vmul.f32 %v9294_v24, %v5002_v18 }
 0xae2   : > { %5117 = vst [vmem:[%s9314_s2 + $0xc0] sm:$0xff] %v5085_v2  ;;  %5118 = vst [vmem:[%s9314_s2 + $0xc8] sm:$0xff] %v5086_v0  ;;  %v5087_v15 = vadd.f32 %v9297_v11, %v5044_v37  ;;  %v5088_v46 = vadd.f32 %v9300_v58, %v5045_v53 }
 0xae3   : > { %v6609_v36 = vpop.eup %6608 }
 0xae4   : > { %5119 = vst [vmem:[%s9314_s2 + $0xd0] sm:$0xff] %v5087_v15  ;;  %5120 = vst [vmem:[%s9314_s2 + $0xd8] sm:$0xff] %v5088_v46  ;;  %v5003_v22 = vmul.f32 %v6609_v36, %v9265_v13  ;;  %v5004_v21 = vmul.f32 %v6609_v36, %v9268_v45 }
 0xae5   : > { %v6611_v60 = vpop.eup %6610 }
 0xae6   : > { %v5046_v4 = vmul.f32 %v9291_v7, %v5003_v22  ;;  %v5047_v25 = vmul.f32 %v9294_v24, %v5004_v21  ;;  %v5005_v41 = vmul.f32 %v6611_v60, %v9275_v16  ;;  %v5006_v14 = vmul.f32 %v6611_v60, %v9278_v10 }
 0xae8   : > { %v5089_v13 = vadd.f32 %v9297_v11, %v5046_v4  ;;  %v5090_v26 = vadd.f32 %v9300_v58, %v5047_v25  ;;  %v5048_v45 = vmul.f32 %v9291_v7, %v5005_v41  ;;  %v5049_v5 = vmul.f32 %v9294_v24, %v5006_v14 }
 0xaea   : > { %5121 = vst [vmem:[%s9314_s2 + $0xe0] sm:$0xff] %v5089_v13  ;;  %5122 = vst [vmem:[%s9314_s2 + $0xe8] sm:$0xff] %v5090_v26  ;;  %v5091_v16 = vadd.f32 %v9297_v11, %v5048_v45  ;;  %v5092_v10 = vadd.f32 %v9300_v58, %v5049_v5 }
 0xaec   : > { %5123 = vst [vmem:[%s9314_s2 + $0xf0] sm:$0xff] %v5091_v16  ;;  %5124 = vst [vmem:[%s9314_s2 + $0xf8] sm:$0xff] %v5092_v10 }
 0xaed   : > { %6829 = shalt.err (!%p6826_p10)
}
 0xaee   : > { %s6830_s21 = scalar_lea.hbm %s9433_s26, 4096  ;;  %s6834_s24 = scalar_lea.hbm %s9693_s12, 8192 }
 0xaef   : > { %p6831_p11 = scmp.ne.s32.totalorder %s9433_s26, %s6830_s21  ;;  %p6835_p7 = scmp.lt.u32.totalorder %s9433_s26, %s9693_s12 }
 0xaf0   : > { %p6836_p12 = scmp.lt.u32.totalorder %s6834_s24, %s6830_s21  ;;  %p6838_p1 = scmp.lt.u32.totalorder %s6830_s21, %s9433_s26 }
 0xaf1   : > { %p6832_p9 = pnand %p6831_p11, %p9694_p13 }
 0xaf2   : > { %p6837_p2 = por %p6836_p12, %p6835_p7 }
 0xaf3   : > { %p6833_p5 = pneg %p6832_p9 }
 0xaf4   : > { %p6839_p0 = por %p6838_p1, %p6837_p2 }
 0xaf6   : > { %p6840_p4 = pnand %p6839_p0, %p6833_p5 }
 0xaf8   : > { %6843 = shalt.err (!%p6840_p4)
}
 0xaf9   : > { %s6913_s2 = smov 256   ;;  %s6914_s18 = smov 16  }
 0xafa   : > { %5828 = dma.vmem_to_hbm [thread:$0]  (%p9694_p13), %s9435_s11, 4096, %s9433_s26, %s5126_s17, %s6913_s2, %s6913_s2, %s6914_s18  }
 0xafb PF: > { %s9695_s28 = sld [smem:[#allocation20_spill]]  ;;  %s9696_s0 = sld [smem:[#allocation21_spill]] }
 0xafc   : > { %p9698_p6 = scmp.ge.s32.totalorder %s6898_s16, 2 }
 0xb01   : > { %s5154_s27 = sand.u32 1, %s9695_s28   ;;  %p9697_p3 = scmp.ne.s32.totalorder %s9696_s0, 0 }
 0xb02   : > { %s5155_s23 = scalar_lea.sflag [#allocation4], %s5154_s27 }
 0xb03   : > { %p5851_p8 = pnand %p9698_p6, %p9697_p3 }
 0xb05   : > { %6881 = dma.done.wait (!%p5851_p8), %s5155_s23, 4096  }
 0xb06   : > { %6883 = vsyncadd (!%p5851_p8), %s5155_s23, 4294963200  ;;  %s9699_s13 = smov %s7145_s29  ;;  %p32_p10 = scmp.ge.s32.totalorder %s7145_s29, 4  }
 0xb07   : > { %s9700_s29 = smov %s6890_s30  ;;  %s9701_s30 = smov %s6894_s15 }
 0xb08   : > { %s9702_s15 = smov %s7161_s25  ;;  %s9703_s16 = smov %s9699_s13 }
 0xb09   :  { %34 = sbr.rel (!%p32_p10) target bundleno = 19 (0x13), region = 150 }
 0xb10   :  { %5160 = vsyncpa [#allocation3], 1 }
 0xb11   :  { %5162 = vsyncpa [#allocation3 + $0x1], 1 }
 0xb12   :  { %5163 = vsyncpa [#allocation6], 1 }
 0xb13   :  { %5165 = vsyncpa [#allocation6 + $0x1], 1 }
 0xb14   :  { %5166 = vsyncpa [#allocation9], 1 }
 0xb15   :  { %5167 = vsyncpa [#allocation12], 1 }
 0xb16   :  { %5168 = vsyncpa [#allocation4], 1 }
 0xb17   :  { %5170 = vsyncpa [#allocation4 + $0x1], 1 }

</bundles_post_ra>
